<compile_context>
chip_gen: v7x
topology: tpu7x:2x2x1
jax: 0.10.0
libtpu: 0.0.40
codegen_flags: <defaults>
</compile_context>

<pallas_src>
import functools

import jax
import jax.numpy as jnp
from jax import lax
from jax.experimental import pallas as pl
from jax.experimental.pallas import tpu as pltpu

_EPS = 1e-6


# --------------------------------------------------------------------------
# Generation-aware knobs
# --------------------------------------------------------------------------
@functools.lru_cache(maxsize=None)
def _vmem_limit_bytes():
    phys = 128 * 1024 * 1024
    try:
        info = pltpu.get_tpu_info()
        for attr in ("vmem_capacity_bytes", "vmem_bytes", "vmem_size_bytes"):
            v = getattr(info, attr, None)
            if v:
                phys = int(v)
                break
    except Exception:
        pass
    # v5e/v6e (128 MiB physical) -> 100 MiB scoped limit; v7x (64 MiB) -> 48 MiB.
    return max(32 * 1024 * 1024, min(phys - 16 * 1024 * 1024, 100 * 1024 * 1024))


def _cparams(*sems):
    return pltpu.CompilerParams(dimension_semantics=tuple(sems),
                                vmem_limit_bytes=_vmem_limit_bytes())


def _conv_step_bytes(th, w, c_in, c_out, eb):
    f32 = 4
    stream = (th * w * c_in + 2 * w * c_in + 2 * th * w * c_out
              + 9 * c_in * c_out) * eb
    interm = ((th + 2) * (w + 2) * c_in + th * w * 3 * c_in
              + 2 * th * w * c_out) * f32
    return 2 * stream + interm            # x2: double-buffered streams


def _pick_row_tile(h, w, cin, cout, elem_bytes):
    budget = _vmem_limit_bytes()
    target = 64 if budget >= 80 * (1 << 20) else 32
    c = max(cin, cout)
    best = 1
    for d in range(1, h + 1):
        if h % d:
            continue
        if d <= target and _conv_step_bytes(d, w, c, c, elem_bytes) <= budget // 3:
            best = d
    # TODO(synk): when H has no divisor near the target this degrades to tiny
    # tiles (perf cliff, still correct); padding H or a remainder tile would fix it.
    return best


# --------------------------------------------------------------------------
# GroupNorm statistics kernel (row-tiled reduction -> per-image scale/shift)
# --------------------------------------------------------------------------
def _gn_stats_kernel(x_ref, p_ref, g_ref, b_ref, scale_ref, shift_ref,
                     s1_ref, s2_ref):
    """x_ref: (1, th, W, C); p_ref: (C, C) group-average matrix;
    g_ref/b_ref: (1, C); outputs scale/shift: (1, 1, C)."""
    t = pl.program_id(1)

    @pl.when(t == 0)
    def _():
        s1_ref[...] = jnp.zeros_like(s1_ref)
        s2_ref[...] = jnp.zeros_like(s2_ref)

    x = x_ref[0].astype(jnp.float32)                    # (th, W, C)
    th, w, c = x.shape
    x2 = x.reshape(th * w, c)
    s1_ref[...] += jnp.sum(x2, axis=0, keepdims=True)
    s2_ref[...] += jnp.sum(x2 * x2, axis=0, keepdims=True)

    @pl.when(t == pl.num_programs(1) - 1)
    def _():
        mean = jnp.dot(s1_ref[...], p_ref[...], preferred_element_type=jnp.float32)
        msq = jnp.dot(s2_ref[...], p_ref[...], preferred_element_type=jnp.float32)
        var = msq - mean * mean
        inv = lax.rsqrt(var + _EPS)
        g = g_ref[...].astype(jnp.float32)
        b = b_ref[...].astype(jnp.float32)
        scale = g * inv
        scale_ref[0] = scale
        shift_ref[0] = b - mean * scale


def _gn_stats(x_nhwc, gamma, beta, *, row_tile, num_groups=32):
    n, h, w, c = x_nhwc.shape
    cg = c // num_groups
    gidx = jnp.arange(c) // cg
    p = (gidx[:, None] == gidx[None, :]).astype(jnp.float32) / float(h * w * cg)
    g2 = gamma.reshape(1, c).astype(jnp.float32)
    b2 = beta.reshape(1, c).astype(jnp.float32)
    th = row_tile
    assert h % th == 0, (h, th)
    ht = h // th
    return pl.pallas_call(
        _gn_stats_kernel,
        out_shape=(jax.ShapeDtypeStruct((n, 1, c), jnp.float32),
                   jax.ShapeDtypeStruct((n, 1, c), jnp.float32)),
        grid_spec=pltpu.PrefetchScalarGridSpec(
            num_scalar_prefetch=0,
            grid=(n, ht),
            in_specs=[
                pl.BlockSpec((1, th, w, c), lambda i, t: (i, t, 0, 0)),
                pl.BlockSpec((c, c), lambda i, t: (0, 0)),
                pl.BlockSpec((1, c), lambda i, t: (0, 0)),
                pl.BlockSpec((1, c), lambda i, t: (0, 0)),
            ],
            out_specs=[pl.BlockSpec((1, 1, c), lambda i, t: (i, 0, 0)),
                       pl.BlockSpec((1, 1, c), lambda i, t: (i, 0, 0))],
            scratch_shapes=[pltpu.VMEM((1, c), jnp.float32),
                            pltpu.VMEM((1, c), jnp.float32)]),
        compiler_params=_cparams("parallel", "arbitrary"),
    )(x_nhwc, p, g2, b2)


# --------------------------------------------------------------------------
# Fused (GroupNorm+swish) -> 3x3 conv (-> +residual / +nin shortcut) kernel
# --------------------------------------------------------------------------
def _make_conv3x3_kernel(activation, residual_mode):
    def kernel(*refs):
        x_ref, top_ref, bot_ref = refs[0:3]
        idx = 3
        if activation:
            scale_ref, shift_ref = refs[3:5]
            idx = 5
        w_ref, b_ref = refs[idx:idx + 2]
        idx += 2
        if residual_mode == "add":
            res_ref = refs[idx]
            idx += 1
        elif residual_mode == "nin":
            xr_ref, ninw_ref, ninb_ref = refs[idx:idx + 3]
            idx += 3
        o_ref = refs[idx]

        t = pl.program_id(1)
        nt = pl.num_programs(1)
        _, th, w, cin = x_ref.shape
        cout = o_ref.shape[-1]

        if activation:
            scale = scale_ref[0].astype(jnp.float32)      # (1, Cin)
            shift = shift_ref[0].astype(jnp.float32)

        def prep(v):
            v = v.astype(jnp.float32)
            if activation:
                v = v * scale + shift
                v = v * (1.0 / (1.0 + jnp.exp(-v)))       # swish
            return v

        keep_top = (t > 0).astype(jnp.float32)
        keep_bot = (t < nt - 1).astype(jnp.float32)
        xm = prep(x_ref[0])                               # (th, W, Cin)
        top = prep(top_ref[0]) * keep_top                 # (1, W, Cin) halo row
        bot = prep(bot_ref[0]) * keep_bot                 # (1, W, Cin) halo row

        rows = jnp.concatenate([top, xm, bot], axis=0)    # (th+2, W, Cin)
        zcol = jnp.zeros((th + 2, 1, cin), jnp.float32)
        xp = jnp.concatenate([zcol, rows, zcol], axis=1)  # (th+2, W+2, Cin)

        acc = jnp.zeros((th * w, cout), jnp.float32)
        for kh in range(3):
            # K-stacked taps: one (th*W, 3*Cin) x (3*Cin, Cout) matmul per kernel row.
            a_kh = jnp.concatenate(
                [xp[kh:kh + th, 0:w, :],
                 xp[kh:kh + th, 1:w + 1, :],
                 xp[kh:kh + th, 2:w + 2, :]], axis=-1)     # (th, W, 3*Cin)
            acc = acc + jnp.dot(a_kh.reshape(th * w, 3 * cin), w_ref[kh],
                                preferred_element_type=jnp.float32)
        acc = acc + b_ref[0].astype(jnp.float32)           # per-image channel bias

        if residual_mode == "add":
            acc = acc + res_ref[0].astype(jnp.float32).reshape(th * w, cout)
        elif residual_mode == "nin":
            cr = xr_ref.shape[-1]
            xr = xr_ref[0].astype(jnp.float32).reshape(th * w, cr)
            acc = acc + jnp.dot(xr, ninw_ref[...], preferred_element_type=jnp.float32)
            acc = acc + ninb_ref[...].astype(jnp.float32)

        o_ref[0] = acc.reshape(th, w, cout).astype(o_ref.dtype)

    return kernel


def _conv3x3(x_nhwc, w_oihw, bias_img, *, row_tile, scale=None, shift=None,
             residual=None, nin=None):
    """3x3 stride-1 pad-1 conv in NHWC, grid = (N, H // row_tile).

    x_nhwc   : (N, H, W, Cin)  raw conv input (GN+swish applied in-kernel when
               scale/shift are given).
    bias_img : (N, Cout) per-image channel bias (conv bias [+ temb projection]).
    scale/shift : (N, 1, Cin) GroupNorm fold (None -> plain conv, no activation).
    residual : optional (N, H, W, Cout) added to the output.
    nin      : optional (x_res (N,H,W,Cr), w (Cout,Cr,1,1), b (Cout,)) fused 1x1 shortcut.
    """
    n, h, w, cin = x_nhwc.shape
    cout = w_oihw.shape[0]
    th = row_tile
    assert h % th == 0, (h, th)
    ht = h // th
    activation = scale is not None

    # (Cout,Cin,3,3) -> (3, 3*Cin, Cout), rows ordered [kw=0 Cin; kw=1; kw=2].
    w_k = jnp.transpose(w_oihw, (2, 3, 1, 0)).reshape(3, 3 * cin, cout)
    b3 = bias_img.reshape(n, 1, cout)

    in_specs = [
        pl.BlockSpec((1, th, w, cin), lambda i, t: (i, t, 0, 0)),
        pl.BlockSpec((1, 1, w, cin),
                     lambda i, t: (i, jnp.maximum(t * th - 1, 0), 0, 0)),
        pl.BlockSpec((1, 1, w, cin),
                     lambda i, t: (i, jnp.minimum(t * th + th, h - 1), 0, 0)),
    ]
    args = [x_nhwc, x_nhwc, x_nhwc]

    if activation:
        in_specs += [pl.BlockSpec((1, 1, cin), lambda i, t: (i, 0, 0)),
                     pl.BlockSpec((1, 1, cin), lambda i, t: (i, 0, 0))]
        args += [scale, shift]

    in_specs += [pl.BlockSpec((3, 3 * cin, cout), lambda i, t: (0, 0, 0)),
                 pl.BlockSpec((1, 1, cout), lambda i, t: (i, 0, 0))]
    args += [w_k, b3]

    residual_mode = None
    if residual is not None:
        residual_mode = "add"
        in_specs.append(pl.BlockSpec((1, th, w, cout), lambda i, t: (i, t, 0, 0)))
        args.append(residual)
    elif nin is not None:
        residual_mode = "nin"
        xr, nw, nb = nin
        cr = xr.shape[-1]
        in_specs += [pl.BlockSpec((1, th, w, cr), lambda i, t: (i, t, 0, 0)),
                     pl.BlockSpec((cr, cout), lambda i, t: (0, 0)),
                     pl.BlockSpec((1, cout), lambda i, t: (0, 0))]
        args += [xr,
                 jnp.transpose(nw.reshape(cout, cr), (1, 0)),
                 nb.reshape(1, cout)]

    kernel = _make_conv3x3_kernel(activation, residual_mode)
    return pl.pallas_call(
        kernel,
        out_shape=jax.ShapeDtypeStruct((n, h, w, cout), x_nhwc.dtype),
        grid_spec=pltpu.PrefetchScalarGridSpec(
            num_scalar_prefetch=0,
            grid=(n, ht),
            in_specs=in_specs,
            out_specs=pl.BlockSpec((1, th, w, cout), lambda i, t: (i, t, 0, 0))),
        compiler_params=_cparams("parallel", "parallel"),
    )(*args)


# --------------------------------------------------------------------------
# ResnetBlock forward (NCHW in / NCHW out, matching the PyTorch module)
# --------------------------------------------------------------------------
def _swish_jnp(v):
    return v * jax.nn.sigmoid(v)


@functools.partial(jax.jit, static_argnames=("use_conv_shortcut", "row_tile"))
def resnet_block_forward(x_nchw, temb, params, *, use_conv_shortcut=False,
                         row_tile=None):
    n, cin, h, w = x_nchw.shape
    cout = params["conv1_w"].shape[0]
    if row_tile is None:
        row_tile = _pick_row_tile(h, w, cin, cout, x_nchw.dtype.itemsize)

    x = jnp.transpose(x_nchw, (0, 2, 3, 1))               # NCHW -> NHWC (once)

    # GroupNorm1 fold (per-image scale/shift), applied inside the conv1 kernel.
    sc1, sh1 = _gn_stats(x, params["norm1_g"], params["norm1_b"], row_tile=row_tile)

    # conv1 bias + temb projection, folded to one per-image bias (plain jnp).
    b1 = jnp.broadcast_to(params["conv1_b"][None, :], (n, cout)).astype(jnp.float32)
    if temb is not None:
        tf = temb.astype(jnp.float32)
        b1 = b1 + (_swish_jnp(tf) @ params["temb_w"].astype(jnp.float32).T
                   + params["temb_b"].astype(jnp.float32))

    # h1 = conv1(swish(norm1(x))) + b1
    h1 = _conv3x3(x, params["conv1_w"], b1, row_tile=row_tile, scale=sc1, shift=sh1)

    # GroupNorm2 fold on h1.
    sc2, sh2 = _gn_stats(h1, params["norm2_g"], params["norm2_b"], row_tile=row_tile)
    b2 = jnp.broadcast_to(params["conv2_b"][None, :], (n, cout)).astype(jnp.float32)

    # Shortcut.  dropout = identity (inference mode).
    residual = None
    nin = None
    if cin != cout:
        if use_conv_shortcut:
            bs = jnp.broadcast_to(params["convs_b"][None, :],
                                  (n, cout)).astype(jnp.float32)
            residual = _conv3x3(x, params["convs_w"], bs, row_tile=row_tile)
        else:
            nin = (x, params["nin_w"], params["nin_b"])   # fused into conv2 kernel
    else:
        residual = x

    # out = conv2(dropout(swish(norm2(h1)))) + shortcut(x)   (all fused)
    out = _conv3x3(h1, params["conv2_w"], b2, row_tile=row_tile,
                   scale=sc2, shift=sh2, residual=residual, nin=nin)
    return jnp.transpose(out, (0, 3, 1, 2))                # NHWC -> NCHW (once)


# --------------------------------------------------------------------------
# Pure-JAX reference for correctness checking
# --------------------------------------------------------------------------
def _ref_resnet_block(x, temb, p, *, use_conv_shortcut):
    def gn(v, gamma, beta):
        n, c, hh, ww = v.shape
        g = 32
        vr = v.reshape(n, g, (c // g) * hh * ww)
        mean = vr.mean(axis=2, keepdims=True)
        var = vr.var(axis=2, keepdims=True)
        vr = (vr - mean) * lax.rsqrt(var + _EPS)
        vn = vr.reshape(n, c, hh, ww)
        return vn * gamma.reshape(1, c, 1, 1) + beta.reshape(1, c, 1, 1)

    def swish(v):
        return v * jax.nn.sigmoid(v)

    def conv(v, wgt, b, pad):
        y = lax.conv_general_dilated(v, wgt, (1, 1), [(pad, pad), (pad, pad)],
                                     dimension_numbers=("NCHW", "OIHW", "NCHW"))
        return y + b.reshape(1, -1, 1, 1)

    cin = x.shape[1]
    cout = p["conv1_w"].shape[0]
    h = conv(swish(gn(x, p["norm1_g"], p["norm1_b"])), p["conv1_w"], p["conv1_b"], 1)
    if temb is not None:
        h = h + (swish(temb) @ p["temb_w"].T + p["temb_b"])[:, :, None, None]
    h = conv(swish(gn(h, p["norm2_g"], p["norm2_b"])), p["conv2_w"], p["conv2_b"], 1)
    if cin != cout:
        if use_conv_shortcut:
            xs = conv(x, p["convs_w"], p["convs_b"], 1)
        else:
            xs = conv(x, p["nin_w"], p["nin_b"], 0)
    else:
        xs = x
    return xs + h


# --------------------------------------------------------------------------
if __name__ == "__main__":
    key = jax.random.PRNGKey(0)
    N, H, W, TEMB = 2, 16, 16, 64

    def make_params(k, cin, cout, use_conv_shortcut):
        ks = jax.random.split(k, 12)
        p = {
            "norm1_g": 1.0 + 0.1 * jax.random.normal(ks[0], (cin,)),
            "norm1_b": 0.1 * jax.random.normal(ks[1], (cin,)),
            "conv1_w": 0.05 * jax.random.normal(ks[2], (cout, cin, 3, 3)),
            "conv1_b": 0.1 * jax.random.normal(ks[3], (cout,)),
            "temb_w": 0.05 * jax.random.normal(ks[4], (cout, TEMB)),
            "temb_b": 0.1 * jax.random.normal(ks[5], (cout,)),
            "norm2_g": 1.0 + 0.1 * jax.random.normal(ks[6], (cout,)),
            "norm2_b": 0.1 * jax.random.normal(ks[7], (cout,)),
            "conv2_w": 0.05 * jax.random.normal(ks[8], (cout, cout, 3, 3)),
            "conv2_b": 0.1 * jax.random.normal(ks[9], (cout,)),
        }
        if cin != cout:
            if use_conv_shortcut:
                p["convs_w"] = 0.05 * jax.random.normal(ks[10], (cout, cin, 3, 3))
                p["convs_b"] = 0.1 * jax.random.normal(ks[11], (cout,))
            else:
                p["nin_w"] = 0.05 * jax.random.normal(ks[10], (cout, cin, 1, 1))
                p["nin_b"] = 0.1 * jax.random.normal(ks[11], (cout,))
        return p

    kx, kt, kp = jax.random.split(key, 3)
    configs = [
        (32, 32, False, 8),      # identity shortcut, 2 row tiles (halo path)
        (32, 64, False, None),   # fused nin_shortcut, auto row tile (single tile)
        (32, 64, True, 8),       # conv_shortcut (3x3, no activation), 2 row tiles
    ]
    for idx, (cin, cout, conv_sc, rt) in enumerate(configs):
        x = jax.random.normal(jax.random.fold_in(kx, idx), (N, cin, H, W),
                              dtype=jnp.float32)
        temb = jax.random.normal(jax.random.fold_in(kt, idx), (N, TEMB),
                                 dtype=jnp.float32)
        params = make_params(jax.random.fold_in(kp, idx), cin, cout, conv_sc)

        y = resnet_block_forward(x, temb, params, use_conv_shortcut=conv_sc,
                                 row_tile=rt)
        jax.block_until_ready(y)

        y_ref = _ref_resnet_block(x, temb, params, use_conv_shortcut=conv_sc)
        assert y.shape == (N, cout, H, W), y.shape
        max_err = float(jnp.max(jnp.abs(y - y_ref)))
        assert jnp.allclose(y, y_ref, atol=2e-3, rtol=2e-3), (idx, max_err)

    print("KERNEL_OK")
</pallas_src>

<mosaic_0001>
module attributes {stable_mosaic.version = 11 : i64} {
  func.func @_gn_stats_kernel(%arg0: i32, %arg1: i32, %arg2: memref<1x8x16x32xf32, #tpu.memory_space<vmem>>, %arg3: memref<32x32xf32, #tpu.memory_space<vmem>>, %arg4: memref<1x32xf32, #tpu.memory_space<vmem>>, %arg5: memref<1x32xf32, #tpu.memory_space<vmem>>, %arg6: memref<1x1x32xf32, #tpu.memory_space<vmem>>, %arg7: memref<1x1x32xf32, #tpu.memory_space<vmem>>, %arg8: memref<1x32xf32, #tpu.memory_space<vmem>>, %arg9: memref<1x32xf32, #tpu.memory_space<vmem>>) attributes {dimension_semantics = [#tpu.dimension_semantics<parallel>, #tpu.dimension_semantics<arbitrary>], iteration_bounds = array<i64: 2, 2>, scalar_prefetch = 0 : i64, scratch_operands = 2 : i64, tpu.core_type = #tpu.core_type<tc>, window_params = [{transform_indices = @transform_0, window_bounds = array<i64: 1, 8, 16, 32>}, {pipeline_mode = #tpu.pipeline_mode<synchronous>, transform_indices = @transform_1, window_bounds = array<i64: 32, 32>}, {pipeline_mode = #tpu.pipeline_mode<synchronous>, transform_indices = @transform_2, window_bounds = array<i64: 1, 32>}, {pipeline_mode = #tpu.pipeline_mode<synchronous>, transform_indices = @transform_3, window_bounds = array<i64: 1, 32>}, {transform_indices = @transform_4, window_bounds = array<i64: 1, 1, 32>}, {transform_indices = @transform_5, window_bounds = array<i64: 1, 1, 32>}]} {
    %c0_i32 = arith.constant 0 : i32
    %0 = arith.cmpi eq, %arg1, %c0_i32 : i32
    %1 = arith.extui %0 : i1 to i32
    %c0_i32_0 = arith.constant 0 : i32
    %2 = arith.cmpi ne, %1, %c0_i32_0 : i32
    scf.if %2 {
      %cst_14 = arith.constant 0.000000e+00 : f32
      %20 = vector.broadcast %cst_14 : f32 to vector<1x32xf32>
      %c0_15 = arith.constant 0 : index
      %c0_16 = arith.constant 0 : index
      %21 = vector.load %arg8[%c0_15, %c0_16] : memref<1x32xf32, #tpu.memory_space<vmem>>, vector<1x32xf32>
      tpu.vector_store %arg8[%c0_15, %c0_16], %20 {strides = array<i32>} : memref<1x32xf32, #tpu.memory_space<vmem>>, vector<1x32xf32>,
      %cst_17 = arith.constant 0.000000e+00 : f32
      %22 = vector.broadcast %cst_17 : f32 to vector<1x32xf32>
      %c0_18 = arith.constant 0 : index
      %c0_19 = arith.constant 0 : index
      %23 = vector.load %arg9[%c0_18, %c0_19] : memref<1x32xf32, #tpu.memory_space<vmem>>, vector<1x32xf32>
      tpu.vector_store %arg9[%c0_18, %c0_19], %22 {strides = array<i32>} : memref<1x32xf32, #tpu.memory_space<vmem>>, vector<1x32xf32>,
    } else {
    }
    %c0 = arith.constant 0 : index
    %c0_1 = arith.constant 0 : index
    %c0_2 = arith.constant 0 : index
    %c0_3 = arith.constant 0 : index
    %3 = vector.load %arg2[%c0, %c0_1, %c0_2, %c0_3] : memref<1x8x16x32xf32, #tpu.memory_space<vmem>>, vector<1x8x16x32xf32>
    %4 = vector.shape_cast %3 : vector<1x8x16x32xf32> to vector<8x16x32xf32>
    %5 = vector.shape_cast %4 : vector<8x16x32xf32> to vector<128x32xf32>
    %c0_4 = arith.constant 0 : index
    %c0_5 = arith.constant 0 : index
    %6 = vector.load %arg8[%c0_4, %c0_5] : memref<1x32xf32, #tpu.memory_space<vmem>>, vector<1x32xf32>
    %cst = arith.constant dense<0.000000e+00> : vector<32xf32>
    %7 = vector.multi_reduction <add>, %5, %cst [0] : vector<128x32xf32> to vector<32xf32>
    %8 = vector.shape_cast %7 : vector<32xf32> to vector<1x32xf32>
    %9 = arith.addf %6, %8 : vector<1x32xf32>
    %c0_6 = arith.constant 0 : index
    %c0_7 = arith.constant 0 : index
    %10 = vector.load %arg8[%c0_6, %c0_7] : memref<1x32xf32, #tpu.memory_space<vmem>>, vector<1x32xf32>
    tpu.vector_store %arg8[%c0_6, %c0_7], %9 {strides = array<i32>} : memref<1x32xf32, #tpu.memory_space<vmem>>, vector<1x32xf32>,
    %c0_8 = arith.constant 0 : index
    %c0_9 = arith.constant 0 : index
    %11 = vector.load %arg9[%c0_8, %c0_9] : memref<1x32xf32, #tpu.memory_space<vmem>>, vector<1x32xf32>
    %12 = arith.mulf %5, %5 : vector<128x32xf32>
    %cst_10 = arith.constant dense<0.000000e+00> : vector<32xf32>
    %13 = vector.multi_reduction <add>, %12, %cst_10 [0] : vector<128x32xf32> to vector<32xf32>
    %14 = vector.shape_cast %13 : vector<32xf32> to vector<1x32xf32>
    %15 = arith.addf %11, %14 : vector<1x32xf32>
    %c0_11 = arith.constant 0 : index
    %c0_12 = arith.constant 0 : index
    %16 = vector.load %arg9[%c0_11, %c0_12] : memref<1x32xf32, #tpu.memory_space<vmem>>, vector<1x32xf32>
    tpu.vector_store %arg9[%c0_11, %c0_12], %15 {strides = array<i32>} : memref<1x32xf32, #tpu.memory_space<vmem>>, vector<1x32xf32>,
    %c1_i32 = arith.constant 1 : i32
    %17 = arith.cmpi eq, %arg1, %c1_i32 : i32
    %18 = arith.extui %17 : i1 to i32
    %c0_i32_13 = arith.constant 0 : i32
    %19 = arith.cmpi ne, %18, %c0_i32_13 : i32
    scf.if %19 {
      %c0_14 = arith.constant 0 : index
      %c0_15 = arith.constant 0 : index
      %20 = vector.load %arg8[%c0_14, %c0_15] : memref<1x32xf32, #tpu.memory_space<vmem>>, vector<1x32xf32>
      %c0_16 = arith.constant 0 : index
      %c0_17 = arith.constant 0 : index
      %21 = vector.load %arg3[%c0_16, %c0_17] : memref<32x32xf32, #tpu.memory_space<vmem>>, vector<32x32xf32>
      %cst_18 = arith.constant dense<0.000000e+00> : vector<1x32xf32>
      %22 = tpu.matmul %20, %21, %cst_18 {dimension_numbers = #tpu.dot_dimension_numbers<[1], [0], [0], [1], [0, 0, 1, 1], [], []>} : vector<1x32xf32>, vector<32x32xf32>, vector<1x32xf32> -> vector<1x32xf32>
      %c0_19 = arith.constant 0 : index
      %c0_20 = arith.constant 0 : index
      %23 = vector.load %arg9[%c0_19, %c0_20] : memref<1x32xf32, #tpu.memory_space<vmem>>, vector<1x32xf32>
      %c0_21 = arith.constant 0 : index
      %c0_22 = arith.constant 0 : index
      %24 = vector.load %arg3[%c0_21, %c0_22] : memref<32x32xf32, #tpu.memory_space<vmem>>, vector<32x32xf32>
      %cst_23 = arith.constant dense<0.000000e+00> : vector<1x32xf32>
      %25 = tpu.matmul %23, %24, %cst_23 {dimension_numbers = #tpu.dot_dimension_numbers<[1], [0], [0], [1], [0, 0, 1, 1], [], []>} : vector<1x32xf32>, vector<32x32xf32>, vector<1x32xf32> -> vector<1x32xf32>
      %26 = arith.mulf %22, %22 : vector<1x32xf32>
      %27 = arith.subf %25, %26 : vector<1x32xf32>
      %cst_24 = arith.constant 9.99999997E-7 : f32
      %28 = vector.broadcast %cst_24 : f32 to vector<1x32xf32>
      %29 = arith.addf %27, %28 : vector<1x32xf32>
      %30 = math.rsqrt %29 : vector<1x32xf32>
      %c0_25 = arith.constant 0 : index
      %c0_26 = arith.constant 0 : index
      %31 = vector.load %arg4[%c0_25, %c0_26] : memref<1x32xf32, #tpu.memory_space<vmem>>, vector<1x32xf32>
      %c0_27 = arith.constant 0 : index
      %c0_28 = arith.constant 0 : index
      %32 = vector.load %arg5[%c0_27, %c0_28] : memref<1x32xf32, #tpu.memory_space<vmem>>, vector<1x32xf32>
      %33 = arith.mulf %31, %30 : vector<1x32xf32>
      %c0_29 = arith.constant 0 : index
      %c0_30 = arith.constant 0 : index
      %c0_31 = arith.constant 0 : index
      %34 = vector.load %arg6[%c0_29, %c0_30, %c0_31] : memref<1x1x32xf32, #tpu.memory_space<vmem>>, vector<1x1x32xf32>
      %35 = vector.shape_cast %34 : vector<1x1x32xf32> to vector<1x32xf32>
      %36 = vector.shape_cast %33 : vector<1x32xf32> to vector<1x1x32xf32>
      tpu.vector_store %arg6[%c0_29, %c0_30, %c0_31], %36 {strides = array<i32>} : memref<1x1x32xf32, #tpu.memory_space<vmem>>, vector<1x1x32xf32>,
      %37 = arith.mulf %22, %33 : vector<1x32xf32>
      %38 = arith.subf %32, %37 : vector<1x32xf32>
      %c0_32 = arith.constant 0 : index
      %c0_33 = arith.constant 0 : index
      %c0_34 = arith.constant 0 : index
      %39 = vector.load %arg7[%c0_32, %c0_33, %c0_34] : memref<1x1x32xf32, #tpu.memory_space<vmem>>, vector<1x1x32xf32>
      %40 = vector.shape_cast %39 : vector<1x1x32xf32> to vector<1x32xf32>
      %41 = vector.shape_cast %38 : vector<1x32xf32> to vector<1x1x32xf32>
      tpu.vector_store %arg7[%c0_32, %c0_33, %c0_34], %41 {strides = array<i32>} : memref<1x1x32xf32, #tpu.memory_space<vmem>>, vector<1x1x32xf32>,
    } else {
    }
    return
  }
  func.func @transform_0(%arg0: i32, %arg1: i32) -> (i32, i32, i32, i32) {
    %c0_i32 = arith.constant 0 : i32
    %c0_i32_0 = arith.constant 0 : i32
    %c0_i32_1 = arith.constant 0 : i32
    return %arg0, %arg1, %c0_i32, %c0_i32_0 : i32, i32, i32, i32
  }
  func.func @transform_1(%arg0: i32, %arg1: i32) -> (i32, i32) {
    %c0_i32 = arith.constant 0 : i32
    %c0_i32_0 = arith.constant 0 : i32
    %c0_i32_1 = arith.constant 0 : i32
    return %c0_i32, %c0_i32_0 : i32, i32
  }
  func.func @transform_2(%arg0: i32, %arg1: i32) -> (i32, i32) {
    %c0_i32 = arith.constant 0 : i32
    %c0_i32_0 = arith.constant 0 : i32
    %c0_i32_1 = arith.constant 0 : i32
    return %c0_i32, %c0_i32_0 : i32, i32
  }
  func.func @transform_3(%arg0: i32, %arg1: i32) -> (i32, i32) {
    %c0_i32 = arith.constant 0 : i32
    %c0_i32_0 = arith.constant 0 : i32
    %c0_i32_1 = arith.constant 0 : i32
    return %c0_i32, %c0_i32_0 : i32, i32
  }
  func.func @transform_4(%arg0: i32, %arg1: i32) -> (i32, i32, i32) {
    %c0_i32 = arith.constant 0 : i32
    %c0_i32_0 = arith.constant 0 : i32
    %c0_i32_1 = arith.constant 0 : i32
    return %arg0, %c0_i32, %c0_i32_0 : i32, i32, i32
  }
  func.func @transform_5(%arg0: i32, %arg1: i32) -> (i32, i32, i32) {
    %c0_i32 = arith.constant 0 : i32
    %c0_i32_0 = arith.constant 0 : i32
    %c0_i32_1 = arith.constant 0 : i32
    return %arg0, %c0_i32, %c0_i32_0 : i32, i32, i32
  }
}

module attributes {stable_mosaic.version = 11 : i64} {
  func.func @kernel(%arg0: i32, %arg1: i32, %arg2: memref<1x8x16x32xf32, #tpu.memory_space<vmem>>, %arg3: memref<1x1x16x32xf32, #tpu.memory_space<vmem>>, %arg4: memref<1x1x16x32xf32, #tpu.memory_space<vmem>>, %arg5: memref<1x1x32xf32, #tpu.memory_space<vmem>>, %arg6: memref<1x1x32xf32, #tpu.memory_space<vmem>>, %arg7: memref<3x96x32xf32, #tpu.memory_space<vmem>>, %arg8: memref<1x1x32xf32, #tpu.memory_space<vmem>>, %arg9: memref<1x8x16x32xf32, #tpu.memory_space<vmem>>) attributes {dimension_semantics = [#tpu.dimension_semantics<parallel>, #tpu.dimension_semantics<parallel>], iteration_bounds = array<i64: 2, 2>, scalar_prefetch = 0 : i64, scratch_operands = 0 : i64, tpu.core_type = #tpu.core_type<tc>, window_params = [{transform_indices = @transform_0, window_bounds = array<i64: 1, 8, 16, 32>}, {transform_indices = @transform_1, window_bounds = array<i64: 1, 1, 16, 32>}, {transform_indices = @transform_2, window_bounds = array<i64: 1, 1, 16, 32>}, {transform_indices = @transform_3, window_bounds = array<i64: 1, 1, 32>}, {transform_indices = @transform_4, window_bounds = array<i64: 1, 1, 32>}, {pipeline_mode = #tpu.pipeline_mode<synchronous>, transform_indices = @transform_5, window_bounds = array<i64: 3, 96, 32>}, {transform_indices = @transform_6, window_bounds = array<i64: 1, 1, 32>}, {transform_indices = @transform_7, window_bounds = array<i64: 1, 8, 16, 32>}]} {
    %c0 = arith.constant 0 : index
    %c0_0 = arith.constant 0 : index
    %c0_1 = arith.constant 0 : index
    %0 = vector.load %arg5[%c0, %c0_0, %c0_1] : memref<1x1x32xf32, #tpu.memory_space<vmem>>, vector<1x1x32xf32>
    %1 = vector.shape_cast %0 : vector<1x1x32xf32> to vector<1x32xf32>
    %c0_2 = arith.constant 0 : index
    %c0_3 = arith.constant 0 : index
    %c0_4 = arith.constant 0 : index
    %2 = vector.load %arg6[%c0_2, %c0_3, %c0_4] : memref<1x1x32xf32, #tpu.memory_space<vmem>>, vector<1x1x32xf32>
    %3 = vector.shape_cast %2 : vector<1x1x32xf32> to vector<1x32xf32>
    %c0_i32 = arith.constant 0 : i32
    %4 = arith.cmpi sgt, %arg1, %c0_i32 : i32
    %5 = arith.extui %4 : i1 to i32
    %6 = arith.sitofp %5 : i32 to f32
    %c1_i32 = arith.constant 1 : i32
    %7 = arith.cmpi slt, %arg1, %c1_i32 : i32
    %8 = arith.extui %7 : i1 to i32
    %9 = arith.sitofp %8 : i32 to f32
    %c0_5 = arith.constant 0 : index
    %c0_6 = arith.constant 0 : index
    %c0_7 = arith.constant 0 : index
    %c0_8 = arith.constant 0 : index
    %10 = vector.load %arg2[%c0_5, %c0_6, %c0_7, %c0_8] : memref<1x8x16x32xf32, #tpu.memory_space<vmem>>, vector<1x8x16x32xf32>
    %11 = vector.shape_cast %10 : vector<1x8x16x32xf32> to vector<8x16x32xf32>
    %12 = vector.shape_cast %1 : vector<1x32xf32> to vector<1x1x32xf32>
    %13 = vector.broadcast %12 : vector<1x1x32xf32> to vector<8x16x32xf32>
    %14 = arith.mulf %11, %13 : vector<8x16x32xf32>
    %15 = vector.shape_cast %3 : vector<1x32xf32> to vector<1x1x32xf32>
    %16 = vector.broadcast %15 : vector<1x1x32xf32> to vector<8x16x32xf32>
    %17 = arith.addf %14, %16 : vector<8x16x32xf32>
    %cst = arith.constant 0.000000e+00 : f32
    %18 = vector.broadcast %cst : f32 to vector<8x16x32xf32>
    %19 = arith.subf %18, %17 : vector<8x16x32xf32>
    %20 = math.exp %19 : vector<8x16x32xf32>
    %cst_9 = arith.constant 1.000000e+00 : f32
    %21 = vector.broadcast %cst_9 : f32 to vector<8x16x32xf32>
    %22 = arith.addf %21, %20 : vector<8x16x32xf32>
    %cst_10 = arith.constant 1.000000e+00 : f32
    %23 = vector.broadcast %cst_10 : f32 to vector<8x16x32xf32>
    %24 = arith.divf %23, %22 : vector<8x16x32xf32>
    %25 = arith.mulf %17, %24 : vector<8x16x32xf32>
    %c0_11 = arith.constant 0 : index
    %c0_12 = arith.constant 0 : index
    %c0_13 = arith.constant 0 : index
    %c0_14 = arith.constant 0 : index
    %26 = vector.load %arg3[%c0_11, %c0_12, %c0_13, %c0_14] : memref<1x1x16x32xf32, #tpu.memory_space<vmem>>, vector<1x1x16x32xf32>
    %27 = vector.shape_cast %26 : vector<1x1x16x32xf32> to vector<1x16x32xf32>
    %28 = vector.shape_cast %1 : vector<1x32xf32> to vector<1x1x32xf32>
    %29 = vector.broadcast %28 : vector<1x1x32xf32> to vector<1x16x32xf32>
    %30 = arith.mulf %27, %29 : vector<1x16x32xf32>
    %31 = vector.shape_cast %3 : vector<1x32xf32> to vector<1x1x32xf32>
    %32 = vector.broadcast %31 : vector<1x1x32xf32> to vector<1x16x32xf32>
    %33 = arith.addf %30, %32 : vector<1x16x32xf32>
    %cst_15 = arith.constant 0.000000e+00 : f32
    %34 = vector.broadcast %cst_15 : f32 to vector<1x16x32xf32>
    %35 = arith.subf %34, %33 : vector<1x16x32xf32>
    %36 = math.exp %35 : vector<1x16x32xf32>
    %cst_16 = arith.constant 1.000000e+00 : f32
    %37 = vector.broadcast %cst_16 : f32 to vector<1x16x32xf32>
    %38 = arith.addf %37, %36 : vector<1x16x32xf32>
    %cst_17 = arith.constant 1.000000e+00 : f32
    %39 = vector.broadcast %cst_17 : f32 to vector<1x16x32xf32>
    %40 = arith.divf %39, %38 : vector<1x16x32xf32>
    %41 = arith.mulf %33, %40 : vector<1x16x32xf32>
    %42 = vector.broadcast %6 : f32 to vector<1x16x32xf32>
    %43 = arith.mulf %41, %42 : vector<1x16x32xf32>
    %c0_18 = arith.constant 0 : index
    %c0_19 = arith.constant 0 : index
    %c0_20 = arith.constant 0 : index
    %c0_21 = arith.constant 0 : index
    %44 = vector.load %arg4[%c0_18, %c0_19, %c0_20, %c0_21] : memref<1x1x16x32xf32, #tpu.memory_space<vmem>>, vector<1x1x16x32xf32>
    %45 = vector.shape_cast %44 : vector<1x1x16x32xf32> to vector<1x16x32xf32>
    %46 = vector.shape_cast %1 : vector<1x32xf32> to vector<1x1x32xf32>
    %47 = vector.broadcast %46 : vector<1x1x32xf32> to vector<1x16x32xf32>
    %48 = arith.mulf %45, %47 : vector<1x16x32xf32>
    %49 = vector.shape_cast %3 : vector<1x32xf32> to vector<1x1x32xf32>
    %50 = vector.broadcast %49 : vector<1x1x32xf32> to vector<1x16x32xf32>
    %51 = arith.addf %48, %50 : vector<1x16x32xf32>
    %cst_22 = arith.constant 0.000000e+00 : f32
    %52 = vector.broadcast %cst_22 : f32 to vector<1x16x32xf32>
    %53 = arith.subf %52, %51 : vector<1x16x32xf32>
    %54 = math.exp %53 : vector<1x16x32xf32>
    %cst_23 = arith.constant 1.000000e+00 : f32
    %55 = vector.broadcast %cst_23 : f32 to vector<1x16x32xf32>
    %56 = arith.addf %55, %54 : vector<1x16x32xf32>
    %cst_24 = arith.constant 1.000000e+00 : f32
    %57 = vector.broadcast %cst_24 : f32 to vector<1x16x32xf32>
    %58 = arith.divf %57, %56 : vector<1x16x32xf32>
    %59 = arith.mulf %51, %58 : vector<1x16x32xf32>
    %60 = vector.broadcast %9 : f32 to vector<1x16x32xf32>
    %61 = arith.mulf %59, %60 : vector<1x16x32xf32>
    %62 = tpu.concatenate %43, %25, %61 in 0 : vector<1x16x32xf32>, vector<8x16x32xf32>, vector<1x16x32xf32> -> vector<10x16x32xf32>
    %cst_25 = arith.constant 0.000000e+00 : f32
    %63 = vector.broadcast %cst_25 : f32 to vector<10x1x32xf32>
    %64 = tpu.concatenate %63, %62, %63 in 1 : vector<10x1x32xf32>, vector<10x16x32xf32>, vector<10x1x32xf32> -> vector<10x18x32xf32>
    %cst_26 = arith.constant 0.000000e+00 : f32
    %65 = vector.broadcast %cst_26 : f32 to vector<128x32xf32>
    %66 = vector.extract_strided_slice %64 {offsets = [0, 0, 0], sizes = [8, 16, 32], strides = [1, 1, 1]} : vector<10x18x32xf32> to vector<8x16x32xf32>
    %67 = vector.extract_strided_slice %64 {offsets = [0, 1, 0], sizes = [8, 16, 32], strides = [1, 1, 1]} : vector<10x18x32xf32> to vector<8x16x32xf32>
    %68 = vector.extract_strided_slice %64 {offsets = [0, 2, 0], sizes = [8, 16, 32], strides = [1, 1, 1]} : vector<10x18x32xf32> to vector<8x16x32xf32>
    %69 = tpu.concatenate %66, %67, %68 in 2 : vector<8x16x32xf32>, vector<8x16x32xf32>, vector<8x16x32xf32> -> vector<8x16x96xf32>
    %70 = vector.shape_cast %69 : vector<8x16x96xf32> to vector<128x96xf32>
    %c0_27 = arith.constant 0 : index
    %c0_28 = arith.constant 0 : index
    %c0_29 = arith.constant 0 : index
    %71 = vector.load %arg7[%c0_27, %c0_28, %c0_29] : memref<3x96x32xf32, #tpu.memory_space<vmem>>, vector<1x96x32xf32>
    %72 = vector.shape_cast %71 : vector<1x96x32xf32> to vector<96x32xf32>
    %cst_30 = arith.constant dense<0.000000e+00> : vector<128x32xf32>
    %73 = tpu.matmul %70, %72, %cst_30 {dimension_numbers = #tpu.dot_dimension_numbers<[1], [0], [0], [1], [0, 0, 1, 1], [], []>} : vector<128x96xf32>, vector<96x32xf32>, vector<128x32xf32> -> vector<128x32xf32>
    %74 = arith.addf %65, %73 : vector<128x32xf32>
    %75 = vector.extract_strided_slice %64 {offsets = [1, 0, 0], sizes = [8, 16, 32], strides = [1, 1, 1]} : vector<10x18x32xf32> to vector<8x16x32xf32>
    %76 = vector.extract_strided_slice %64 {offsets = [1, 1, 0], sizes = [8, 16, 32], strides = [1, 1, 1]} : vector<10x18x32xf32> to vector<8x16x32xf32>
    %77 = vector.extract_strided_slice %64 {offsets = [1, 2, 0], sizes = [8, 16, 32], strides = [1, 1, 1]} : vector<10x18x32xf32> to vector<8x16x32xf32>
    %78 = tpu.concatenate %75, %76, %77 in 2 : vector<8x16x32xf32>, vector<8x16x32xf32>, vector<8x16x32xf32> -> vector<8x16x96xf32>
    %79 = vector.shape_cast %78 : vector<8x16x96xf32> to vector<128x96xf32>
    %c1 = arith.constant 1 : index
    %c0_31 = arith.constant 0 : index
    %c0_32 = arith.constant 0 : index
    %80 = vector.load %arg7[%c1, %c0_31, %c0_32] : memref<3x96x32xf32, #tpu.memory_space<vmem>>, vector<1x96x32xf32>
    %81 = vector.shape_cast %80 : vector<1x96x32xf32> to vector<96x32xf32>
    %cst_33 = arith.constant dense<0.000000e+00> : vector<128x32xf32>
    %82 = tpu.matmul %79, %81, %cst_33 {dimension_numbers = #tpu.dot_dimension_numbers<[1], [0], [0], [1], [0, 0, 1, 1], [], []>} : vector<128x96xf32>, vector<96x32xf32>, vector<128x32xf32> -> vector<128x32xf32>
    %83 = arith.addf %74, %82 : vector<128x32xf32>
    %84 = vector.extract_strided_slice %64 {offsets = [2, 0, 0], sizes = [8, 16, 32], strides = [1, 1, 1]} : vector<10x18x32xf32> to vector<8x16x32xf32>
    %85 = vector.extract_strided_slice %64 {offsets = [2, 1, 0], sizes = [8, 16, 32], strides = [1, 1, 1]} : vector<10x18x32xf32> to vector<8x16x32xf32>
    %86 = vector.extract_strided_slice %64 {offsets = [2, 2, 0], sizes = [8, 16, 32], strides = [1, 1, 1]} : vector<10x18x32xf32> to vector<8x16x32xf32>
    %87 = tpu.concatenate %84, %85, %86 in 2 : vector<8x16x32xf32>, vector<8x16x32xf32>, vector<8x16x32xf32> -> vector<8x16x96xf32>
    %88 = vector.shape_cast %87 : vector<8x16x96xf32> to vector<128x96xf32>
    %c2 = arith.constant 2 : index
    %c0_34 = arith.constant 0 : index
    %c0_35 = arith.constant 0 : index
    %89 = vector.load %arg7[%c2, %c0_34, %c0_35] : memref<3x96x32xf32, #tpu.memory_space<vmem>>, vector<1x96x32xf32>
    %90 = vector.shape_cast %89 : vector<1x96x32xf32> to vector<96x32xf32>
    %cst_36 = arith.constant dense<0.000000e+00> : vector<128x32xf32>
    %91 = tpu.matmul %88, %90, %cst_36 {dimension_numbers = #tpu.dot_dimension_numbers<[1], [0], [0], [1], [0, 0, 1, 1], [], []>} : vector<128x96xf32>, vector<96x32xf32>, vector<128x32xf32> -> vector<128x32xf32>
    %92 = arith.addf %83, %91 : vector<128x32xf32>
    %c0_37 = arith.constant 0 : index
    %c0_38 = arith.constant 0 : index
    %c0_39 = arith.constant 0 : index
    %93 = vector.load %arg8[%c0_37, %c0_38, %c0_39] : memref<1x1x32xf32, #tpu.memory_space<vmem>>, vector<1x1x32xf32>
    %94 = vector.shape_cast %93 : vector<1x1x32xf32> to vector<1x32xf32>
    %95 = vector.broadcast %94 : vector<1x32xf32> to vector<128x32xf32>
    %96 = arith.addf %92, %95 : vector<128x32xf32>
    %97 = vector.shape_cast %96 : vector<128x32xf32> to vector<8x16x32xf32>
    %c0_40 = arith.constant 0 : index
    %c0_41 = arith.constant 0 : index
    %c0_42 = arith.constant 0 : index
    %c0_43 = arith.constant 0 : index
    %98 = vector.load %arg9[%c0_40, %c0_41, %c0_42, %c0_43] : memref<1x8x16x32xf32, #tpu.memory_space<vmem>>, vector<1x8x16x32xf32>
    %99 = vector.shape_cast %98 : vector<1x8x16x32xf32> to vector<8x16x32xf32>
    %100 = vector.shape_cast %97 : vector<8x16x32xf32> to vector<1x8x16x32xf32>
    tpu.vector_store %arg9[%c0_40, %c0_41, %c0_42, %c0_43], %100 {strides = array<i32>} : memref<1x8x16x32xf32, #tpu.memory_space<vmem>>, vector<1x8x16x32xf32>,
    return
  }
  func.func @transform_0(%arg0: i32, %arg1: i32) -> (i32, i32, i32, i32) {
    %c0_i32 = arith.constant 0 : i32
    %c0_i32_0 = arith.constant 0 : i32
    %c0_i32_1 = arith.constant 0 : i32
    return %arg0, %arg1, %c0_i32, %c0_i32_0 : i32, i32, i32, i32
  }
  func.func @transform_1(%arg0: i32, %arg1: i32) -> (i32, i32, i32, i32) {
    %c8_i32 = arith.constant 8 : i32
    %0 = arith.muli %arg1, %c8_i32 : i32
    %c1_i32 = arith.constant 1 : i32
    %1 = arith.subi %0, %c1_i32 : i32
    %c0_i32 = arith.constant 0 : i32
    %2 = arith.maxsi %1, %c0_i32 : i32
    %c0_i32_0 = arith.constant 0 : i32
    %c0_i32_1 = arith.constant 0 : i32
    %c0_i32_2 = arith.constant 0 : i32
    return %arg0, %2, %c0_i32_0, %c0_i32_1 : i32, i32, i32, i32
  }
  func.func @transform_2(%arg0: i32, %arg1: i32) -> (i32, i32, i32, i32) {
    %c8_i32 = arith.constant 8 : i32
    %0 = arith.muli %arg1, %c8_i32 : i32
    %c8_i32_0 = arith.constant 8 : i32
    %1 = arith.addi %0, %c8_i32_0 : i32
    %c15_i32 = arith.constant 15 : i32
    %2 = arith.minsi %1, %c15_i32 : i32
    %c0_i32 = arith.constant 0 : i32
    %c0_i32_1 = arith.constant 0 : i32
    %c0_i32_2 = arith.constant 0 : i32
    return %arg0, %2, %c0_i32, %c0_i32_1 : i32, i32, i32, i32
  }
  func.func @transform_3(%arg0: i32, %arg1: i32) -> (i32, i32, i32) {
    %c0_i32 = arith.constant 0 : i32
    %c0_i32_0 = arith.constant 0 : i32
    %c0_i32_1 = arith.constant 0 : i32
    return %arg0, %c0_i32, %c0_i32_0 : i32, i32, i32
  }
  func.func @transform_4(%arg0: i32, %arg1: i32) -> (i32, i32, i32) {
    %c0_i32 = arith.constant 0 : i32
    %c0_i32_0 = arith.constant 0 : i32
    %c0_i32_1 = arith.constant 0 : i32
    return %arg0, %c0_i32, %c0_i32_0 : i32, i32, i32
  }
  func.func @transform_5(%arg0: i32, %arg1: i32) -> (i32, i32, i32) {
    %c0_i32 = arith.constant 0 : i32
    %c0_i32_0 = arith.constant 0 : i32
    %c0_i32_1 = arith.constant 0 : i32
    %c0_i32_2 = arith.constant 0 : i32
    return %c0_i32, %c0_i32_0, %c0_i32_1 : i32, i32, i32
  }
  func.func @transform_6(%arg0: i32, %arg1: i32) -> (i32, i32, i32) {
    %c0_i32 = arith.constant 0 : i32
    %c0_i32_0 = arith.constant 0 : i32
    %c0_i32_1 = arith.constant 0 : i32
    return %arg0, %c0_i32, %c0_i32_0 : i32, i32, i32
  }
  func.func @transform_7(%arg0: i32, %arg1: i32) -> (i32, i32, i32, i32) {
    %c0_i32 = arith.constant 0 : i32
    %c0_i32_0 = arith.constant 0 : i32
    %c0_i32_1 = arith.constant 0 : i32
    return %arg0, %arg1, %c0_i32, %c0_i32_0 : i32, i32, i32, i32
  }
}

module attributes {stable_mosaic.version = 11 : i64} {
  func.func @kernel(%arg0: i32, %arg1: i32, %arg2: memref<1x8x16x32xf32, #tpu.memory_space<vmem>>, %arg3: memref<1x1x16x32xf32, #tpu.memory_space<vmem>>, %arg4: memref<1x1x16x32xf32, #tpu.memory_space<vmem>>, %arg5: memref<1x1x32xf32, #tpu.memory_space<vmem>>, %arg6: memref<1x1x32xf32, #tpu.memory_space<vmem>>, %arg7: memref<3x96x32xf32, #tpu.memory_space<vmem>>, %arg8: memref<1x1x32xf32, #tpu.memory_space<vmem>>, %arg9: memref<1x8x16x32xf32, #tpu.memory_space<vmem>>, %arg10: memref<1x8x16x32xf32, #tpu.memory_space<vmem>>) attributes {dimension_semantics = [#tpu.dimension_semantics<parallel>, #tpu.dimension_semantics<parallel>], iteration_bounds = array<i64: 2, 2>, scalar_prefetch = 0 : i64, scratch_operands = 0 : i64, tpu.core_type = #tpu.core_type<tc>, window_params = [{transform_indices = @transform_0, window_bounds = array<i64: 1, 8, 16, 32>}, {transform_indices = @transform_1, window_bounds = array<i64: 1, 1, 16, 32>}, {transform_indices = @transform_2, window_bounds = array<i64: 1, 1, 16, 32>}, {transform_indices = @transform_3, window_bounds = array<i64: 1, 1, 32>}, {transform_indices = @transform_4, window_bounds = array<i64: 1, 1, 32>}, {pipeline_mode = #tpu.pipeline_mode<synchronous>, transform_indices = @transform_5, window_bounds = array<i64: 3, 96, 32>}, {transform_indices = @transform_6, window_bounds = array<i64: 1, 1, 32>}, {transform_indices = @transform_7, window_bounds = array<i64: 1, 8, 16, 32>}, {transform_indices = @transform_8, window_bounds = array<i64: 1, 8, 16, 32>}]} {
    %c0 = arith.constant 0 : index
    %c0_0 = arith.constant 0 : index
    %c0_1 = arith.constant 0 : index
    %0 = vector.load %arg5[%c0, %c0_0, %c0_1] : memref<1x1x32xf32, #tpu.memory_space<vmem>>, vector<1x1x32xf32>
    %1 = vector.shape_cast %0 : vector<1x1x32xf32> to vector<1x32xf32>
    %c0_2 = arith.constant 0 : index
    %c0_3 = arith.constant 0 : index
    %c0_4 = arith.constant 0 : index
    %2 = vector.load %arg6[%c0_2, %c0_3, %c0_4] : memref<1x1x32xf32, #tpu.memory_space<vmem>>, vector<1x1x32xf32>
    %3 = vector.shape_cast %2 : vector<1x1x32xf32> to vector<1x32xf32>
    %c0_i32 = arith.constant 0 : i32
    %4 = arith.cmpi sgt, %arg1, %c0_i32 : i32
    %5 = arith.extui %4 : i1 to i32
    %6 = arith.sitofp %5 : i32 to f32
    %c1_i32 = arith.constant 1 : i32
    %7 = arith.cmpi slt, %arg1, %c1_i32 : i32
    %8 = arith.extui %7 : i1 to i32
    %9 = arith.sitofp %8 : i32 to f32
    %c0_5 = arith.constant 0 : index
    %c0_6 = arith.constant 0 : index
    %c0_7 = arith.constant 0 : index
    %c0_8 = arith.constant 0 : index
    %10 = vector.load %arg2[%c0_5, %c0_6, %c0_7, %c0_8] : memref<1x8x16x32xf32, #tpu.memory_space<vmem>>, vector<1x8x16x32xf32>
    %11 = vector.shape_cast %10 : vector<1x8x16x32xf32> to vector<8x16x32xf32>
    %12 = vector.shape_cast %1 : vector<1x32xf32> to vector<1x1x32xf32>
    %13 = vector.broadcast %12 : vector<1x1x32xf32> to vector<8x16x32xf32>
    %14 = arith.mulf %11, %13 : vector<8x16x32xf32>
    %15 = vector.shape_cast %3 : vector<1x32xf32> to vector<1x1x32xf32>
    %16 = vector.broadcast %15 : vector<1x1x32xf32> to vector<8x16x32xf32>
    %17 = arith.addf %14, %16 : vector<8x16x32xf32>
    %cst = arith.constant 0.000000e+00 : f32
    %18 = vector.broadcast %cst : f32 to vector<8x16x32xf32>
    %19 = arith.subf %18, %17 : vector<8x16x32xf32>
    %20 = math.exp %19 : vector<8x16x32xf32>
    %cst_9 = arith.constant 1.000000e+00 : f32
    %21 = vector.broadcast %cst_9 : f32 to vector<8x16x32xf32>
    %22 = arith.addf %21, %20 : vector<8x16x32xf32>
    %cst_10 = arith.constant 1.000000e+00 : f32
    %23 = vector.broadcast %cst_10 : f32 to vector<8x16x32xf32>
    %24 = arith.divf %23, %22 : vector<8x16x32xf32>
    %25 = arith.mulf %17, %24 : vector<8x16x32xf32>
    %c0_11 = arith.constant 0 : index
    %c0_12 = arith.constant 0 : index
    %c0_13 = arith.constant 0 : index
    %c0_14 = arith.constant 0 : index
    %26 = vector.load %arg3[%c0_11, %c0_12, %c0_13, %c0_14] : memref<1x1x16x32xf32, #tpu.memory_space<vmem>>, vector<1x1x16x32xf32>
    %27 = vector.shape_cast %26 : vector<1x1x16x32xf32> to vector<1x16x32xf32>
    %28 = vector.shape_cast %1 : vector<1x32xf32> to vector<1x1x32xf32>
    %29 = vector.broadcast %28 : vector<1x1x32xf32> to vector<1x16x32xf32>
    %30 = arith.mulf %27, %29 : vector<1x16x32xf32>
    %31 = vector.shape_cast %3 : vector<1x32xf32> to vector<1x1x32xf32>
    %32 = vector.broadcast %31 : vector<1x1x32xf32> to vector<1x16x32xf32>
    %33 = arith.addf %30, %32 : vector<1x16x32xf32>
    %cst_15 = arith.constant 0.000000e+00 : f32
    %34 = vector.broadcast %cst_15 : f32 to vector<1x16x32xf32>
    %35 = arith.subf %34, %33 : vector<1x16x32xf32>
    %36 = math.exp %35 : vector<1x16x32xf32>
    %cst_16 = arith.constant 1.000000e+00 : f32
    %37 = vector.broadcast %cst_16 : f32 to vector<1x16x32xf32>
    %38 = arith.addf %37, %36 : vector<1x16x32xf32>
    %cst_17 = arith.constant 1.000000e+00 : f32
    %39 = vector.broadcast %cst_17 : f32 to vector<1x16x32xf32>
    %40 = arith.divf %39, %38 : vector<1x16x32xf32>
    %41 = arith.mulf %33, %40 : vector<1x16x32xf32>
    %42 = vector.broadcast %6 : f32 to vector<1x16x32xf32>
    %43 = arith.mulf %41, %42 : vector<1x16x32xf32>
    %c0_18 = arith.constant 0 : index
    %c0_19 = arith.constant 0 : index
    %c0_20 = arith.constant 0 : index
    %c0_21 = arith.constant 0 : index
    %44 = vector.load %arg4[%c0_18, %c0_19, %c0_20, %c0_21] : memref<1x1x16x32xf32, #tpu.memory_space<vmem>>, vector<1x1x16x32xf32>
    %45 = vector.shape_cast %44 : vector<1x1x16x32xf32> to vector<1x16x32xf32>
    %46 = vector.shape_cast %1 : vector<1x32xf32> to vector<1x1x32xf32>
    %47 = vector.broadcast %46 : vector<1x1x32xf32> to vector<1x16x32xf32>
    %48 = arith.mulf %45, %47 : vector<1x16x32xf32>
    %49 = vector.shape_cast %3 : vector<1x32xf32> to vector<1x1x32xf32>
    %50 = vector.broadcast %49 : vector<1x1x32xf32> to vector<1x16x32xf32>
    %51 = arith.addf %48, %50 : vector<1x16x32xf32>
    %cst_22 = arith.constant 0.000000e+00 : f32
    %52 = vector.broadcast %cst_22 : f32 to vector<1x16x32xf32>
    %53 = arith.subf %52, %51 : vector<1x16x32xf32>
    %54 = math.exp %53 : vector<1x16x32xf32>
    %cst_23 = arith.constant 1.000000e+00 : f32
    %55 = vector.broadcast %cst_23 : f32 to vector<1x16x32xf32>
    %56 = arith.addf %55, %54 : vector<1x16x32xf32>
    %cst_24 = arith.constant 1.000000e+00 : f32
    %57 = vector.broadcast %cst_24 : f32 to vector<1x16x32xf32>
    %58 = arith.divf %57, %56 : vector<1x16x32xf32>
    %59 = arith.mulf %51, %58 : vector<1x16x32xf32>
    %60 = vector.broadcast %9 : f32 to vector<1x16x32xf32>
    %61 = arith.mulf %59, %60 : vector<1x16x32xf32>
    %62 = tpu.concatenate %43, %25, %61 in 0 : vector<1x16x32xf32>, vector<8x16x32xf32>, vector<1x16x32xf32> -> vector<10x16x32xf32>
    %cst_25 = arith.constant 0.000000e+00 : f32
    %63 = vector.broadcast %cst_25 : f32 to vector<10x1x32xf32>
    %64 = tpu.concatenate %63, %62, %63 in 1 : vector<10x1x32xf32>, vector<10x16x32xf32>, vector<10x1x32xf32> -> vector<10x18x32xf32>
    %cst_26 = arith.constant 0.000000e+00 : f32
    %65 = vector.broadcast %cst_26 : f32 to vector<128x32xf32>
    %66 = vector.extract_strided_slice %64 {offsets = [0, 0, 0], sizes = [8, 16, 32], strides = [1, 1, 1]} : vector<10x18x32xf32> to vector<8x16x32xf32>
    %67 = vector.extract_strided_slice %64 {offsets = [0, 1, 0], sizes = [8, 16, 32], strides = [1, 1, 1]} : vector<10x18x32xf32> to vector<8x16x32xf32>
    %68 = vector.extract_strided_slice %64 {offsets = [0, 2, 0], sizes = [8, 16, 32], strides = [1, 1, 1]} : vector<10x18x32xf32> to vector<8x16x32xf32>
    %69 = tpu.concatenate %66, %67, %68 in 2 : vector<8x16x32xf32>, vector<8x16x32xf32>, vector<8x16x32xf32> -> vector<8x16x96xf32>
    %70 = vector.shape_cast %69 : vector<8x16x96xf32> to vector<128x96xf32>
    %c0_27 = arith.constant 0 : index
    %c0_28 = arith.constant 0 : index
    %c0_29 = arith.constant 0 : index
    %71 = vector.load %arg7[%c0_27, %c0_28, %c0_29] : memref<3x96x32xf32, #tpu.memory_space<vmem>>, vector<1x96x32xf32>
    %72 = vector.shape_cast %71 : vector<1x96x32xf32> to vector<96x32xf32>
    %cst_30 = arith.constant dense<0.000000e+00> : vector<128x32xf32>
    %73 = tpu.matmul %70, %72, %cst_30 {dimension_numbers = #tpu.dot_dimension_numbers<[1], [0], [0], [1], [0, 0, 1, 1], [], []>} : vector<128x96xf32>, vector<96x32xf32>, vector<128x32xf32> -> vector<128x32xf32>
    %74 = arith.addf %65, %73 : vector<128x32xf32>
    %75 = vector.extract_strided_slice %64 {offsets = [1, 0, 0], sizes = [8, 16, 32], strides = [1, 1, 1]} : vector<10x18x32xf32> to vector<8x16x32xf32>
    %76 = vector.extract_strided_slice %64 {offsets = [1, 1, 0], sizes = [8, 16, 32], strides = [1, 1, 1]} : vector<10x18x32xf32> to vector<8x16x32xf32>
    %77 = vector.extract_strided_slice %64 {offsets = [1, 2, 0], sizes = [8, 16, 32], strides = [1, 1, 1]} : vector<10x18x32xf32> to vector<8x16x32xf32>
    %78 = tpu.concatenate %75, %76, %77 in 2 : vector<8x16x32xf32>, vector<8x16x32xf32>, vector<8x16x32xf32> -> vector<8x16x96xf32>
    %79 = vector.shape_cast %78 : vector<8x16x96xf32> to vector<128x96xf32>
    %c1 = arith.constant 1 : index
    %c0_31 = arith.constant 0 : index
    %c0_32 = arith.constant 0 : index
    %80 = vector.load %arg7[%c1, %c0_31, %c0_32] : memref<3x96x32xf32, #tpu.memory_space<vmem>>, vector<1x96x32xf32>
    %81 = vector.shape_cast %80 : vector<1x96x32xf32> to vector<96x32xf32>
    %cst_33 = arith.constant dense<0.000000e+00> : vector<128x32xf32>
    %82 = tpu.matmul %79, %81, %cst_33 {dimension_numbers = #tpu.dot_dimension_numbers<[1], [0], [0], [1], [0, 0, 1, 1], [], []>} : vector<128x96xf32>, vector<96x32xf32>, vector<128x32xf32> -> vector<128x32xf32>
    %83 = arith.addf %74, %82 : vector<128x32xf32>
    %84 = vector.extract_strided_slice %64 {offsets = [2, 0, 0], sizes = [8, 16, 32], strides = [1, 1, 1]} : vector<10x18x32xf32> to vector<8x16x32xf32>
    %85 = vector.extract_strided_slice %64 {offsets = [2, 1, 0], sizes = [8, 16, 32], strides = [1, 1, 1]} : vector<10x18x32xf32> to vector<8x16x32xf32>
    %86 = vector.extract_strided_slice %64 {offsets = [2, 2, 0], sizes = [8, 16, 32], strides = [1, 1, 1]} : vector<10x18x32xf32> to vector<8x16x32xf32>
    %87 = tpu.concatenate %84, %85, %86 in 2 : vector<8x16x32xf32>, vector<8x16x32xf32>, vector<8x16x32xf32> -> vector<8x16x96xf32>
    %88 = vector.shape_cast %87 : vector<8x16x96xf32> to vector<128x96xf32>
    %c2 = arith.constant 2 : index
    %c0_34 = arith.constant 0 : index
    %c0_35 = arith.constant 0 : index
    %89 = vector.load %arg7[%c2, %c0_34, %c0_35] : memref<3x96x32xf32, #tpu.memory_space<vmem>>, vector<1x96x32xf32>
    %90 = vector.shape_cast %89 : vector<1x96x32xf32> to vector<96x32xf32>
    %cst_36 = arith.constant dense<0.000000e+00> : vector<128x32xf32>
    %91 = tpu.matmul %88, %90, %cst_36 {dimension_numbers = #tpu.dot_dimension_numbers<[1], [0], [0], [1], [0, 0, 1, 1], [], []>} : vector<128x96xf32>, vector<96x32xf32>, vector<128x32xf32> -> vector<128x32xf32>
    %92 = arith.addf %83, %91 : vector<128x32xf32>
    %c0_37 = arith.constant 0 : index
    %c0_38 = arith.constant 0 : index
    %c0_39 = arith.constant 0 : index
    %93 = vector.load %arg8[%c0_37, %c0_38, %c0_39] : memref<1x1x32xf32, #tpu.memory_space<vmem>>, vector<1x1x32xf32>
    %94 = vector.shape_cast %93 : vector<1x1x32xf32> to vector<1x32xf32>
    %95 = vector.broadcast %94 : vector<1x32xf32> to vector<128x32xf32>
    %96 = arith.addf %92, %95 : vector<128x32xf32>
    %c0_40 = arith.constant 0 : index
    %c0_41 = arith.constant 0 : index
    %c0_42 = arith.constant 0 : index
    %c0_43 = arith.constant 0 : index
    %97 = vector.load %arg9[%c0_40, %c0_41, %c0_42, %c0_43] : memref<1x8x16x32xf32, #tpu.memory_space<vmem>>, vector<1x8x16x32xf32>
    %98 = vector.shape_cast %97 : vector<1x8x16x32xf32> to vector<8x16x32xf32>
    %99 = vector.shape_cast %98 : vector<8x16x32xf32> to vector<128x32xf32>
    %100 = arith.addf %96, %99 : vector<128x32xf32>
    %101 = vector.shape_cast %100 : vector<128x32xf32> to vector<8x16x32xf32>
    %c0_44 = arith.constant 0 : index
    %c0_45 = arith.constant 0 : index
    %c0_46 = arith.constant 0 : index
    %c0_47 = arith.constant 0 : index
    %102 = vector.load %arg10[%c0_44, %c0_45, %c0_46, %c0_47] : memref<1x8x16x32xf32, #tpu.memory_space<vmem>>, vector<1x8x16x32xf32>
    %103 = vector.shape_cast %102 : vector<1x8x16x32xf32> to vector<8x16x32xf32>
    %104 = vector.shape_cast %101 : vector<8x16x32xf32> to vector<1x8x16x32xf32>
    tpu.vector_store %arg10[%c0_44, %c0_45, %c0_46, %c0_47], %104 {strides = array<i32>} : memref<1x8x16x32xf32, #tpu.memory_space<vmem>>, vector<1x8x16x32xf32>,
    return
  }
  func.func @transform_0(%arg0: i32, %arg1: i32) -> (i32, i32, i32, i32) {
    %c0_i32 = arith.constant 0 : i32
    %c0_i32_0 = arith.constant 0 : i32
    %c0_i32_1 = arith.constant 0 : i32
    return %arg0, %arg1, %c0_i32, %c0_i32_0 : i32, i32, i32, i32
  }
  func.func @transform_1(%arg0: i32, %arg1: i32) -> (i32, i32, i32, i32) {
    %c8_i32 = arith.constant 8 : i32
    %0 = arith.muli %arg1, %c8_i32 : i32
    %c1_i32 = arith.constant 1 : i32
    %1 = arith.subi %0, %c1_i32 : i32
    %c0_i32 = arith.constant 0 : i32
    %2 = arith.maxsi %1, %c0_i32 : i32
    %c0_i32_0 = arith.constant 0 : i32
    %c0_i32_1 = arith.constant 0 : i32
    %c0_i32_2 = arith.constant 0 : i32
    return %arg0, %2, %c0_i32_0, %c0_i32_1 : i32, i32, i32, i32
  }
  func.func @transform_2(%arg0: i32, %arg1: i32) -> (i32, i32, i32, i32) {
    %c8_i32 = arith.constant 8 : i32
    %0 = arith.muli %arg1, %c8_i32 : i32
    %c8_i32_0 = arith.constant 8 : i32
    %1 = arith.addi %0, %c8_i32_0 : i32
    %c15_i32 = arith.constant 15 : i32
    %2 = arith.minsi %1, %c15_i32 : i32
    %c0_i32 = arith.constant 0 : i32
    %c0_i32_1 = arith.constant 0 : i32
    %c0_i32_2 = arith.constant 0 : i32
    return %arg0, %2, %c0_i32, %c0_i32_1 : i32, i32, i32, i32
  }
  func.func @transform_3(%arg0: i32, %arg1: i32) -> (i32, i32, i32) {
    %c0_i32 = arith.constant 0 : i32
    %c0_i32_0 = arith.constant 0 : i32
    %c0_i32_1 = arith.constant 0 : i32
    return %arg0, %c0_i32, %c0_i32_0 : i32, i32, i32
  }
  func.func @transform_4(%arg0: i32, %arg1: i32) -> (i32, i32, i32) {
    %c0_i32 = arith.constant 0 : i32
    %c0_i32_0 = arith.constant 0 : i32
    %c0_i32_1 = arith.constant 0 : i32
    return %arg0, %c0_i32, %c0_i32_0 : i32, i32, i32
  }
  func.func @transform_5(%arg0: i32, %arg1: i32) -> (i32, i32, i32) {
    %c0_i32 = arith.constant 0 : i32
    %c0_i32_0 = arith.constant 0 : i32
    %c0_i32_1 = arith.constant 0 : i32
    %c0_i32_2 = arith.constant 0 : i32
    return %c0_i32, %c0_i32_0, %c0_i32_1 : i32, i32, i32
  }
  func.func @transform_6(%arg0: i32, %arg1: i32) -> (i32, i32, i32) {
    %c0_i32 = arith.constant 0 : i32
    %c0_i32_0 = arith.constant 0 : i32
    %c0_i32_1 = arith.constant 0 : i32
    return %arg0, %c0_i32, %c0_i32_0 : i32, i32, i32
  }
  func.func @transform_7(%arg0: i32, %arg1: i32) -> (i32, i32, i32, i32) {
    %c0_i32 = arith.constant 0 : i32
    %c0_i32_0 = arith.constant 0 : i32
    %c0_i32_1 = arith.constant 0 : i32
    return %arg0, %arg1, %c0_i32, %c0_i32_0 : i32, i32, i32, i32
  }
  func.func @transform_8(%arg0: i32, %arg1: i32) -> (i32, i32, i32, i32) {
    %c0_i32 = arith.constant 0 : i32
    %c0_i32_0 = arith.constant 0 : i32
    %c0_i32_1 = arith.constant 0 : i32
    return %arg0, %arg1, %c0_i32, %c0_i32_0 : i32, i32, i32, i32
  }
}

</mosaic_0001>

<bundles_post_ra>
// kernel: resnet_block_forward.4
= control target key start
LH: loop header
LB: loop body
LE: loop exit
PB: predicated region body
PF: predicated region fallthrough
CT: control target
= control target key end

     0   :  { %s1726_s0 = inlined_call_operand.hbm [shape: f32[2,16,16,32], index: 0, kind: input, shape index: {}]   ;;  %s1727_s1 = inlined_call_operand.hbm [shape: f32[32,32], index: 1, kind: input, shape index: {}]   ;;  %s1728_s2 = inlined_call_operand.hbm [shape: f32[1,32], index: 2, kind: input, shape index: {}]   ;;  %s1729_s3 = inlined_call_operand.hbm [shape: f32[1,32], index: 3, kind: input, shape index: {}]   ;;  %s1730_s4 = inlined_call_operand.hbm [shape: f32[2,1,32], index: 4, kind: output, shape index: {0}]   ;;  %s1731_s5 = inlined_call_operand.hbm [shape: f32[2,1,32], index: 5, kind: output, shape index: {1}]  }
   0x1   :  { %1746 = sst [smem:[#allocation24_spill]] %s1727_s1 }
   0x2   :  { %1747 = sst [smem:[#allocation25_spill]] %s1728_s2 }
   0x3   :  { %1748 = sst [smem:[#allocation26_spill]] %s1729_s3 }
   0x4   :  { %1749 = sst [smem:[#allocation27_spill]] %s1730_s4 }
   0x5   :  { %1750 = sst [smem:[#allocation28_spill]] %s1731_s5 }
   0x6   :  { %11 = vsyncpa [#allocation5], 0 }
   0x7   :  { %13 = vsyncpa [#allocation5 + $0x1], 0 }
   0x8   :  { %14 = vsyncpa [#allocation8], 0 }
   0x9   :  { %15 = vsyncpa [#allocation11], 0 }
   0xa   :  { %16 = vsyncpa [#allocation6], 0 }
   0xb   :  { %18 = vsyncpa [#allocation6 + $0x1], 0 }
   0xc   :  { %19 = vsyncpa [#allocation14], 0 }
   0xd   :  { %21 = vsyncpa [#allocation14 + $0x1], 0  ;;  %s1301_s18 = smov 0   ;;  %s1303_s19 = smov 0  }
   0xe   :  { %s1305_s20 = smov 0   ;;  %s1307_s21 = smov 0  }
   0xf   :  { %s1309_s22 = smov 0   ;;  %s1311_s23 = smov 0  }
  0x10   :  { %s1313_s24 = smov 0   ;;  %s1315_s25 = smov 0  }
  0x11   :  { %s1317_s26 = smov 0   ;;  %s1319_s27 = smov 0  }
  0x12   :  { %s1321_s28 = smov 0  }
  0x13 LB: > { %1751 = sst [smem:[#allocation20_spill]] %s1217_s18  ;;  %s765_s29 = sadd.s32 4294967295, %s1257_s28   ;;  %s1257_s28 = sphi %s1321_s28, %s27_s28   ;;  %s1253_s27 = sphi %s1319_s27, %s1791_s27   ;;  %s1249_s26 = sphi %s1317_s26, %s1790_s26   ;;  %s1245_s25 = sphi %s1315_s25, %s1789_s25   ;;  %s1241_s24 = sphi %s1313_s24, %s1788_s24   ;;  %s1237_s23 = sphi %s1311_s23, %s1787_s23   ;;  %s1233_s22 = sphi %s1309_s22, %s1786_s22   ;;  %s1229_s21 = sphi %s1307_s21, %s1785_s21   ;;  %s1225_s20 = sphi %s1305_s20, %s1784_s20   ;;  %s1221_s19 = sphi %s1303_s19, %s1783_s19   ;;  %s1217_s18 = sphi %s1301_s18, %s1782_s18  }
  0x14   : > { %1752 = sst [smem:[#allocation21_spill]] %s1245_s25  ;;  %s766_s30 = sadd.s32 4294967294, %s1257_s28  }
  0x15   : > { %p61_p0 = scmp.ne.s32.totalorder %s1233_s22, %s1229_s21  ;;  %p1357_p1 = scmp.eq.s32.totalorder %s765_s29, 0 }
  0x16   : > { %p147_p2 = scmp.ne.s32.totalorder %s1225_s20, %s1221_s19  ;;  %p148_p4 = scmp.eq.s32.totalorder %s765_s29, 3 }
  0x17   : > { %s1753_s6 = scalar_select %p1357_p1, 1, 0 }
  0x18   : > { %p1366_p3 = por %p1357_p1, %p61_p0  ;;  %p153_p5 = scmp.ne.s32.totalorder %s1221_s19, %s1217_s18 }
  0x19   : > { %p154_p6 = scmp.eq.s32.totalorder %s766_s30, 3  ;;  %p1372_p7 = por %p148_p4, %p147_p2 }
  0x1a   : > { %s1754_s8 = scalar_select %p1366_p3, 1, 0 }
  0x1b   : > { %s1755_s9 = scalar_select %p1372_p7, 1, 0 }
  0x1c   : > { %p767_p8 = scmp.ge.s32.totalorder %s1257_s28, 1  ;;  %p1377_p9 = por %p154_p6, %p153_p5 }
  0x1d   : > { %1756 = sst [smem:[#allocation22_spill]] %s1755_s9  ;;  %p187_p10 = scmp.lt.s32.totalorder %s1257_s28, 5 }
  0x1e   : > { %s1757_s10 = scalar_select %p1377_p9, 1, 0 }
  0x1f   : > { %p1382_p11 = pnand %p767_p8, %p187_p10  ;;  %s1259_s12 = smov [#allocation7]  }
  0x20   : > { %1758 = sst [smem:[#allocation23_spill]] %s1757_s10  ;;  %s199_s13 = sshll.u32 %s1259_s12, 4  ;;  %s1386_s13 = int_to_ptr.vmem [resolvable:$true] %s199_s13 }
  0x21   : > { %s1759_s11 = scalar_select %p1382_p11, 1, 0 }
  0x22   : > { %p853_p12 = pneg %p1382_p11  ;;  %s1260_s15 = smov [#allocation9]  }
  0x23   : > { %s213_s16 = sshll.u32 %s1260_s15, 4  ;;  %s1261_s17 = smov [#allocation10]   ;;  %s1396_s16 = int_to_ptr.vmem [resolvable:$true] %s213_s16 }
  0x24   : > { %p1392_p13 = pnand %p853_p12, %p1357_p1  ;;  %s1398_s21 = sshll.u32 %s1261_s17, 4  ;;  %s225_s21 = int_to_ptr.vmem [resolvable:$true] %s1398_s21 }
  0x25   : > { %s1761_s1 = sld [smem:[#allocation24_spill]] }
  0x26   : > { %p1408_p2 = pneg %p1392_p13 }
  0x2b   : > { %s981_s12 = scalar_lea.hbm %s1761_s1, 512 }
  0x2c   : > { %p982_p0 = scmp.ne.s32.totalorder %s1761_s1, %s981_s12  ;;  %p988_p6 = scmp.lt.u32.totalorder %s981_s12, %s1761_s1 }
  0x2e   : > { %p984_p4 = pnand %p1408_p2, %p982_p0 }
  0x30   : > { %p985_p5 = pneg %p984_p4 }
  0x32   : > { %p990_p8 = pnand %p988_p6, %p985_p5 }
  0x34   : > { %993 = shalt.err (!%p990_p8)
}
  0x35   : > { %s994_s7 = scalar_lea.vmem %s1386_s13, 512  ;;  %p1002_p7 = scmp.lt.s32.totalorder %s1386_s13, %s1386_s13 }
  0x36   : > { %p995_p10 = scmp.ne.s32.totalorder %s1386_s13, %s994_s7  ;;  %p1003_p1 = scmp.lt.s32.totalorder %s994_s7, %s994_s7 }
  0x38   : > { %p997_p12 = pnand %p995_p10, %p1408_p2  ;;  %p1004_p0 = por %p1003_p1, %p1002_p7 }
  0x3a   : > { %p998_p9 = pneg %p997_p12 }
  0x3c   : > { %p1005_p4 = pnand %p1004_p0, %p998_p9 }
  0x3e   : > { %1008 = shalt.err (!%p1005_p4)
}
  0x3f   : > { %s1744_s10 = smov 128   ;;  %s1745_s29 = smov 8  }
  0x40   : > { %856 = dma.hbm_to_vmem [thread:$0]  (!%p1392_p13), %s1761_s1, 512, %s1386_s13, [#allocation8], %s1744_s10, %s1744_s10, %s1745_s29  }
  0x41   : > { %s1763_s2 = sld [smem:[#allocation25_spill]] }
  0x47   : > { %s1009_s7 = scalar_lea.hbm %s1763_s2, 16 }
  0x48   : > { %p1010_p1 = scmp.ne.s32.totalorder %s1763_s2, %s1009_s7  ;;  %p1016_p5 = scmp.lt.u32.totalorder %s1009_s7, %s1763_s2 }
  0x4a   : > { %p1012_p7 = pnand %p1010_p1, %p1408_p2 }
  0x4c   : > { %p1013_p9 = pneg %p1012_p7 }
  0x4e   : > { %p1018_p6 = pnand %p1016_p5, %p1013_p9 }
  0x50   : > { %1021 = shalt.err (!%p1018_p6)
}
  0x51   : > { %s1022_s13 = scalar_lea.vmem %s1396_s16, 16  ;;  %s1029_s4 = scalar_lea.vmem %s1396_s16, 32 }
  0x52   : > { %p1023_p8 = scmp.ne.s32.totalorder %s1396_s16, %s1022_s13  ;;  %p1030_p0 = scmp.lt.s32.totalorder %s1396_s16, %s1396_s16 }
  0x53   : > { %p1031_p4 = scmp.lt.s32.totalorder %s1029_s4, %s1022_s13 }
  0x54   : > { %p1025_p10 = pnand %p1023_p8, %p1408_p2 }
  0x55   : > { %p1032_p1 = por %p1031_p4, %p1030_p0 }
  0x56   : > { %p1026_p12 = pneg %p1025_p10 }
  0x58   : > { %p1033_p7 = pnand %p1032_p1, %p1026_p12 }
  0x5a   : > { %1036 = shalt.err (!%p1033_p7)
}
  0x5b   : > { %859 = dma.hbm_to_vmem [thread:$0]  (!%p1392_p13), %s1763_s2, 16, %s1396_s16, [#allocation8]  }
  0x5c   : > { %s1764_s3 = sld [smem:[#allocation26_spill]] }
  0x62   : > { %s1037_s12 = scalar_lea.hbm %s1764_s3, 16 }
  0x63   : > { %p1038_p9 = scmp.ne.s32.totalorder %s1764_s3, %s1037_s12  ;;  %p1044_p8 = scmp.lt.u32.totalorder %s1037_s12, %s1764_s3 }
  0x65   : > { %p1040_p5 = pnand %p1038_p9, %p1408_p2 }
  0x67   : > { %p1041_p6 = pneg %p1040_p5 }
  0x69   : > { %p1046_p10 = pnand %p1044_p8, %p1041_p6 }
  0x6b   : > { %1049 = shalt.err (!%p1046_p10)
}
  0x6c   : > { %s1050_s4 = scalar_lea.vmem %s225_s21, 16  ;;  %s1057_s16 = scalar_lea.vmem %s225_s21, 32 }
  0x6d   : > { %p1051_p12 = scmp.ne.s32.totalorder %s225_s21, %s1050_s4  ;;  %p1058_p1 = scmp.lt.s32.totalorder %s225_s21, %s225_s21 }
  0x6e   : > { %p1059_p7 = scmp.lt.s32.totalorder %s1057_s16, %s1050_s4 }
  0x6f   : > { %p1053_p0 = pnand %p1051_p12, %p1408_p2 }
  0x70   : > { %p1060_p3 = por %p1059_p7, %p1058_p1 }
  0x71   : > { %p1054_p4 = pneg %p1053_p0 }
  0x73   : > { %p1061_p11 = pnand %p1060_p3, %p1054_p4 }
  0x75   : > { %1064 = shalt.err (!%p1061_p11)
}
  0x76   : > { %862 = dma.hbm_to_vmem [thread:$0]  (!%p1392_p13), %s1764_s3, 16, %s225_s21, [#allocation11]  }
  0x77   : > { %s36_s18 = sadd.s32 1, %s1249_s26  ;;  %s39_s9 = sadd.s32 1, %s1253_s27 }
  0x78   : > { %p37_p3 = scmp.ge.s32.totalorder %s36_s18, 2  ;;  %s48_s30 = sadd.s32 1, %s1237_s23 }
  0x79   : > { %p55_p11 = scmp.ne.s32.totalorder %s1237_s23, %s1233_s22  ;;  %p56_p2 = scmp.eq.s32.totalorder %s1257_s28, 0 }
  0x7a   : > { %s1793_s18 = smov (%p37_p3, %s36_s18), 0  ;;  %s1795_s9 = smov (!%p37_p3, %s39_s9), %s1253_s27 }
  0x7b   : > { %s44_s14 = ssub.s32 %s1249_s26, %s1793_s18  ;;  %p41_p9 = scmp.ge.s32.totalorder %s1795_s9, 2 }
  0x7c   : > { %p877_p5 = scmp.lt.s32.totalorder %s1257_s28, 4  ;;  %p1487_p13 = por %p56_p2, %p55_p11 }
  0x7d   : > { %s235_s12 = sand.u32 1, %s1237_s23   ;;  %s1797_s9 = smov (%p41_p9, %s1795_s9), 0 }
  0x7e   : > { %s772_s15 = sshll.u32 %s235_s12, 7  ;;  %s43_s17 = ssub.s32 %s1253_s27, %s1797_s9 }
  0x7f   : > { %s45_s7 = sor.u32 %s44_s14, %s43_s17  ;;  %p135_p6 = scmp.eq.s32.totalorder %s43_s17, 0 }
  0x80   : > { %p46_p8 = scmp.eq.s32.totalorder %s45_s7, 0  ;;  %s790_s13 = sshll.u32 %s1249_s26, 4 }
  0x81   : > { %s1766_s4 = sadd.s32 1, %s1225_s20  ;;  %s775_s25 = sshll.u32 %s1253_s27, 5 }
  0x82   : > { %s1500_s16 = scalar_select %p135_p6, %s1225_s20, %s1766_s4  }
  0x83   : > { %s1503_s5 = scalar_select %p46_p8, %s1237_s23, %s48_s30  }
  0x84   : > { %s239_s10 = scalar_lea.vmem [#allocation4], %s772_s15  ;;  %s246_s1 = sadd.s32 %s790_s13, %s775_s25 }
  0x85   : > { %s249_s29 = sshll.u32 %s239_s10, 4  ;;  %s776_s2 = sshll.u32 %s246_s1, 7  ;;  %s1506_s29 = int_to_ptr.vmem [resolvable:$true] %s249_s29 }
  0x86   : > { %p1512_p10 = pnand %p877_p5, %p1487_p13  ;;  %s1519_s30 = scalar_lea.hbm %s1726_s0, %s776_s2 }
  0x87   : > { %s1521_s10 = scalar_lea.sflag [#allocation5], %s235_s12  ;;  %s1065_s1 = scalar_lea.hbm %s1519_s30, 2048 }
  0x88   : > { %p1066_p12 = scmp.ne.s32.totalorder %s1519_s30, %s1065_s1  ;;  %p1067_p0 = pneg %p1512_p10 }
  0x89   : > { %s1070_s7 = scalar_lea.hbm %s1726_s0, 8192  ;;  %p1071_p7 = scmp.lt.u32.totalorder %s1519_s30, %s1726_s0 }
  0x8a   : > { %p1068_p4 = pnand %p1067_p0, %p1066_p12  ;;  %p1072_p3 = scmp.lt.u32.totalorder %s1070_s7, %s1065_s1 }
  0x8b   : > { %p1074_p2 = scmp.lt.u32.totalorder %s1065_s1, %s1519_s30 }
  0x8c   : > { %p1069_p1 = pneg %p1068_p4  ;;  %p1073_p11 = por %p1072_p3, %p1071_p7 }
  0x8e   : > { %p1075_p9 = por %p1074_p2, %p1073_p11 }
  0x90   : > { %p1076_p5 = pnand %p1075_p9, %p1069_p1 }
  0x92   : > { %1079 = shalt.err (!%p1076_p5)
}
  0x93   : > { %s1080_s12 = scalar_lea.vmem %s1506_s29, 2048  ;;  %s1264_s4 = smov [#allocation4]  }
  0x94   : > { %p1081_p13 = scmp.ne.s32.totalorder %s1506_s29, %s1080_s12  ;;  %s1085_s25 = sshll.u32 %s1264_s4, 4  ;;  %s1086_s25 = int_to_ptr.vmem [resolvable:$false] %s1085_s25 }
  0x95   : > { %s1087_s14 = scalar_lea.vmem %s1086_s25, 4096  ;;  %p1088_p12 = scmp.lt.s32.totalorder %s1506_s29, %s1086_s25 }
  0x96   : > { %p1083_p6 = pnand %p1081_p13, %p1067_p0  ;;  %p1089_p4 = scmp.lt.s32.totalorder %s1087_s14, %s1080_s12 }
  0x98   : > { %p1084_p8 = pneg %p1083_p6  ;;  %p1090_p7 = por %p1089_p4, %p1088_p12 }
  0x9a   : > { %p1091_p3 = pnand %p1090_p7, %p1084_p8 }
  0x9c   : > { %1094 = shalt.err (!%p1091_p3)
}
  0x9d   : > { %s1768_s17 = smov 8   ;;  %s1769_s1 = smov 128  }
  0x9e   : > { %866 = dma.hbm_to_vmem [thread:$0]  (!%p1512_p10), %s1519_s30, 2048, %s1506_s29, %s1521_s10, %s1769_s1, %s1769_s1, %s1768_s17  }
  0x9f   : > { %p1770_p0 = scmp.ne.s32.totalorder %s1759_s11, 0 }
  0xa0   : > { %s263_s21 = sand.u32 (!%p1770_p0), 1, %s1233_s22   ;;  %p1771_p1 = scmp.ne.s32.totalorder (!%p1770_p0), %s1754_s8, 0 }
  0xa1   : > { %261 = sbr.rel (%p1770_p0) target bundleno = 525 (0x20d), region = 36  ;;  %s778_s15 = sshll.u32 (!%p1770_p0), %s263_s21, 7 }
  0xa2   : > { %s264_s7 = scalar_lea.sflag (!%p1770_p0), [#allocation5], %s263_s21  ;;  %s1555_s2 = scalar_lea.vmem (!%p1770_p0), [#allocation4], %s778_s15 }
  0xa8   : > { %1196 = dma.done.wait (%p1771_p1), %s264_s7, 2048  }
  0xa9   : > { %1198 = vsyncadd (%p1771_p1), %s264_s7, 4294965248  ;;  %p1772_p11 = scmp.ne.s32.totalorder %s1753_s6, 0 }
  0xab   : > { %1200 = dma.done.wait (%p1772_p11), [#allocation8], 528  }
  0xac   : > { %1202 = vsyncadd (%p1772_p11), [#allocation8], 4294966768 }
  0xad   : > { %1204 = dma.done.wait (%p1772_p11), [#allocation11], 16  }
  0xae   : > { %1206 = vsyncadd (%p1772_p11), [#allocation11], 4294967280  ;;  %s1570_s3 = sand.u32 1, %s1221_s19   ;;  %p782_p10 = scmp.ne.s32.totalorder %s1241_s24, 0 }
  0xaf   : > { %s302_s11 = scalar_lea.vmem [#allocation12], %s1570_s3  ;;  %s308_s8 = scalar_lea.vmem [#allocation13], %s1570_s3  ;;  %vm314_vm0 = vcmask (!%p782_p10), 253952   ;;  %v1265_v0 = vmov (!%p782_p10), 0.0  }
  0xb0   : > { %313 = sbr.rel (%p782_p10) target bundleno = 183 (0xb7), region = 56  ;;  %315 = vst.msk [vmem:[#allocation2] sm:$0x1] (!%p782_p10), %vm314_vm0, %v1265_v0  ;;  %316 = vst.msk [vmem:[#allocation3] sm:$0x1] (!%p782_p10), %vm314_vm0, %v1265_v0 }
  0xb7 PF: > { %v317_v1 = vld [vmem:[%s1555_s2] sm:$0xff]  ;;  %v318_v2 = vld [vmem:[%s1555_s2 + $0x8] sm:$0xff]  ;;  %v319_v3 = vld [vmem:[%s1555_s2 + $0x10] sm:$0xff]  ;;  %vm334_vm1 = vcmask 261120   ;;  %vm373_vm2 = vcmask 253952   ;;  %p783_p2 = scmp.ne.s32.totalorder %s1241_s24, 1 }
  0xb8   : > { %v335_v4 = vsel %vm334_vm1, %v317_v1, 0.0  ;;  %v336_v5 = vsel %vm334_vm1, %v318_v2, 0.0  ;;  %v338_v6 = vsel %vm334_vm1, %v319_v3, 0.0  ;;  %v320_v7 = vld [vmem:[%s1555_s2 + $0x18] sm:$0xff]  ;;  %v321_v10 = vld [vmem:[%s1555_s2 + $0x20] sm:$0xff]  ;;  %v322_v13 = vld [vmem:[%s1555_s2 + $0x28] sm:$0xff]  ;;  %v376_v15 = vmul.f32 %v317_v1, %v317_v1 }
  0xb9   : > { %v337_v8 = vadd.f32 %v336_v5, %v335_v4  ;;  %v340_v9 = vsel %vm334_vm1, %v320_v7, 0.0  ;;  %v342_v12 = vsel %vm334_vm1, %v321_v10, 0.0  ;;  %v377_v16 = vmul.f32 %v318_v2, %v318_v2  ;;  %v323_v19 = vld [vmem:[%s1555_s2 + $0x30] sm:$0xff]  ;;  %v324_v24 = vld [vmem:[%s1555_s2 + $0x38] sm:$0xff]  ;;  %v325_v31 = vld [vmem:[%s1555_s2 + $0x40] sm:$0xff] }
  0xba   : > { %v378_v17 = vmul.f32 %v319_v3, %v319_v3  ;;  %v344_v18 = vsel %vm334_vm1, %v322_v13, 0.0  ;;  %v379_v21 = vmul.f32 %v320_v7, %v320_v7  ;;  %v346_v22 = vsel %vm334_vm1, %v323_v19, 0.0  ;;  %v326_v37 = vld [vmem:[%s1555_s2 + $0x48] sm:$0xff]  ;;  %v327_v43 = vld [vmem:[%s1555_s2 + $0x50] sm:$0xff]  ;;  %v328_v49 = vld [vmem:[%s1555_s2 + $0x58] sm:$0xff] }
  0xbb   : > { %v339_v11 = vadd.f32 %v338_v6, %v337_v8  ;;  %v380_v23 = vmul.f32 %v321_v10, %v321_v10  ;;  %v392_v26 = vsel %vm334_vm1, %v376_v15, 0.0  ;;  %v393_v27 = vsel %vm334_vm1, %v377_v16, 0.0  ;;  %v329_v55 = vld [vmem:[%s1555_s2 + $0x60] sm:$0xff]  ;;  %v330_v61 = vld [vmem:[%s1555_s2 + $0x68] sm:$0xff]  ;;  %v331_v3 = vld [vmem:[%s1555_s2 + $0x70] sm:$0xff] }
  0xbc   : > { %v395_v28 = vsel %vm334_vm1, %v378_v17, 0.0  ;;  %v348_v29 = vsel %vm334_vm1, %v324_v24, 0.0  ;;  %v394_v30 = vadd.f32 %v393_v27, %v392_v26  ;;  %v381_v33 = vmul.f32 %v322_v13, %v322_v13 }
  0xbd   : > { %v341_v14 = vadd.f32 %v340_v9, %v339_v11  ;;  %v397_v34 = vsel %vm334_vm1, %v379_v21, 0.0  ;;  %v350_v35 = vsel %vm334_vm1, %v325_v31, 0.0  ;;  %v382_v39 = vmul.f32 %v323_v19, %v323_v19  ;;  %v332_v9 = vld [vmem:[%s1555_s2 + $0x78] sm:$0xff] }
  0xbe   : > { %v396_v36 = vadd.f32 %v395_v28, %v394_v30  ;;  %v399_v40 = vsel %vm334_vm1, %v380_v23, 0.0  ;;  %v352_v41 = vsel %vm334_vm1, %v326_v37, 0.0  ;;  %v383_v45 = vmul.f32 %v324_v24, %v324_v24 }
  0xbf   : > { %v343_v20 = vadd.f32 %v342_v12, %v341_v14  ;;  %v401_v46 = vsel %vm334_vm1, %v381_v33, 0.0  ;;  %v354_v47 = vsel %vm334_vm1, %v327_v43, 0.0  ;;  %v384_v51 = vmul.f32 %v325_v31, %v325_v31 }
  0xc0   : > { %v398_v42 = vadd.f32 %v397_v34, %v396_v36  ;;  %v403_v52 = vsel %vm334_vm1, %v382_v39, 0.0  ;;  %v356_v53 = vsel %vm334_vm1, %v328_v49, 0.0  ;;  %v385_v57 = vmul.f32 %v326_v37, %v326_v37  ;;  %v333_v36 = vld [vmem:[#allocation2] sm:$0x1] }
  0xc1   : > { %v345_v25 = vadd.f32 %v344_v18, %v343_v20  ;;  %v405_v58 = vsel %vm334_vm1, %v383_v45, 0.0  ;;  %v358_v59 = vsel %vm334_vm1, %v329_v55, 0.0  ;;  %v386_v63 = vmul.f32 %v327_v43, %v327_v43 }
  0xc2   : > { %v400_v48 = vadd.f32 %v399_v40, %v398_v42  ;;  %v407_v0 = vsel %vm334_vm1, %v384_v51, 0.0  ;;  %v360_v1 = vsel %vm334_vm1, %v330_v61, 0.0  ;;  %v387_v5 = vmul.f32 %v328_v49, %v328_v49  ;;  %v438_v49 = vld [vmem:[#allocation7 + $0x10] sm:$0xff] (!%p783_p2) }
  0xc3   : > { %v347_v32 = vadd.f32 %v346_v22, %v345_v25  ;;  %v409_v6 = vsel %vm334_vm1, %v385_v57, 0.0  ;;  %v362_v7 = vsel %vm334_vm1, %v331_v3, 0.0  ;;  %v388_v11 = vmul.f32 %v329_v55, %v329_v55 }
  0xc4   : > { %v402_v54 = vadd.f32 %v401_v46, %v400_v48  ;;  %v411_v12 = vsel %vm334_vm1, %v386_v63, 0.0  ;;  %v364_v13 = vsel %vm334_vm1, %v332_v9, 0.0  ;;  %v389_v16 = vmul.f32 %v330_v61, %v330_v61  ;;  %v437_v48 = vld [vmem:[#allocation7 + $0x8] sm:$0xff] (!%p783_p2) }
  0xc5   : > { %v349_v38 = vadd.f32 %v348_v29, %v347_v32  ;;  %v413_v17 = vsel %vm334_vm1, %v387_v5, 0.0  ;;  %v390_v20 = vmul.f32 %v331_v3, %v331_v3  ;;  %v415_v21 = vsel %vm334_vm1, %v388_v11, 0.0  ;;  %v592_v3 = vld [vmem:[#allocation10] sm:$0x1] (!%p783_p2) }
  0xc6   : > { %v404_v60 = vadd.f32 %v403_v52, %v402_v54  ;;  %v391_v24 = vmul.f32 %v332_v9, %v332_v9  ;;  %v417_v25 = vsel %vm334_vm1, %v389_v16, 0.0  ;;  %v439_v52 = vld [vmem:[#allocation7 + $0x18] sm:$0xff] (!%p783_p2)  ;;  %vm1267_vm3 = vmmov (!%p783_p2), 0  }
  0xc7   : > { %v351_v44 = vadd.f32 %v350_v35, %v349_v38  ;;  %v419_v28 = vsel %vm334_vm1, %v390_v20, 0.0  ;;  %v827_v54 = vpack.c.bf16 (!%p783_p2), %v439_v52, %v438_v49 }
  0xc8   : > { %v406_v2 = vadd.f32 %v405_v58, %v404_v60  ;;  %v421_v31 = vsel %vm334_vm1, %v391_v24, 0.0 }
  0xc9   : > { %v353_v50 = vadd.f32 %v352_v41, %v351_v44  ;;  %v375_v44 = vld [vmem:[#allocation3] sm:$0x1] }
  0xca   : > { %v408_v8 = vadd.f32 %v407_v0, %v406_v2  ;;  %v591_v0 = vld [vmem:[#allocation9] sm:$0x1] (!%p783_p2) }
  0xcb   : > { %v355_v56 = vadd.f32 %v354_v47, %v353_v50  ;;  %v436_v47 = vld [vmem:[#allocation7] sm:$0xff] (!%p783_p2)  ;;  %v1266_v50 = vmov (!%p783_p2), 0.0|0.0  }
  0xcc   : > { %v410_v14 = vadd.f32 %v409_v6, %v408_v8  ;;  %823 = vmatprep.subr.bf16.mxu0 (!%p783_p2), %v1266_v50  ;;  %v824_v51 = vpack.c.bf16 (!%p783_p2), %v437_v48, %v436_v47  ;;  %829 = vmatprep.subr.bf16.mxu1 (!%p783_p2), %v1266_v50 }
  0xcd   : > { %v357_v62 = vadd.f32 %v356_v53, %v355_v56  ;;  %v1268_v53 = vmov (!%p783_p2), 0.0  }
  0xce   : > { %v412_v18 = vadd.f32 %v411_v12, %v410_v14  ;;  %809 = vmatprep.mubr.msk.f32.mxu0 (!%p783_p2), %vm1267_vm3, %v1268_v53  ;;  %820 = vmatprep.mubr.msk.f32.mxu1 (!%p783_p2), %vm1267_vm3, %v1268_v53 }
  0xcf   : > { %v359_v4 = vadd.f32 %v358_v59, %v357_v62  ;;  %825 = vmatpush3.bf16.msra.mxu0 (!%p783_p2), %v824_v51  ;;  %831 = vmatpush3.bf16.msra.mxu1 (!%p783_p2), %v824_v51 }
  0xd0   : > { %v414_v22 = vadd.f32 %v413_v17, %v412_v18  ;;  %826 = vmatprep.subr.bf16.mxu0 (!%p783_p2), %v1266_v50  ;;  %832 = vmatprep.subr.bf16.mxu1 (!%p783_p2), %v1266_v50 }
  0xd1   : > { %v361_v10 = vadd.f32 %v360_v1, %v359_v4 }
  0xd2   : > { %v416_v26 = vadd.f32 %v415_v21, %v414_v22 }
  0xd3   : > { %v363_v15 = vadd.f32 %v362_v7, %v361_v10  ;;  %828 = vmatpush3.bf16.msra.mxu0 (!%p783_p2), %v827_v54  ;;  %834 = vmatpush3.bf16.msra.mxu1 (!%p783_p2), %v827_v54 }
  0xd4   : > { %v418_v29 = vadd.f32 %v417_v25, %v416_v26 }
  0xd5   : > { %v365_v19 = vadd.f32 %v364_v13, %v363_v15 }
  0xd6   : > { %v420_v32 = vadd.f32 %v419_v28, %v418_v29 }
  0xd7   : > { %v366_v23 = vrot.slane %v365_v19, 4 }
  0xd8   : > { %v422_v34 = vadd.f32 %v421_v31, %v420_v32 }
  0xd9   : > { %v367_v27 = vadd.f32 %v366_v23, %v365_v19 }
  0xda   : > { %v423_v37 = vrot.slane %v422_v34, 4 }
  0xdb   : > { %v368_v30 = vrot.slane %v367_v27, 2 }
  0xdc   : > { %v424_v39 = vadd.f32 %v423_v37, %v422_v34 }
  0xdd   : > { %v369_v33 = vadd.f32 %v368_v30, %v367_v27 }
  0xde   : > { %v425_v41 = vrot.slane %v424_v39, 2 }
  0xdf   : > { %v370_v35 = vrot.slane %v369_v33, 1 }
  0xe0   : > { %v426_v42 = vadd.f32 %v425_v41, %v424_v39 }
  0xe1   : > { %v371_v38 = vadd.f32 %v370_v35, %v369_v33 }
  0xe2   : > { %v427_v43 = vrot.slane %v426_v42, 1  ;;  %434 = sbr.rel (%p783_p2) target bundleno = 474 (0x1da), region = 60 }
  0xe3   : > { %v372_v40 = vadd.f32 %v371_v38, %v333_v36 }
  0xe4   : > { %v428_v45 = vadd.f32 %v427_v43, %v426_v42 }
  0xe5   : > { %374 = vst.msk [vmem:[#allocation2] sm:$0x1] %vm373_vm2, %v372_v40 }
  0xe6   : > { %v429_v46 = vadd.f32 %v428_v45, %v375_v44 }
  0xe8   : > { %430 = vst.msk [vmem:[#allocation3] sm:$0x1] %vm373_vm2, %v429_v46 }
  0xec   : > { %v435_v55 = vld [vmem:[#allocation2] sm:$0x1] }
  0xed   : > { %810 = vmatmul.mubr.msk.f32.vlgmr.msra.gmra.mrb[0].mxu0 %vm334_vm1, %v435_v55 }
  0xef   : > { %v513_v56 = vld [vmem:[#allocation3] sm:$0x1] }
  0xf0   : > { %821 = vmatmul.mubr.msk.f32.vlgmr.msra.gmra.mrb[0].mxu1 %vm334_vm1, %v513_v56 }
 0x1c0   : > { %v509_v57 = vpop.f32.mrb[0].mxu0 }
 0x1c1   : > { %v587_v59 = vmul.f32 %v509_v57, %v509_v57  ;;  %v811_v60 = vpop.f32.mrb[1].mxu0 }
 0x1c3   : > { %v583_v58 = vpop.f32.mrb[0].mxu1 }
 0x1c4   : > { %v822_v61 = vpop.f32.mrb[1].mxu1  ;;  %v588_v62 = vsub.f32 %v583_v58, %v587_v59 }
 0x1c6   : > { %v589_v63 = vadd.f32 1e-06, %v588_v62 }
 0x1c8   : > { %979 = vrsqrt.f32 %v589_v63 }
 0x1d2   : > { %v980_v1 = vpop.eup %979 }
 0x1d3   : > { %v593_v2 = vmul.f32 %v980_v1, %v591_v0 }
 0x1d5   : > { %594 = vst.msk [vmem:[%s302_s11] sm:$0x1] %vm373_vm2, %v593_v2  ;;  %v595_v4 = vmul.f32 %v593_v2, %v509_v57 }
 0x1d7   : > { %v596_v5 = vsub.f32 %v592_v3, %v595_v4 }
 0x1d9   : > { %597 = vst.msk [vmem:[%s308_s8] sm:$0x1] %vm373_vm2, %v596_v5 }
 0x1da PF: > { %s1773_s24 = sld [smem:[#allocation21_spill]]  ;;  %s1774_s6 = sld [smem:[#allocation22_spill]] }
 0x1db   : > { %s1775_s13 = sld [smem:[#allocation27_spill]]  ;;  %s615_s4 = sshll.u32 %s302_s11, 4  ;;  %s616_s4 = int_to_ptr.vmem [resolvable:$true] %s615_s4 }
 0x1dc   : > { %s599_s25 = scalar_lea.sflag [#allocation6], %s1570_s3  ;;  %s1095_s14 = scalar_lea.vmem %s616_s4, 16 }
 0x1dd   : > { %p1096_p9 = scmp.ne.s32.totalorder %s616_s4, %s1095_s14  ;;  %s1269_s17 = smov [#allocation12]  }
 0x1de   : > { %s1099_s1 = sshll.u32 %s1269_s17, 4  ;;  %s1100_s1 = int_to_ptr.vmem [resolvable:$false] %s1099_s1 }
 0x1df   : > { %s1101_s21 = scalar_lea.vmem %s1100_s1, 32  ;;  %p1102_p8 = scmp.lt.s32.totalorder %s616_s4, %s1100_s1 }
 0x1e0   : > { %s786_s29 = sshll.u32 %s1773_s24, 4  ;;  %p1776_p5 = scmp.ne.s32.totalorder %s1774_s6, 0 }
 0x1e1   : > { %s1640_s12 = scalar_lea.hbm %s1775_s13, %s786_s29  ;;  %p1103_p12 = scmp.lt.s32.totalorder %s1101_s21, %s1095_s14 }
 0x1e2   : > { %p1097_p13 = pnand %p1096_p9, %p1776_p5 }
 0x1e3   : > { %p1104_p4 = por %p1103_p12, %p1102_p8 }
 0x1e4   : > { %p1098_p6 = pneg %p1097_p13 }
 0x1e6   : > { %p1105_p7 = pnand %p1104_p4, %p1098_p6 }
 0x1e8   : > { %1108 = shalt.err (!%p1105_p7)
}
 0x1e9   : > { %s1109_s15 = scalar_lea.hbm %s1640_s12, 16  ;;  %s1113_s11 = scalar_lea.hbm %s1775_s13, 32 }
 0x1ea   : > { %p1110_p3 = scmp.ne.s32.totalorder %s1640_s12, %s1109_s15  ;;  %p1114_p11 = scmp.lt.u32.totalorder %s1640_s12, %s1775_s13 }
 0x1eb   : > { %p1115_p10 = scmp.lt.u32.totalorder %s1113_s11, %s1109_s15  ;;  %p1117_p9 = scmp.lt.u32.totalorder %s1109_s15, %s1640_s12 }
 0x1ec   : > { %p1111_p0 = pnand %p1110_p3, %p1776_p5 }
 0x1ed   : > { %p1116_p2 = por %p1115_p10, %p1114_p11 }
 0x1ee   : > { %p1112_p1 = pneg %p1111_p0 }
 0x1ef   : > { %p1118_p13 = por %p1117_p9, %p1116_p2 }
 0x1f1   : > { %p1119_p6 = pnand %p1118_p13, %p1112_p1 }
 0x1f3   : > { %1122 = shalt.err (!%p1119_p6)
}
 0x1f4   : > { %849 = dma.vmem_to_hbm [thread:$0]  (%p1776_p5), %s616_s4, 16, %s1640_s12, %s599_s25  }
 0x1f5   : > { %s1777_s1 = sld [smem:[#allocation28_spill]]  ;;  %s628_s7 = sshll.u32 %s308_s8, 4  ;;  %s629_s7 = int_to_ptr.vmem [resolvable:$true] %s628_s7 }
 0x1f6   : > { %s603_s15 = scalar_lea.sflag [#allocation14], %s1570_s3  ;;  %s1123_s2 = scalar_lea.vmem %s629_s7, 16 }
 0x1f7   : > { %p1124_p8 = scmp.ne.s32.totalorder %s629_s7, %s1123_s2  ;;  %s1270_s11 = smov [#allocation13]  }
 0x1f8   : > { %s1127_s30 = sshll.u32 %s1270_s11, 4  ;;  %s1128_s30 = int_to_ptr.vmem [resolvable:$false] %s1127_s30 }
 0x1f9   : > { %p1125_p12 = pnand %p1124_p8, %p1776_p5  ;;  %s1129_s10 = scalar_lea.vmem %s1128_s30, 32 }
 0x1fa   : > { %p1130_p7 = scmp.lt.s32.totalorder %s629_s7, %s1128_s30  ;;  %p1131_p3 = scmp.lt.s32.totalorder %s1129_s10, %s1123_s2 }
 0x1fb   : > { %s1667_s21 = scalar_lea.hbm %s1777_s1, %s786_s29  ;;  %p1126_p4 = pneg %p1125_p12 }
 0x1fc   : > { %p1132_p0 = por %p1131_p3, %p1130_p7 }
 0x1fe   : > { %p1133_p1 = pnand %p1132_p0, %p1126_p4 }
 0x200   : > { %1136 = shalt.err (!%p1133_p1)
}
 0x201   : > { %s1137_s3 = scalar_lea.hbm %s1667_s21, 16  ;;  %s1141_s29 = scalar_lea.hbm %s1777_s1, 32 }
 0x202   : > { %p1138_p11 = scmp.ne.s32.totalorder %s1667_s21, %s1137_s3  ;;  %p1142_p9 = scmp.lt.u32.totalorder %s1667_s21, %s1777_s1 }
 0x203   : > { %p1143_p13 = scmp.lt.u32.totalorder %s1141_s29, %s1137_s3  ;;  %p1145_p8 = scmp.lt.u32.totalorder %s1137_s3, %s1667_s21 }
 0x204   : > { %p1139_p10 = pnand %p1138_p11, %p1776_p5 }
 0x205   : > { %p1144_p6 = por %p1143_p13, %p1142_p9 }
 0x206   : > { %p1140_p2 = pneg %p1139_p10 }
 0x207   : > { %p1146_p12 = por %p1145_p8, %p1144_p6 }
 0x209   : > { %p1147_p4 = pnand %p1146_p12, %p1140_p2 }
 0x20b   : > { %1150 = shalt.err (!%p1147_p4)
}
 0x20c   : > { %850 = dma.vmem_to_hbm [thread:$0]  (%p1776_p5), %s629_s7, 16, %s1667_s21, %s603_s15  }
 0x20d PF: > { %s1778_s25 = sld [smem:[#allocation20_spill]]  ;;  %s1779_s14 = sld [smem:[#allocation23_spill]] }
 0x20e   : > { %p881_p7 = scmp.ge.s32.totalorder %s1257_s28, 2 }
 0x213   : > { %s640_s17 = sand.u32 1, %s1778_s25   ;;  %p1780_p3 = scmp.ne.s32.totalorder %s1779_s14, 0 }
 0x214   : > { %s641_s2 = scalar_lea.sflag [#allocation6], %s640_s17 }
 0x215   : > { %p868_p0 = pnand %p881_p7, %p1780_p3 }
 0x217   : > { %1208 = dma.done.wait (!%p868_p0), %s641_s2, 16  }
 0x218   : > { %1210 = vsyncadd (!%p868_p0), %s641_s2, 4294967280  ;;  %s649_s11 = scalar_lea.sflag [#allocation14], %s640_s17 }
 0x219   : > { %1212 = dma.done.wait (!%p868_p0), %s649_s11, 16  }
 0x21a   : > { %1214 = vsyncadd (!%p868_p0), %s649_s11, 4294967280  ;;  %s27_s28 = sadd.s32 1, %s1257_s28   ;;  %s1781_s6 = smov %s1793_s18 }
 0x21b   : > { %p24_p1 = scmp.ge.s32.totalorder %s27_s28, 6   ;;  %s1782_s18 = smov %s1221_s19 }
 0x21c   : > { %s1783_s19 = smov %s1225_s20  ;;  %s1784_s20 = smov %s1500_s16 }
 0x21d   : > { %s1785_s21 = smov %s1233_s22  ;;  %s1786_s22 = smov %s1237_s23 }
 0x21e   : > { %s1787_s23 = smov %s1503_s5  ;;  %s1788_s24 = smov %s1249_s26 }
 0x21f   : > { %s1789_s25 = smov %s1253_s27  ;;  %s1790_s26 = smov %s1781_s6 }
 0x220   : > { %s1791_s27 = smov %s1797_s9  ;;  %26 = sbr.rel (!%p24_p1) target bundleno = 19 (0x13), region = 118 }
 0x227   :  { %653 = vsyncpa [#allocation5], 1 }
 0x228   :  { %655 = vsyncpa [#allocation5 + $0x1], 1 }
 0x229   :  { %656 = vsyncpa [#allocation8], 1 }
 0x22a   :  { %657 = vsyncpa [#allocation11], 1 }
 0x22b   :  { %658 = vsyncpa [#allocation6], 1 }
 0x22c   :  { %660 = vsyncpa [#allocation6 + $0x1], 1 }
 0x22d   :  { %661 = vsyncpa [#allocation14], 1 }
 0x22e   :  { %663 = vsyncpa [#allocation14 + $0x1], 1 }

// kernel: resnet_block_forward.5
= control target key start
LH: loop header
LB: loop body
LE: loop exit
PB: predicated region body
PF: predicated region fallthrough
CT: control target
= control target key end

     0   :  { %s4424_s0 = inlined_call_operand.hbm [shape: f32[2,16,16,32], index: 0, kind: input, shape index: {}, may-alias: {0,1,2}]   ;;  %s4425_s1 = inlined_call_operand.hbm [shape: f32[2,16,16,32], index: 1, kind: input, shape index: {}, may-alias: {0,1,2}]   ;;  %s4426_s2 = inlined_call_operand.hbm [shape: f32[2,16,16,32], index: 2, kind: input, shape index: {}, may-alias: {0,1,2}]   ;;  %s4427_s3 = inlined_call_operand.hbm [shape: f32[2,1,32], index: 3, kind: input, shape index: {}]   ;;  %s4428_s4 = inlined_call_operand.hbm [shape: f32[2,1,32], index: 4, kind: input, shape index: {}]   ;;  %s4429_s5 = inlined_call_operand.hbm [shape: f32[3,96,32], index: 5, kind: input, shape index: {}]   ;;  %s4430_s6 = inlined_call_operand.hbm [shape: f32[2,1,32], index: 6, kind: input, shape index: {}]   ;;  %s4431_s7 = inlined_call_operand.hbm [shape: f32[2,16,16,32], index: 7, kind: output, shape index: {}]  }
   0x1   :  { %4479 = sst [smem:[#allocation43_spill]] %s4424_s0 }
   0x2   :  { %4480 = sst [smem:[#allocation44_spill]] %s4425_s1 }
   0x3   :  { %4481 = sst [smem:[#allocation45_spill]] %s4426_s2 }
   0x4   :  { %4482 = sst [smem:[#allocation46_spill]] %s4427_s3 }
   0x5   :  { %4483 = sst [smem:[#allocation47_spill]] %s4428_s4 }
   0x6   :  { %4484 = sst [smem:[#allocation48_spill]] %s4429_s5 }
   0x7   :  { %4485 = sst [smem:[#allocation49_spill]] %s4430_s6 }
   0x8   :  { %4486 = sst [smem:[#allocation50_spill]] %s4431_s7 }
   0x9   :  { %12 = vsyncpa [#allocation3], 0 }
   0xa   :  { %14 = vsyncpa [#allocation3 + $0x1], 0 }
   0xb   :  { %15 = vsyncpa [#allocation6], 0 }
   0xc   :  { %17 = vsyncpa [#allocation6 + $0x1], 0 }
   0xd   :  { %18 = vsyncpa [#allocation9], 0 }
   0xe   :  { %20 = vsyncpa [#allocation9 + $0x1], 0 }
   0xf   :  { %21 = vsyncpa [#allocation12], 0 }
  0x10   :  { %22 = vsyncpa [#allocation4], 0 }
  0x11   :  { %24 = vsyncpa [#allocation4 + $0x1], 0  ;;  %s3132_s24 = smov 0   ;;  %s3134_s25 = smov 0  }
  0x12   :  { %s3136_s26 = smov 0   ;;  %s3138_s27 = smov 0  }
  0x13   :  { %s3140_s28 = smov 0   ;;  %s3142_s29 = smov 0  }
  0x14   :  { %s3144_s30 = smov 0   ;;  %s3146_s8 = smov 0  }
  0x15   :  { %s3148_s9 = smov 0   ;;  %s3150_s10 = smov 0  }
  0x16   :  { %s3152_s11 = smov 0   ;;  %s3154_s12 = smov 0  }
  0x17   :  { %s3156_s13 = smov 0   ;;  %s3158_s14 = smov 0  }
  0x18   :  { %s3160_s15 = smov 0   ;;  %s3162_s16 = smov 0  }
  0x19   :  { %s3164_s17 = smov 0  }
  0x1a LB: > { %4487 = sst [smem:[#allocation22_spill]] %s3016_s25  ;;  %s3218_s18 = sadd.s32 4294967295, %s3076_s17   ;;  %s3076_s17 = sphi %s3164_s17, %s30_s17   ;;  %s3072_s16 = sphi %s3162_s16, %s4599_s16   ;;  %s3068_s15 = sphi %s3160_s15, %s4591_s15   ;;  %s3064_s14 = sphi %s3158_s14, %s4598_s14   ;;  %s3060_s13 = sphi %s3156_s13, %s4589_s13   ;;  %s3056_s12 = sphi %s3154_s12, %s4588_s12   ;;  %s3052_s11 = sphi %s3152_s11, %s4597_s11   ;;  %s3048_s10 = sphi %s3150_s10, %s4596_s10   ;;  %s3044_s9 = sphi %s3148_s9, %s4586_s9   ;;  %s3040_s8 = sphi %s3146_s8, %s4595_s8   ;;  %s3036_s30 = sphi %s3144_s30, %s4594_s30   ;;  %s3032_s29 = sphi %s3142_s29, %s4593_s29   ;;  %s3028_s28 = sphi %s3140_s28, %s4584_s28   ;;  %s3024_s27 = sphi %s3138_s27, %s4583_s27   ;;  %s3020_s26 = sphi %s3136_s26, %s4582_s26   ;;  %s3016_s25 = sphi %s3134_s25, %s4581_s25   ;;  %s3012_s24 = sphi %s3132_s24, %s4580_s24  }
  0x1b   : > { %4488 = sst [smem:[#allocation23_spill]] %s3020_s26  ;;  %s1967_s19 = sadd.s32 4294967294, %s3076_s17  }
  0x1c   : > { %4489 = sst [smem:[#allocation24_spill]] %s3024_s27  ;;  %s39_s20 = sadd.s32 1, %s3068_s15 }
  0x1d   : > { %4490 = sst [smem:[#allocation25_spill]] %s3028_s28  ;;  %s42_s21 = sadd.s32 1, %s3072_s16 }
  0x1e   : > { %4491 = sst [smem:[#allocation26_spill]] %s3032_s29  ;;  %p40_p0 = scmp.ge.s32.totalorder %s39_s20, 2 }
  0x1f   : > { %4492 = sst [smem:[#allocation27_spill]] %s3044_s9  ;;  %s51_s22 = sadd.s32 1, %s3056_s12 }
  0x20   : > { %4493 = sst [smem:[#allocation28_spill]] %s3048_s10  ;;  %p58_p1 = scmp.ne.s32.totalorder %s3056_s12, %s3052_s11 }
  0x21   : > { %4494 = sst [smem:[#allocation29_spill]] %s3056_s12  ;;  %p4447_p2 = scmp.eq.s32.totalorder %s3076_s17, 0 }
  0x22   : > { %4495 = sst [smem:[#allocation30_spill]] %s3060_s13  ;;  %s4601_s20 = smov (%p40_p0, %s39_s20), 0 }
  0x23   : > { %4496 = sst [smem:[#allocation31_spill]] %s3064_s14  ;;  %s4603_s21 = smov (!%p40_p0, %s42_s21), %s3072_s16 }
  0x24   : > { %4497 = sst [smem:[#allocation32_spill]] %s3068_s15  ;;  %s47_s23 = ssub.s32 %s3068_s15, %s4601_s20 }
  0x25   : > { %4498 = sst [smem:[#allocation33_spill]] %s3072_s16  ;;  %p3234_p3 = por %p4447_p2, %p58_p1 }
  0x26   : > { %4499 = sst [smem:[#allocation34_spill]] %s4601_s20  ;;  %p44_p4 = scmp.ge.s32.totalorder %s4603_s21, 2 }
  0x27   : > { %p4445_p5 = scmp.ne.s32.totalorder %s3052_s11, %s3048_s10  ;;  %p261_p6 = scmp.eq.s32.totalorder %s3218_s18, 3 }
  0x28   : > { %p267_p7 = scmp.eq.s32.totalorder %s1967_s19, 3  ;;  %s4605_s21 = smov (%p44_p4, %s4603_s21), 0 }
  0x29   : > { %4501 = sst [smem:[#allocation35_spill]] %s4605_s21  ;;  %p3243_p8 = por %p261_p6, %p58_p1 }
  0x2a   : > { %p3250_p9 = por %p267_p7, %p4445_p5  ;;  %s3256_s6 = ssub.s32 %s3072_s16, %s4605_s21 }
  0x2b   : > { %s4502_s14 = scalar_select %p3243_p8, 1, 0 }
  0x2c   : > { %s4504_s13 = scalar_select %p3250_p9, 1, 0 }
  0x2d   : > { %4503 = sst [smem:[#allocation36_spill]] %s4502_s14  ;;  %s48_s4 = sor.u32 %s47_s23, %s3256_s6 }
  0x2e   : > { %4505 = sst [smem:[#allocation37_spill]] %s4504_s13  ;;  %p49_p10 = scmp.eq.s32.totalorder %s48_s4, 0 }
  0x2f   : > { %p4446_p11 = scmp.lt.s32.totalorder %s3076_s17, 4  ;;  %s3264_s2 = sand.u32 1, %s3076_s17  }
  0x30   : > { %s3261_s19 = scalar_select %p49_p10, %s3056_s12, %s51_s22  }
  0x31   : > { %s302_s27 = sand.u32 1, %s3056_s12   ;;  %s2060_s5 = sshll.u32 %s3068_s15, 4 }
  0x32   : > { %4506 = sst [smem:[#allocation38_spill]] %s3261_s19  ;;  %s1977_s14 = sshll.u32 %s302_s27, 7 }
  0x33   : > { %s3269_s28 = sshll.u32 %s3072_s16, 5  ;;  %s304_s13 = scalar_lea.vmem [#allocation2], %s1977_s14 }
  0x34   : > { %s314_s29 = sshll.u32 %s304_s13, 4  ;;  %s311_s3 = sadd.s32 %s2060_s5, %s3269_s28  ;;  %s3272_s29 = int_to_ptr.vmem [resolvable:$true] %s314_s29 }
  0x35   : > { %s1981_s21 = sshll.u32 %s311_s3, 7  ;;  %p3278_p12 = pnand %p4446_p11, %p3234_p3 }
  0x36   : > { %s4508_s0 = sld [smem:[#allocation43_spill]]  ;;  %s4448_s5 = scalar_lea.sflag [#allocation3], %s3264_s2 }
  0x37   : > { %p2680_p0 = pneg %p3278_p12 }
  0x3c   : > { %s3285_s27 = scalar_lea.hbm %s4508_s0, %s1981_s21  ;;  %s2683_s14 = scalar_lea.hbm %s4508_s0, 8192 }
  0x3d   : > { %s2678_s13 = scalar_lea.hbm %s3285_s27, 2048  ;;  %p2684_p4 = scmp.lt.u32.totalorder %s3285_s27, %s4508_s0 }
  0x3e   : > { %p2679_p13 = scmp.ne.s32.totalorder %s3285_s27, %s2678_s13  ;;  %p2685_p6 = scmp.lt.u32.totalorder %s2683_s14, %s2678_s13 }
  0x3f   : > { %p2687_p10 = scmp.lt.u32.totalorder %s2678_s13, %s3285_s27 }
  0x40   : > { %p2681_p1 = pnand %p2680_p0, %p2679_p13  ;;  %p2686_p7 = por %p2685_p6, %p2684_p4 }
  0x42   : > { %p2682_p3 = pneg %p2681_p1  ;;  %p2688_p5 = por %p2687_p10, %p2686_p7 }
  0x44   : > { %p2689_p11 = pnand %p2688_p5, %p2682_p3 }
  0x46   : > { %2692 = shalt.err (!%p2689_p11)
}
  0x47   : > { %s2693_s23 = scalar_lea.vmem %s3272_s29, 2048  ;;  %s3078_s3 = smov [#allocation2]  }
  0x48   : > { %p2694_p13 = scmp.ne.s32.totalorder %s3272_s29, %s2693_s23  ;;  %s2698_s7 = sshll.u32 %s3078_s3, 4  ;;  %s2699_s7 = int_to_ptr.vmem [resolvable:$false] %s2698_s7 }
  0x49   : > { %s2700_s22 = scalar_lea.vmem %s2699_s7, 4096  ;;  %p2701_p9 = scmp.lt.s32.totalorder %s3272_s29, %s2699_s7 }
  0x4a   : > { %p2696_p1 = pnand %p2694_p13, %p2680_p0  ;;  %p2702_p4 = scmp.lt.s32.totalorder %s2700_s22, %s2693_s23 }
  0x4c   : > { %p2697_p2 = pneg %p2696_p1  ;;  %p2703_p6 = por %p2702_p4, %p2701_p9 }
  0x4e   : > { %p2704_p7 = pnand %p2703_p6, %p2697_p2 }
  0x50   : > { %2707 = shalt.err (!%p2704_p7)
}
  0x51   : > { %s4449_s13 = smov 128   ;;  %s4451_s14 = smov 8  }
  0x52   : > { %2431 = dma.hbm_to_vmem [thread:$0]  (!%p3278_p12), %s3285_s27, 2048, %s3272_s29, %s4448_s5, %s4449_s13, %s4449_s13, %s4451_s14  }
  0x53   : > { %s1968_s21 = sshll.u32 %s3068_s15, 3  ;;  %s1970_s23 = sshll.u32 %s4601_s20, 3 }
  0x54   : > { %s1969_s3 = sadd.s32 4294967295, %s1968_s21  ;;  %s1971_s7 = sadd.s32 4294967295, %s1970_s23 }
  0x55   : > { %p76_p2 = scmp.gt.s32.totalorder %s1969_s3, 0  ;;  %p80_p5 = scmp.gt.s32.totalorder %s1971_s7, 0 }
  0x56   : > { %s87_s22 = sadd.s32 1, %s3044_s9  ;;  %p94_p9 = scmp.ne.s32.totalorder %s3044_s9, %s3040_s8 }
  0x57   : > { %s4607_s3 = smov (!%p76_p2, %s1969_s3), 0  ;;  %s4609_s7 = smov (!%p80_p5, %s1971_s7), 0 }
  0x58   : > { %p4509_p11 = scmp.eq.s32.totalorder %s3076_s17, 0  ;;  %s83_s29 = ssub.s32 %s4607_s3, %s4609_s7 }
  0x59   : > { %s3331_s27 = sadd.s32 8, %s1968_s21  ;;  %s84_s5 = sor.u32 %s83_s29, %s3256_s6 }
  0x5a   : > { %p3325_p0 = por %p94_p9, %p4509_p11  ;;  %p85_p10 = scmp.eq.s32.totalorder %s84_s5, 0 }
  0x5b   : > { %s3335_s13 = sadd.s32 8, %s1970_s23  ;;  %s326_s0 = sand.u32 1, %s3044_s9  }
  0x5c   : > { %s3339_s14 = scalar_select %p85_p10, %s3044_s9, %s87_s22  }
  0x5d   : > { %s1985_s20 = sshll.u32 %s4607_s3, 1  ;;  %s1982_s15 = sshll.u32 %s326_s0, 4 }
  0x5e   : > { %4511 = sst [smem:[#allocation39_spill]] %s3339_s14  ;;  %s338_s19 = sadd.s32 %s1985_s20, %s3269_s28 }
  0x5f   : > { %s1987_s7 = sshll.u32 %s338_s19, 7  ;;  %s4512_s1 = sld [smem:[#allocation44_spill]] }
  0x60   : > { %s328_s5 = scalar_lea.vmem [#allocation5], %s1982_s15  ;;  %p4513_p1 = scmp.lt.s32.totalorder %s3076_s17, 4 }
  0x61   : > { %s341_s23 = sshll.u32 %s328_s5, 4  ;;  %s4457_s0 = scalar_lea.sflag [#allocation6], %s3264_s2  ;;  %s3348_s23 = int_to_ptr.vmem [resolvable:$true] %s341_s23 }
  0x62   : > { %p3354_p4 = pnand %p4513_p1, %p3325_p0 }
  0x64   : > { %p2710_p7 = pneg %p3354_p4 }
  0x65   : > { %s3346_s16 = scalar_lea.hbm %s4512_s1, %s1987_s7  ;;  %s2713_s19 = scalar_lea.hbm %s4512_s1, 8192 }
  0x66   : > { %s2708_s12 = scalar_lea.hbm %s3346_s16, 256  ;;  %p2714_p9 = scmp.lt.u32.totalorder %s3346_s16, %s4512_s1 }
  0x67   : > { %p2709_p6 = scmp.ne.s32.totalorder %s3346_s16, %s2708_s12  ;;  %p2715_p11 = scmp.lt.u32.totalorder %s2713_s19, %s2708_s12 }
  0x68   : > { %p2717_p10 = scmp.lt.u32.totalorder %s2708_s12, %s3346_s16 }
  0x69   : > { %p2711_p2 = pnand %p2710_p7, %p2709_p6  ;;  %p2716_p0 = por %p2715_p11, %p2714_p9 }
  0x6b   : > { %p2712_p5 = pneg %p2711_p2  ;;  %p2718_p1 = por %p2717_p10, %p2716_p0 }
  0x6d   : > { %p2719_p13 = pnand %p2718_p1, %p2712_p5 }
  0x6f   : > { %2722 = shalt.err (!%p2719_p13)
}
  0x70   : > { %s2723_s29 = scalar_lea.vmem %s3348_s23, 256  ;;  %s3081_s7 = smov [#allocation5]  }
  0x71   : > { %p2724_p6 = scmp.ne.s32.totalorder %s3348_s23, %s2723_s29  ;;  %s2728_s21 = sshll.u32 %s3081_s7, 4  ;;  %s2729_s21 = int_to_ptr.vmem [resolvable:$false] %s2728_s21 }
  0x72   : > { %s2730_s5 = scalar_lea.vmem %s2729_s21, 512  ;;  %p2731_p3 = scmp.lt.s32.totalorder %s3348_s23, %s2729_s21 }
  0x73   : > { %p2726_p2 = pnand %p2724_p6, %p2710_p7  ;;  %p2732_p9 = scmp.lt.s32.totalorder %s2730_s5, %s2723_s29 }
  0x75   : > { %p2727_p12 = pneg %p2726_p2  ;;  %p2733_p11 = por %p2732_p9, %p2731_p3 }
  0x77   : > { %p2734_p0 = pnand %p2733_p11, %p2727_p12 }
  0x79   : > { %2737 = shalt.err (!%p2734_p0)
}
  0x7a   : > { %s4515_s12 = smov 8   ;;  %s4516_s15 = smov 128  }
  0x7b   : > { %s4517_s3 = sld [smem:[#allocation33_spill]]  ;;  %p4459_p3 = scmp.eq.s32.totalorder %s3218_s18, 0 }
  0x7c   : > { %2434 = dma.hbm_to_vmem [thread:$0]  (!%p3354_p4), %s3346_s16, 256, %s3348_s23, %s4457_s0, %s4516_s15, %s4516_s15, %s4515_s12  }
  0x7d   : > { %p147_p12 = scmp.eq.s32.totalorder %s3256_s6, 0  ;;  %s149_s20 = sadd.s32 1, %s3020_s26 }
  0x7e   : > { %p4518_p13 = scmp.ne.s32.totalorder %s3052_s11, %s3048_s10  ;;  %p4520_p5 = scmp.ne.s32.totalorder %s3040_s8, %s3036_s30 }
  0x7f   : > { %s3411_s4 = scalar_select %p147_p12, %s3020_s26, %s149_s20  }
  0x80   : > { %p3397_p7 = por %p4459_p3, %p4518_p13  ;;  %p3406_p10 = por %p4520_p5, %p4459_p3 }
  0x81   : > { %4523 = sst [smem:[#allocation41_spill]] %s3411_s4  ;;  %p156_p4 = scmp.ne.s32.totalorder %s3020_s26, %s3016_s25 }
  0x82   : > { %s4519_s19 = scalar_select %p3397_p7, 1, 0 }
  0x83   : > { %s4521_s22 = scalar_select %p3406_p10, 1, 0 }
  0x84   : > { %p162_p1 = scmp.ne.s32.totalorder %s3016_s25, %s3012_s24  ;;  %s3418_s16 = sand.u32 1, %s3020_s26  }
  0x85   : > { %4522 = sst [smem:[#allocation40_spill]] %s4521_s22  ;;  %p4524_p6 = scmp.eq.s32.totalorder %s3076_s17, 0 }
  0x86   : > { %p3424_p9 = por %p162_p1, %p4459_p3  ;;  %s3429_s29 = sshll.u32 %s4517_s3, 4 }
  0x87   : > { %p158_p2 = por %p156_p4, %p4524_p6  ;;  %s4527_s21 = sld [smem:[#allocation46_spill]] }
  0x88   : > { %s4525_s23 = scalar_select %p3424_p9, 1, 0 }
  0x89   : > { %s381_s24 = scalar_lea.vmem [#allocation8], %s3418_s16  ;;  %p4528_p11 = scmp.lt.s32.totalorder %s3076_s17, 4 }
  0x8a   : > { %4526 = sst [smem:[#allocation42_spill]] %s4525_s23  ;;  %s388_s20 = sshll.u32 %s381_s24, 4  ;;  %s3438_s20 = int_to_ptr.vmem [resolvable:$true] %s388_s20 }
  0x8b   : > { %p3442_p0 = pnand %p4528_p11, %p158_p2 }
  0x8d   : > { %s3435_s5 = scalar_lea.hbm %s4527_s21, %s3429_s29  ;;  %p3451_p13 = pneg %p3442_p0 }
  0x8e   : > { %s4529_s0 = scalar_select %p3442_p0, 1, 0 }
  0x8f   : > { %s2738_s1 = scalar_lea.hbm %s3435_s5, 16  ;;  %s2743_s14 = scalar_lea.hbm %s4527_s21, 32 }
  0x90   : > { %p2739_p12 = scmp.ne.s32.totalorder %s3435_s5, %s2738_s1  ;;  %p2744_p1 = scmp.lt.u32.totalorder %s3435_s5, %s4527_s21 }
  0x91   : > { %s4530_s30 = scalar_select %p3451_p13, 1, 0 }
  0x92   : > { %p2741_p5 = pnand %p3451_p13, %p2739_p12  ;;  %p2745_p6 = scmp.lt.u32.totalorder %s2743_s14, %s2738_s1 }
  0x93   : > { %p2747_p11 = scmp.lt.u32.totalorder %s2738_s1, %s3435_s5 }
  0x94   : > { %p2742_p4 = pneg %p2741_p5  ;;  %p2746_p2 = por %p2745_p6, %p2744_p1 }
  0x96   : > { %p2748_p3 = por %p2747_p11, %p2746_p2 }
  0x98   : > { %p2749_p8 = pnand %p2748_p3, %p2742_p4 }
  0x9a   : > { %2752 = shalt.err (!%p2749_p8)
}
  0x9b   : > { %s2753_s3 = scalar_lea.vmem %s3438_s20, 16  ;;  %s3082_s7 = smov [#allocation8]  }
  0x9c   : > { %p2754_p12 = scmp.ne.s32.totalorder %s3438_s20, %s2753_s3  ;;  %s2758_s24 = sshll.u32 %s3082_s7, 4  ;;  %s2759_s24 = int_to_ptr.vmem [resolvable:$false] %s2758_s24 }
  0x9d   : > { %s2760_s9 = scalar_lea.vmem %s2759_s24, 32  ;;  %p2761_p10 = scmp.lt.s32.totalorder %s3438_s20, %s2759_s24 }
  0x9e   : > { %p2756_p5 = pnand %p2754_p12, %p3451_p13  ;;  %p2762_p7 = scmp.lt.s32.totalorder %s2760_s9, %s2753_s3 }
  0xa0   : > { %p2757_p9 = pneg %p2756_p5  ;;  %p2763_p1 = por %p2762_p7, %p2761_p10 }
  0xa2   : > { %p2764_p6 = pnand %p2763_p1, %p2757_p9 }
  0xa4   : > { %2767 = shalt.err (!%p2764_p6)
}
  0xa5   : > { %s4531_s1 = scalar_lea.sflag [#allocation9], %s3264_s2  ;;  %s4532_s14 = sld [smem:[#allocation26_spill]] }
  0xa6   : > { %s4533_s4 = sld [smem:[#allocation25_spill]]  ;;  %p1974_p8 = scmp.ge.s32.totalorder %s3076_s17, 1 }
  0xa7   : > { %2440 = dma.hbm_to_vmem [thread:$0]  (!%p3442_p0), %s3435_s5, 16, %s3438_s20, %s4531_s1  }
  0xa8   : > { %p274_p3 = scmp.lt.s32.totalorder %s3076_s17, 5  ;;  %s3083_s3 = smov [#allocation11]  }
  0xa9   : > { %s286_s7 = sshll.u32 %s3083_s3, 4  ;;  %p4535_p9 = scmp.eq.s32.totalorder %s3218_s18, 0  ;;  %s287_s7 = int_to_ptr.vmem [resolvable:$true] %s286_s7 }
  0xaa   : > { %p3478_p7 = pnand %p1974_p8, %p274_p3  ;;  %p4537_p2 = scmp.lt.s32.totalorder %s3331_s27, 15 }
  0xab   : > { %s4538_s1 = sld [smem:[#allocation48_spill]] }
  0xac   : > { %s4534_s24 = scalar_select %p3478_p7, 1, 0 }
  0xad   : > { %p2424_p10 = pneg %p3478_p7  ;;  %s4611_s27 = smov (!%p4537_p2, %s3331_s27), 15 }
  0xaf   : > { %p3486_p4 = pnand %p2424_p10, %p4535_p9 }
  0xb1   : > { %s2768_s3 = scalar_lea.hbm %s4538_s1, 4608  ;;  %p2770_p5 = pneg %p3486_p4 }
  0xb2   : > { %p2769_p12 = scmp.ne.s32.totalorder %s4538_s1, %s2768_s3  ;;  %p2775_p8 = scmp.lt.u32.totalorder %s2768_s3, %s4538_s1 }
  0xb4   : > { %p2771_p1 = pnand %p2770_p5, %p2769_p12 }
  0xb6   : > { %p2772_p6 = pneg %p2771_p1 }
  0xb8   : > { %p2777_p3 = pnand %p2775_p8, %p2772_p6 }
  0xba   : > { %2780 = shalt.err (!%p2777_p3)
}
  0xbb   : > { %s2781_s21 = scalar_lea.vmem %s287_s7, 4608  ;;  %p2789_p11 = scmp.lt.s32.totalorder %s287_s7, %s287_s7 }
  0xbc   : > { %p2782_p10 = scmp.ne.s32.totalorder %s287_s7, %s2781_s21  ;;  %p2790_p7 = scmp.lt.s32.totalorder %s2781_s21, %s2781_s21 }
  0xbe   : > { %p2784_p9 = pnand %p2782_p10, %p2770_p5  ;;  %p2791_p0 = por %p2790_p7, %p2789_p11 }
  0xc0   : > { %p2785_p2 = pneg %p2784_p9 }
  0xc2   : > { %p2792_p13 = pnand %p2791_p0, %p2785_p2 }
  0xc4   : > { %2795 = shalt.err (!%p2792_p13)
}
  0xc5   : > { %s4539_s25 = sld [smem:[#allocation24_spill]]  ;;  %p4540_p0 = scmp.lt.s32.totalorder %s3335_s13, 15 }
  0xc6   : > { %2427 = dma.hbm_to_vmem [thread:$0]  (!%p3486_p4), %s4538_s1, 4608, %s287_s7, [#allocation12], %s4516_s15, %s4516_s15, %s4515_s12  }
  0xc7   : > { %s4613_s13 = smov (!%p4540_p0, %s3335_s13), 15  ;;  %p4541_p13 = scmp.eq.s32.totalorder %s3076_s17, 0 }
  0xc8   : > { %p4542_p7 = scmp.ne.s32.totalorder %s4532_s14, %s4533_s4  ;;  %s119_s21 = ssub.s32 %s4611_s27, %s4613_s13 }
  0xc9   : > { %s353_s9 = sand.u32 1, %s4532_s14   ;;  %s120_s5 = sor.u32 %s119_s21, %s3256_s6 }
  0xca   : > { %p3525_p11 = por %p4542_p7, %p4541_p13  ;;  %p4544_p5 = scmp.eq.s32.totalorder %s3218_s18, 0 }
  0xcb   : > { %p136_p12 = scmp.ne.s32.totalorder %s4533_s4, %s4539_s25  ;;  %p121_p4 = scmp.eq.s32.totalorder %s120_s5, 0 }
  0xcc   : > { %s1988_s7 = sshll.u32 %s353_s9, 4  ;;  %s1990_s3 = sshll.u32 %s4611_s27, 1 }
  0xcd   : > { %p3536_p1 = por %p136_p12, %p4544_p5  ;;  %s4546_s26 = sadd.s32 1, %s4532_s14 }
  0xce   : > { %s4615_s14 = smov (!%p121_p4, %s4532_s14), %s4546_s26  ;;  %s365_s10 = sadd.s32 %s1990_s3, %s3269_s28 }
  0xcf   : > { %s4545_s20 = scalar_select %p3536_p1, 1, 0 }
  0xd0   : > { %s355_s1 = scalar_lea.vmem [#allocation7], %s1988_s7  ;;  %s1992_s4 = sshll.u32 %s365_s10, 7 }
  0xd1   : > { %s368_s22 = sshll.u32 %s355_s1, 4  ;;  %s4547_s6 = sld [smem:[#allocation45_spill]]  ;;  %s3547_s22 = int_to_ptr.vmem [resolvable:$true] %s368_s22 }
  0xd2   : > { %p4548_p6 = scmp.lt.s32.totalorder %s3076_s17, 4  ;;  %s4550_s9 = sld [smem:[#allocation47_spill]] }
  0xd3   : > { %s398_s3 = scalar_lea.vmem [#allocation10], %s3418_s16 }
  0xd4   : > { %p3558_p8 = pnand %p4548_p6, %p3525_p11  ;;  %s3569_s26 = sshll.u32 %s398_s3, 4  ;;  %s406_s26 = int_to_ptr.vmem [resolvable:$true] %s3569_s26 }
  0xd6   : > { %p2798_p10 = pneg %p3558_p8 }
  0xd7   : > { %s3552_s21 = scalar_lea.hbm %s4547_s6, %s1992_s4  ;;  %s2801_s13 = scalar_lea.hbm %s4547_s6, 8192 }
  0xd8   : > { %s4551_s5 = smov %s4550_s9  ;;  %s3566_s7 = scalar_lea.hbm %s4550_s9, %s3429_s29 }
  0xd9   : > { %s2796_s23 = scalar_lea.hbm %s3552_s21, 256  ;;  %p2802_p0 = scmp.lt.u32.totalorder %s3552_s21, %s4547_s6 }
  0xda   : > { %p2797_p3 = scmp.ne.s32.totalorder %s3552_s21, %s2796_s23  ;;  %p2803_p13 = scmp.lt.u32.totalorder %s2801_s13, %s2796_s23 }
  0xdb   : > { %p2805_p11 = scmp.lt.u32.totalorder %s2796_s23, %s3552_s21 }
  0xdc   : > { %p2799_p9 = pnand %p2798_p10, %p2797_p3  ;;  %p2804_p7 = por %p2803_p13, %p2802_p0 }
  0xde   : > { %p2800_p2 = pneg %p2799_p9  ;;  %p2806_p12 = por %p2805_p11, %p2804_p7 }
  0xe0   : > { %p2807_p5 = pnand %p2806_p12, %p2800_p2 }
  0xe2   : > { %2810 = shalt.err (!%p2807_p5)
}
  0xe3   : > { %s2811_s1 = scalar_lea.vmem %s3547_s22, 256  ;;  %s3084_s9 = smov [#allocation7]  }
  0xe4   : > { %p2812_p4 = scmp.ne.s32.totalorder %s3547_s22, %s2811_s1  ;;  %s2816_s3 = sshll.u32 %s3084_s9, 4  ;;  %s2817_s3 = int_to_ptr.vmem [resolvable:$false] %s2816_s3 }
  0xe5   : > { %s2818_s10 = scalar_lea.vmem %s2817_s3, 512  ;;  %p2819_p9 = scmp.lt.s32.totalorder %s3547_s22, %s2817_s3 }
  0xe6   : > { %p2814_p6 = pnand %p2812_p4, %p2798_p10  ;;  %p2820_p0 = scmp.lt.s32.totalorder %s2818_s10, %s2811_s1 }
  0xe8   : > { %p2815_p3 = pneg %p2814_p6  ;;  %p2821_p13 = por %p2820_p0, %p2819_p9 }
  0xea   : > { %p2822_p7 = pnand %p2821_p13, %p2815_p3 }
  0xec   : > { %2825 = shalt.err (!%p2822_p7)
}
  0xed   : > { %s4552_s23 = scalar_lea.sflag [#allocation6], %s3264_s2  ;;  %s2826_s4 = scalar_lea.hbm %s3566_s7, 16 }
  0xee   : > { %2437 = dma.hbm_to_vmem [thread:$0]  (!%p3558_p8), %s3552_s21, 256, %s3547_s22, %s4552_s23, %s4516_s15, %s4516_s15, %s4515_s12  }
  0xef   : > { %p2827_p10 = scmp.ne.s32.totalorder %s3566_s7, %s2826_s4  ;;  %p4553_p2 = scmp.ne.s32.totalorder %s4530_s30, 0 }
  0xf0   : > { %s2831_s25 = scalar_lea.hbm %s4551_s5, 32  ;;  %p2832_p5 = scmp.lt.u32.totalorder %s3566_s7, %s4551_s5 }
  0xf1   : > { %p2829_p11 = pnand %p2827_p10, %p4553_p2  ;;  %p2833_p4 = scmp.lt.u32.totalorder %s2831_s25, %s2826_s4 }
  0xf2   : > { %p2835_p3 = scmp.lt.u32.totalorder %s2826_s4, %s3566_s7 }
  0xf3   : > { %p2830_p12 = pneg %p2829_p11  ;;  %p2834_p6 = por %p2833_p4, %p2832_p5 }
  0xf5   : > { %p2836_p9 = por %p2835_p3, %p2834_p6 }
  0xf7   : > { %p2837_p0 = pnand %p2836_p9, %p2830_p12 }
  0xf9   : > { %2840 = shalt.err (!%p2837_p0)
}
  0xfa   : > { %s2841_s12 = scalar_lea.vmem %s406_s26, 16  ;;  %s3085_s15 = smov [#allocation10]  }
  0xfb   : > { %p2842_p8 = scmp.ne.s32.totalorder %s406_s26, %s2841_s12  ;;  %s2846_s22 = sshll.u32 %s3085_s15, 4  ;;  %s2847_s22 = int_to_ptr.vmem [resolvable:$false] %s2846_s22 }
  0xfc   : > { %s2848_s21 = scalar_lea.vmem %s2847_s22, 32  ;;  %p2849_p10 = scmp.lt.s32.totalorder %s406_s26, %s2847_s22 }
  0xfd   : > { %p2844_p13 = pnand %p2842_p8, %p4553_p2  ;;  %p2850_p11 = scmp.lt.s32.totalorder %s2848_s21, %s2841_s12 }
  0xff   : > { %p2845_p7 = pneg %p2844_p13  ;;  %p2851_p1 = por %p2850_p11, %p2849_p10 }
 0x101   : > { %p2852_p4 = pnand %p2851_p1, %p2845_p7 }
 0x103   : > { %2855 = shalt.err (!%p2852_p4)
}
 0x104   : > { %p4554_p5 = scmp.ne.s32.totalorder %s4529_s0, 0  ;;  %s4555_s9 = scalar_lea.sflag [#allocation9], %s3264_s2 }
 0x105   : > { %s4556_s23 = sld [smem:[#allocation49_spill]]  ;;  %s415_s27 = scalar_lea.vmem [#allocation13], %s3418_s16 }
 0x106   : > { %2443 = dma.hbm_to_vmem [thread:$0]  (!%p4554_p5), %s3566_s7, 16, %s406_s26, %s4555_s9  }
 0x107   : > { %s422_s13 = sshll.u32 %s415_s27, 4  ;;  %s423_s13 = int_to_ptr.vmem [resolvable:$true] %s422_s13 }
 0x10b   : > { %s3625_s4 = scalar_lea.hbm %s4556_s23, %s3429_s29  ;;  %s2861_s7 = scalar_lea.hbm %s4556_s23, 32 }
 0x10c   : > { %s2856_s25 = scalar_lea.hbm %s3625_s4, 16  ;;  %p2862_p3 = scmp.lt.u32.totalorder %s3625_s4, %s4556_s23 }
 0x10d   : > { %p2857_p1 = scmp.ne.s32.totalorder %s3625_s4, %s2856_s25  ;;  %p2863_p9 = scmp.lt.u32.totalorder %s2861_s7, %s2856_s25 }
 0x10e   : > { %p2865_p8 = scmp.lt.u32.totalorder %s2856_s25, %s3625_s4 }
 0x10f   : > { %p2859_p12 = pnand %p2857_p1, %p4553_p2  ;;  %p2864_p0 = por %p2863_p9, %p2862_p3 }
 0x111   : > { %p2860_p6 = pneg %p2859_p12  ;;  %p2866_p13 = por %p2865_p8, %p2864_p0 }
 0x113   : > { %p2867_p7 = pnand %p2866_p13, %p2860_p6 }
 0x115   : > { %2870 = shalt.err (!%p2867_p7)
}
 0x116   : > { %s2871_s16 = scalar_lea.vmem %s423_s13, 16  ;;  %s3086_s29 = smov [#allocation13]  }
 0x117   : > { %p2872_p10 = scmp.ne.s32.totalorder %s423_s13, %s2871_s16  ;;  %s2876_s15 = sshll.u32 %s3086_s29, 4  ;;  %s2877_s15 = int_to_ptr.vmem [resolvable:$false] %s2876_s15 }
 0x118   : > { %s2878_s22 = scalar_lea.vmem %s2877_s15, 32  ;;  %p2879_p1 = scmp.lt.s32.totalorder %s423_s13, %s2877_s15 }
 0x119   : > { %p2874_p11 = pnand %p2872_p10, %p4553_p2  ;;  %p2880_p12 = scmp.lt.s32.totalorder %s2878_s22, %s2871_s16 }
 0x11b   : > { %p2875_p4 = pneg %p2874_p11  ;;  %p2881_p5 = por %p2880_p12, %p2879_p1 }
 0x11d   : > { %p2882_p3 = pnand %p2881_p5, %p2875_p4 }
 0x11f   : > { %2885 = shalt.err (!%p2882_p3)
}
 0x120   : > { %p4557_p9 = scmp.ne.s32.totalorder %s4529_s0, 0  ;;  %s4558_s21 = scalar_lea.sflag [#allocation3], %s3264_s2 }
 0x121   : > { %p4559_p6 = scmp.ne.s32.totalorder %s4534_s24, 0 }
 0x122   : > { %2446 = dma.hbm_to_vmem [thread:$0]  (!%p4557_p9), %s3625_s4, 16, %s423_s13, %s4558_s21  }
 0x123   : > { %431 = sbr.rel (%p4559_p6) target bundleno = 810 (0x32a), region = 48  ;;  %s433_s30 = sand.u32 (!%p4559_p6), 1, %s3218_s18  }
 0x124   : > { %s435_s9 = sand.u32 (!%p4559_p6), 1, %s3052_s11   ;;  %s434_s10 = scalar_lea.sflag (!%p4559_p6), [#allocation3], %s433_s30 }
 0x125   : > { %s3653_s3 = sshll.u32 (!%p4559_p6), %s435_s9, 7  ;;  %p4560_p2 = scmp.ne.s32.totalorder (!%p4559_p6), %s4519_s19, 0 }
 0x126   : > { %s3656_s27 = scalar_lea.vmem (!%p4559_p6), [#allocation2], %s3653_s3 }
 0x12a   : > { %2983 = dma.done.wait (%p4560_p2), %s434_s10, 2048  }
 0x12b   : > { %2985 = vsyncadd (%p4560_p2), %s434_s10, 4294965248  ;;  %s4561_s2 = sld [smem:[#allocation40_spill]]  ;;  %s444_s0 = sand.u32 1, %s3040_s8  }
 0x12c   : > { %s3663_s24 = sshll.u32 %s444_s0, 4  ;;  %s443_s4 = scalar_lea.sflag [#allocation6], %s433_s30 }
 0x12d   : > { %s446_s13 = scalar_lea.vmem [#allocation5], %s3663_s24 }
 0x131   : > { %p4562_p5 = scmp.ne.s32.totalorder %s4561_s2, 0 }
 0x133   : > { %2987 = dma.done.wait (%p4562_p5), %s443_s4, 256  }
 0x134   : > { %2989 = vsyncadd (%p4562_p5), %s443_s4, 4294967040  ;;  %s4563_s25 = sld [smem:[#allocation25_spill]]  ;;  %p4564_p0 = scmp.ne.s32.totalorder %s4545_s20, 0 }
 0x13a   : > { %s453_s28 = sand.u32 1, %s4563_s25  }
 0x13b   : > { %s3671_s1 = sshll.u32 %s453_s28, 4 }
 0x13c   : > { %s455_s19 = scalar_lea.vmem [#allocation7], %s3671_s1 }
 0x13d   : > { %2991 = dma.done.wait (%p4564_p0), %s443_s4, 256  }
 0x13e   : > { %2993 = vsyncadd (%p4564_p0), %s443_s4, 4294967040  ;;  %s4565_s7 = sld [smem:[#allocation22_spill]]  ;;  %s4566_s26 = sld [smem:[#allocation42_spill]] }
 0x13f   : > { %s461_s16 = scalar_lea.sflag [#allocation9], %s433_s30 }
 0x144   : > { %s3679_s12 = sand.u32 1, %s4565_s7   ;;  %p4567_p8 = scmp.ne.s32.totalorder %s4566_s26, 0 }
 0x145   : > { %s463_s29 = scalar_lea.vmem [#allocation8], %s3679_s12 }
 0x146   : > { %2995 = dma.done.wait (%p4567_p8), %s461_s16, 32  }
 0x147   : > { %2997 = vsyncadd (%p4567_p8), %s461_s16, 4294967264  ;;  %s471_s15 = scalar_lea.vmem [#allocation10], %s3679_s12  ;;  %p4568_p13 = scmp.eq.s32.totalorder %s3218_s18, 0 }
 0x149   : > { %2999 = dma.done.wait (%p4568_p13), [#allocation12], 4608   ;;  %p4569_p7 = pmov %p4568_p13 }
 0x14a   : > { %s483_s20 = scalar_lea.vmem [#allocation13], %s3679_s12 }
 0x14b   : > { %3001 = vsyncadd (%p4569_p7), [#allocation12], 4294962688 }
 0x14c   : > { %3003 = dma.done.wait (%p4567_p8), %s434_s10, 16  }
 0x14d   : > { %3005 = vsyncadd (%p4567_p8), %s434_s10, 4294967280  ;;  %v3696_v0 = vld [vmem:[%s463_s29] ss:$0 sm:$0xff]  ;;  %v555_v3 = vld [vmem:[%s3656_s27 + $0x8] sm:$0xff]  ;;  %vm792_vm0 = vcmask 1040384   ;;  %vm889_vm1 = vcmask 1046528  }
 0x14e   : > { %v3698_v1 = vld [vmem:[%s471_s15] ss:$0 sm:$0xff]  ;;  %v556_v5 = vld [vmem:[%s3656_s27 + $0x10] sm:$0xff]  ;;  %v557_v6 = vld [vmem:[%s3656_s27 + $0x18] sm:$0xff]  ;;  %v577_v7 = vmul.f32 %v3696_v0, %v555_v3  ;;  %vm978_vm2 = vcmask 1045504   ;;  %s4570_s18 = sld [smem:[#allocation30_spill]] }
 0x14f   : > { %v554_v2 = vld [vmem:[%s3656_s27] sm:$0xff]  ;;  %v578_v8 = vmul.f32 %v3696_v0, %v556_v5  ;;  %v579_v9 = vmul.f32 %v3696_v0, %v557_v6  ;;  %v559_v11 = vld [vmem:[%s3656_s27 + $0x28] sm:$0xff]  ;;  %v560_v12 = vld [vmem:[%s3656_s27 + $0x30] sm:$0xff]  ;;  %s3087_s22 = smov 32   ;;  %s3088_s30 = smov 64   ;;  %vm1067_vm3 = vcmask 261120  }
 0x150   : > { %v576_v4 = vmul.f32 %v3696_v0, %v554_v2  ;;  %v558_v10 = vld [vmem:[%s3656_s27 + $0x20] sm:$0xff]  ;;  %v581_v15 = vmul.f32 %v3696_v0, %v559_v11  ;;  %v561_v16 = vld [vmem:[%s3656_s27 + $0x38] sm:$0xff]  ;;  %v582_v17 = vmul.f32 %v3696_v0, %v560_v12  ;;  %v3719_v18 = vadd.f32 %v3698_v1, %v577_v7  ;;  %v563_v31 = vld [vmem:[%s3656_s27 + $0x48] sm:$0xff]  ;;  %s4571_s0 = sld [smem:[#allocation31_spill]]  ;;  %s4276_s24 = scalar_lea.vmem [#allocation14], %s3653_s3 }
 0x151   : > { %v580_v14 = vmul.f32 %v3696_v0, %v558_v10  ;;  %v3722_v19 = vadd.f32 %v3698_v1, %v578_v8  ;;  %v3725_v20 = vadd.f32 %v3698_v1, %v579_v9  ;;  %v583_v21 = vmul.f32 %v3696_v0, %v561_v16  ;;  %v562_v26 = vld [vmem:[%s3656_s27 + $0x40] sm:$0xff]  ;;  %v727_v37 = vld [vmem:[%s446_s13 + $0x8] sm:$0xff]  ;;  %v564_v53 = vld [vmem:[%s3656_s27 + $0x50] sm:$0xff]  ;;  %s1763_s28 = sshll.u32 %s4276_s24, 4  ;;  %s4572_s1 = sld [smem:[#allocation36_spill]]  ;;  %s4326_s28 = int_to_ptr.vmem [resolvable:$true] %s1763_s28 }
 0x152   : > { %v3712_v13 = vadd.f32 %v3698_v1, %v576_v4  ;;  %v3733_v24 = vadd.f32 %v3698_v1, %v581_v15  ;;  %v3736_v25 = vadd.f32 %v3698_v1, %v582_v17  ;;  %v615_v27 = vsub.f32 0.0, %v3719_v18  ;;  %v726_v32 = vld [vmem:[%s446_s13] sm:$0xff]  ;;  %v569_v63 = vld [vmem:[%s3656_s27 + $0x78] sm:$0xff]  ;;  %s4573_s26 = sld [smem:[#allocation50_spill]]  ;;  %s4339_s16 = scalar_lea.sflag [#allocation4], %s435_s9 }
 0x153   : > { %v3730_v23 = vadd.f32 %v3698_v1, %v580_v14  ;;  %v616_v28 = vsub.f32 0.0, %v3722_v19  ;;  %v617_v29 = vsub.f32 0.0, %v3725_v20  ;;  %v3743_v30 = vadd.f32 %v3698_v1, %v583_v21  ;;  %v568_v62 = vld [vmem:[%s3656_s27 + $0x70] sm:$0xff]  ;;  %v565_v4 = vld [vmem:[%s3656_s27 + $0x58] sm:$0xff]  ;;  %v566_v7 = vld [vmem:[%s3656_s27 + $0x60] sm:$0xff]  ;;  %s2886_s29 = scalar_lea.vmem %s4326_s28, 2048 }
 0x154   : > { %v614_v22 = vsub.f32 0.0, %v3712_v13  ;;  %v619_v35 = vsub.f32 0.0, %v3733_v24  ;;  %v620_v36 = vsub.f32 0.0, %v3736_v25  ;;  %v632_v38 = vmul.f32 1.442695, %v615_v27  ;;  %v749_v21 = vld [vmem:[%s455_s19] sm:$0xff]  ;;  %p2887_p4 = scmp.ne.s32.totalorder %s4326_s28, %s2886_s29 }
 0x155   : > { %v618_v34 = vsub.f32 0.0, %v3730_v23  ;;  %v634_v39 = vmul.f32 1.442695, %v616_v28  ;;  %v636_v40 = vmul.f32 1.442695, %v617_v29  ;;  %v584_v41 = vmul.f32 %v3696_v0, %v562_v26  ;;  %v567_v27 = vld [vmem:[%s3656_s27 + $0x68] sm:$0xff] }
 0x156   : > { %v630_v33 = vmul.f32 1.442695, %v614_v22  ;;  %v621_v43 = vsub.f32 0.0, %v3743_v30  ;;  %v640_v44 = vmul.f32 1.442695, %v619_v35  ;;  %v585_v45 = vmul.f32 %v3696_v0, %v563_v31  ;;  %p548_p10 = scmp.gt.s32.totalorder %s4570_s18, 0 }
 0x157   : > { %v638_v42 = vmul.f32 1.442695, %v618_v34  ;;  %v3757_v46 = vadd.f32 %v3698_v1, %v584_v41  ;;  %v642_v47 = vmul.f32 1.442695, %v620_v36  ;;  %v728_v48 = vmul.f32 %v3696_v0, %v726_v32  ;;  %v1142_v34 = vld [vmem:[#allocation11 + $0x60] sm:$0xff]  ;;  %p551_p11 = scmp.lt.s32.totalorder %s4570_s18, 1 }
 0x158   : > { %2598 = vpow2.f32 %v630_v33  ;;  %v729_v49 = vmul.f32 %v3696_v0, %v727_v37  ;;  %v644_v50 = vmul.f32 1.442695, %v621_v43  ;;  %v3762_v51 = vadd.f32 %v3698_v1, %v585_v45  ;;  %v750_v33 = vld [vmem:[%s455_s19 + $0x8] sm:$0xff]  ;;  %s3868_s21 = scalar_select %p548_p10, 1, 0 }
 0x159   : > { %2600 = vpow2.f32 %v632_v38  ;;  %v622_v52 = vsub.f32 0.0, %v3757_v46  ;;  %v3767_v54 = vadd.f32 %v3698_v1, %v728_v48  ;;  %v586_v60 = vmul.f32 %v3696_v0, %v564_v53  ;;  %v1143_v38 = vld [vmem:[#allocation11 + $0x68] sm:$0xff]  ;;  %s3995_s27 = scalar_select %p551_p11, 1, 0 }
 0x15a   : > { %2602 = vpow2.f32 %v634_v39  ;;  %v3770_v55 = vadd.f32 %v3698_v1, %v729_v49  ;;  %v623_v56 = vsub.f32 0.0, %v3762_v51  ;;  %v590_v8 = vmul.f32 %v3696_v0, %v568_v62  ;;  %v1144_v39 = vld [vmem:[#allocation11 + $0x70] sm:$0xff]  ;;  %s550_s10 = scvt.s32.f32 %s3868_s21  ;;  %s2061_s3 = sshll.u32 %s4570_s18, 4 }
 0x15b   : > { %2604 = vpow2.f32 %v636_v40  ;;  %v646_v57 = vmul.f32 1.442695, %v622_v52  ;;  %v732_v58 = vsub.f32 0.0, %v3767_v54  ;;  %v3780_v6 = vadd.f32 %v3698_v1, %v586_v60  ;;  %v1145_v40 = vld [vmem:[#allocation11 + $0x78] sm:$0xff]  ;;  %v1146_v60 = vld [vmem:[#allocation11 + $0x80] sm:$0xff]  ;;  %s553_s2 = scvt.s32.f32 %s3995_s27  ;;  %s2056_s4 = sshll.u32 %s4571_s0, 5 }
 0x15c   : > { %2606 = vpow2.f32 %v638_v42  ;;  %v733_v59 = vsub.f32 0.0, %v3770_v55  ;;  %v648_v61 = vmul.f32 1.442695, %v623_v56  ;;  %v591_v9 = vmul.f32 %v3696_v0, %v569_v63  ;;  %s1760_s13 = sadd.s32 %s2061_s3, %s2056_s4  ;;  %p4575_p1 = scmp.ne.s32.totalorder %s4572_s1, 0 }
 0x15d   : > { %2608 = vpow2.f32 %v640_v44  ;;  %v734_v2 = vmul.f32 1.442695, %v732_v58  ;;  %v587_v15 = vmul.f32 %v3696_v0, %v565_v4  ;;  %v3787_v16 = vadd.f32 %v3698_v1, %v590_v8  ;;  %s2057_s25 = sshll.u32 %s1760_s13, 7  ;;  %s3089_s15 = smov [#allocation14]  }
 0x15e   : > { %2610 = vpow2.f32 %v642_v47  ;;  %v736_v3 = vmul.f32 1.442695, %v733_v59  ;;  %v3790_v17 = vadd.f32 %v3698_v1, %v591_v9  ;;  %v588_v28 = vmul.f32 %v3696_v0, %v566_v7  ;;  %s4324_s12 = scalar_lea.hbm %s4573_s26, %s2057_s25  ;;  %p2888_p12 = pnand %p2887_p4, %p4575_p1 }
 0x15f   : > { %2612 = vpow2.f32 %v644_v50  ;;  %v624_v32 = vsub.f32 0.0, %v3780_v6  ;;  %v751_v37 = vmul.f32 %v3696_v0, %v749_v21  ;;  %v3801_v43 = vadd.f32 %v3698_v1, %v587_v15  ;;  %s2890_s18 = sshll.u32 %s3089_s15, 4  ;;  %s2891_s18 = int_to_ptr.vmem [resolvable:$false] %s2890_s18 }
 0x160   : > { %2614 = vpow2.f32 %v646_v57  ;;  %v589_v44 = vmul.f32 %v3696_v0, %v567_v27  ;;  %v3805_v47 = vadd.f32 %v3698_v1, %v588_v28  ;;  %v752_v48 = vmul.f32 %v3696_v0, %v750_v33  ;;  %p2889_p3 = pneg %p2888_p12  ;;  %p2893_p9 = scmp.lt.s32.totalorder %s4326_s28, %s2891_s18 }
 0x161   : > { %2616 = vpow2.f32 %v648_v61  ;;  %v3809_v49 = vadd.f32 %v3698_v1, %v751_v37  ;;  %v650_v52 = vmul.f32 1.442695, %v624_v32  ;;  %v2290_v53 = vpack.c.bf16 %v1143_v38, %v1142_v34  ;;  %v1147_v61 = vld [vmem:[#allocation11 + $0x88] sm:$0xff] }
 0x162   : > { %v2599_v5 = vpop.eup %2598  ;;  %2618 = vpow2.f32 %v734_v2  ;;  %v2294_v56 = vpack.c.bf16 %v1145_v40, %v1144_v39  ;;  %v3812_v59 = vadd.f32 %v3698_v1, %v752_v48  ;;  %v625_v2 = vsub.f32 0.0, %v3801_v43 }
 0x163   : > { %v2601_v10 = vpop.eup %2600  ;;  %v662_v11 = vadd.f32 1.0, %v2599_v5  ;;  %2620 = vpow2.f32 %v736_v3  ;;  %2291 = vmatprep.subr.bf16.mxu1 %v2290_v53  ;;  %v3816_v4 = vadd.f32 %v3698_v1, %v589_v44  ;;  %v626_v5 = vsub.f32 0.0, %v3805_v47 }
 0x164   : > { %v2603_v12 = vpop.eup %2602  ;;  %v663_v14 = vadd.f32 1.0, %v2601_v10  ;;  %2293 = vmatpush3.bf16.msra.mxu1 %v2290_v53  ;;  %v2298_v8 = vpack.c.bf16 %v1147_v61, %v1146_v60  ;;  %v652_v21 = vmul.f32 1.442695, %v625_v2  ;;  %v1153_v2 = vld [vmem:[#allocation11 + $0xb8] sm:$0xff]  ;;  %vm1084_vm4 = vcmask 523264  }
 0x165   : > { %v2605_v22 = vpop.eup %2604  ;;  %2622 = vrcp.f32 %v662_v11  ;;  %v664_v26 = vadd.f32 1.0, %v2603_v12  ;;  %2295 = vmatprep.subr.bf16.mxu1 %v2294_v56  ;;  %v1148_v11 = vld [vmem:[#allocation11 + $0x90] sm:$0xff]  ;;  %v1149_v12 = vld [vmem:[#allocation11 + $0x98] sm:$0xff]  ;;  %vm1154_vm5 = vcmask 785408  }
 0x166   : > { %v2607_v29 = vpop.eup %2606  ;;  %2624 = vrcp.f32 %v663_v14  ;;  %v665_v31 = vadd.f32 1.0, %v2605_v22  ;;  %v1150_v22 = vld [vmem:[#allocation11 + $0xa0] sm:$0xff] }
 0x167   : > { %v2609_v35 = vpop.eup %2608  ;;  %2626 = vrcp.f32 %v664_v26  ;;  %v666_v36 = vadd.f32 1.0, %v2607_v29  ;;  %v1151_v26 = vld [vmem:[#allocation11 + $0xa8] sm:$0xff]  ;;  %v627_v29 = vsub.f32 0.0, %v3816_v4 }
 0x168   : > { %v2611_v41 = vpop.eup %2610  ;;  %2628 = vrcp.f32 %v665_v31  ;;  %v667_v42 = vadd.f32 1.0, %v2609_v35  ;;  %v654_v31 = vmul.f32 1.442695, %v626_v5  ;;  %2297 = vmatpush3.bf16.msra.mxu1 %v2294_v56  ;;  %v3824_v38 = vpack.c.bf16 %v1151_v26, %v1150_v22 }
 0x169   : > { %v2613_v45 = vpop.eup %2612  ;;  %2630 = vrcp.f32 %v666_v36  ;;  %v668_v58 = vadd.f32 1.0, %v2611_v41  ;;  %2299 = vmatprep.subr.bf16.mxu1 %v2298_v8  ;;  %v656_v26 = vmul.f32 1.442695, %v627_v29 }
 0x16a   : > { %v2615_v50 = vpop.eup %2614  ;;  %2632 = vrcp.f32 %v667_v42  ;;  %v669_v63 = vadd.f32 1.0, %v2613_v45 }
 0x16b   : > { %v2617_v57 = vpop.eup %2616  ;;  %v670_v3 = vadd.f32 1.0, %v2615_v50  ;;  %2634 = vpow2.f32 %v650_v52 }
 0x16c   : > { %v2619_v62 = vpop.eup %2618  ;;  %v671_v7 = vadd.f32 1.0, %v2617_v57  ;;  %2636 = vrcp.f32 %v668_v58  ;;  %2301 = vmatpush3.bf16.msra.mxu1 %v2298_v8 }
 0x16d   : > { %v2621_v0 = vpop.eup %2620  ;;  %v738_v10 = vadd.f32 1.0, %v2619_v62  ;;  %2638 = vrcp.f32 %v669_v63  ;;  %v1152_v63 = vld [vmem:[#allocation11 + $0xb0] sm:$0xff] }
 0x16e   : > { %v739_v1 = vadd.f32 1.0, %v2621_v0  ;;  %2640 = vrcp.f32 %v670_v3 }
 0x16f   : > { %v2623_v9 = vpop.eup %2622  ;;  %2642 = vrcp.f32 %v671_v7 }
 0x170   : > { %v2625_v14 = vpop.eup %2624  ;;  %v710_v15 = vmul.f32 %v2623_v9, %v3712_v13  ;;  %v2302_v13 = vpack.c.bf16 %v1149_v12, %v1148_v11  ;;  %2644 = vrcp.f32 %v738_v10 }
 0x171   : > { %v2627_v27 = vpop.eup %2626  ;;  %v711_v28 = vmul.f32 %v2625_v14, %v3719_v18  ;;  %2646 = vrcp.f32 %v739_v1  ;;  %v2310_v1 = vpack.c.bf16 %v1153_v2, %v1152_v63  ;;  %v629_v63 = vsub.f32 0.0, %v3790_v17 }
 0x172   : > { %v2629_v32 = vpop.eup %2628  ;;  %v796_v33 = vrot.slane %v710_v15, 7  ;;  %v712_v34 = vmul.f32 %v2627_v27, %v3722_v19  ;;  %2303 = vmatprep.subr.bf16.mxu1 %v2302_v13  ;;  %2648 = vpow2.f32 %v652_v21 }
 0x173   : > { %v2631_v35 = vpop.eup %2630  ;;  %v797_v36 = vrot.slane %v711_v28, 7  ;;  %v713_v37 = vmul.f32 %v2629_v32, %v3725_v20  ;;  %2305 = vmatpush3.bf16.msra.mxu1 %v2302_v13  ;;  %2650 = vpow2.f32 %v654_v31 }
 0x174   : > { %v2633_v18 = vpop.eup %2632  ;;  %v3827_v39 = vsel %vm792_vm0, 0.0, %v796_v33  ;;  %v799_v40 = vrot.slane %v712_v34, 7  ;;  %v714_v41 = vmul.f32 %v2631_v35, %v3730_v23  ;;  %2307 = vmatprep.subr.bf16.mxu1 %v3824_v38  ;;  %2652 = vpow2.f32 %v656_v26 }
 0x175   : > { %v3831_v19 = vsel %vm792_vm0, %v796_v33, %v797_v36  ;;  %v864_v42 = vsel %vm792_vm0, %v797_v36, 0.0  ;;  %v895_v44 = vrot.slane %v3827_v39, 1  ;;  %v984_v20 = vrot.slane %v3827_v39, 2  ;;  %v3842_v57 = vpop.eup %2634 }
 0x176   : > { %v896_v45 = vrot.slane %v3831_v19, 1  ;;  %v898_v48 = vrot.slane %v864_v42, 1  ;;  %v985_v50 = vrot.slane %v3831_v19, 2  ;;  %v800_v52 = vrot.slane %v713_v37, 7  ;;  %v2637_v0 = vpop.eup %2636 }
 0x177   : > { %v3839_v23 = vsel %vm792_vm0, 0.0, %v799_v40  ;;  %v715_v53 = vmul.f32 %v2633_v18, %v3733_v24  ;;  %v802_v56 = vrot.slane %v714_v41, 7  ;;  %v987_v62 = vrot.slane %v864_v42, 2  ;;  %v2639_v8 = vpop.eup %2638  ;;  %2309 = vmatpush3.bf16.msra.mxu1 %v3824_v38 }
 0x178   : > { %v899_v58 = vsel %vm889_vm1, %v896_v45, %v898_v48  ;;  %v897_v60 = vsel %vm889_vm1, %v895_v44, %v896_v45  ;;  %v3847_v61 = vsel %vm792_vm0, %v799_v40, %v800_v52  ;;  %v986_v24 = vsel %vm978_vm2, %v984_v20, %v985_v50  ;;  %v2641_v14 = vpop.eup %2640  ;;  %2311 = vmatprep.subr.bf16.mxu1 %v2310_v1 }
 0x179   : > { %936 = vrot.lane.b32.xlu1 %v899_v58, %s3087_s22  ;;  %934 = vrot.lane.b32.xlu0 %v897_v60, %s3087_s22  ;;  %v900_v3 = vrot.slane %v3839_v23, 1  ;;  %v901_v5 = vrot.slane %v3847_v61, 1  ;;  %v989_v7 = vrot.slane %v3839_v23, 2  ;;  %v990_v9 = vrot.slane %v3847_v61, 2  ;;  %v2643_v21 = vpop.eup %2642 }
 0x17a   : > { %v865_v10 = vsel %vm792_vm0, %v800_v52, 0.0  ;;  %v803_v11 = vrot.slane %v715_v53, 7  ;;  %v3859_v12 = vsel %vm792_vm0, 0.0, %v802_v56  ;;  %v2645_v27 = vpop.eup %2644  ;;  %v988_v28 = vsel %vm978_vm2, %v985_v50, %v987_v62 }
 0x17b   : > { %v902_v15 = vsel %vm889_vm1, %v900_v3, %v901_v5  ;;  %v903_v32 = vrot.slane %v865_v10, 1  ;;  %v905_v33 = vrot.slane %v3859_v12, 1  ;;  %v2647_v34 = vpop.eup %2646  ;;  %v991_v13 = vsel %vm978_vm2, %v989_v7, %v990_v9  ;;  %2313 = vmatpush3.bf16.msra.mxu1 %v2310_v1 }
 0x17c   : > { %v3864_v22 = vsel %vm792_vm0, %v802_v56, %v803_v11  ;;  %v716_v31 = vmul.f32 %v2637_v0, %v3736_v25  ;;  %v717_v29 = vmul.f32 %v2639_v8, %v3743_v30  ;;  %v992_v36 = vrot.slane %v865_v10, 2  ;;  %v2649_v40 = vpop.eup %2648 }
 0x17d   : > { %1023 = vrot.lane.b32.xlu1 %v986_v24, %s3088_s30  ;;  %938 = vrot.lane.b32.xlu0 %v902_v15, %s3087_s22  ;;  %v906_v35 = vrot.slane %v3864_v22, 1  ;;  %v994_v41 = vrot.slane %v3859_v12, 2  ;;  %v995_v42 = vrot.slane %v3864_v22, 2  ;;  %v866_v25 = vsel %vm792_vm0, %v803_v11, 0.0  ;;  %v2651_v2 = vpop.eup %2650 }
 0x17e   : > { %v805_v37 = vrot.slane %v716_v31, 7  ;;  %v806_v18 = vrot.slane %v717_v29, 7  ;;  %v718_v30 = vmul.f32 %v2641_v14, %v3757_v46  ;;  %v904_v38 = vsel %vm889_vm1, %v901_v5, %v903_v32  ;;  %v1101_v31 = vld [vmem:[#allocation11] sm:$0xff]  ;;  %v1102_v29 = vld [vmem:[#allocation11 + $0x8] sm:$0xff] }
 0x17f   : > { %v907_v44 = vsel %vm889_vm1, %v905_v33, %v906_v35  ;;  %v3889_v20 = vmul.f32 %v2643_v21, %v3762_v51  ;;  %v628_v45 = vsub.f32 0.0, %v3787_v16  ;;  %v744_v52 = vmul.f32 %v2645_v27, %v3767_v54  ;;  %v2653_v21 = vpop.eup %2652 }
 0x180   : > { %v3893_v48 = vsel %vm792_vm0, %v805_v37, %v806_v18  ;;  %v3896_v50 = vsel %vm792_vm0, 0.0, %v805_v37  ;;  %v745_v46 = vmul.f32 %v2647_v34, %v3770_v55  ;;  %v908_v53 = vrot.slane %v866_v25, 1 }
 0x181   : > { %1025 = vrot.lane.b32.xlu1 %v988_v28, %s3088_s30  ;;  %1027 = vrot.lane.b32.xlu0 %v991_v13, %s3088_s30  ;;  %v746_v56 = vstv %s550_s10  ;;  %v672_v58 = vadd.f32 1.0, %v3842_v57  ;;  %v993_v51 = vsel %vm978_vm2, %v990_v9, %v992_v36  ;;  %v996_v60 = vsel %vm978_vm2, %v994_v41, %v995_v42  ;;  %v1104_v41 = vld [vmem:[#allocation11 + $0x18] sm:$0xff] }
 0x182   : > { %v808_v62 = vrot.slane %v718_v30, 7  ;;  %v910_v54 = vrot.slane %v3896_v50, 1  ;;  %v911_v55 = vrot.slane %v3893_v48, 1  ;;  %v809_v0 = vrot.slane %v3889_v20, 7 }
 0x183   : > { %v673_v24 = vadd.f32 1.0, %v2649_v40  ;;  %v747_v57 = vmul.f32 %v746_v56, %v744_v52  ;;  %v748_v3 = vmul.f32 %v746_v56, %v745_v46  ;;  %v658_v5 = vmul.f32 1.442695, %v628_v45  ;;  %v1103_v40 = vld [vmem:[#allocation11 + $0x10] sm:$0xff] }
 0x184   : > { %v755_v7 = vsub.f32 0.0, %v3809_v49  ;;  %v909_v8 = vsel %vm889_vm1, %v906_v35, %v908_v53  ;;  %v997_v9 = vrot.slane %v866_v25, 2  ;;  %2654 = vrcp.f32 %v672_v58  ;;  %v1105_v58 = vld [vmem:[#allocation11 + $0x20] sm:$0xff] }
 0x185   : > { %940 = vrot.lane.b32.xlu1 %v904_v38, %s3087_s22  ;;  %942 = vrot.lane.b32.xlu0 %v907_v44, %s3087_s22  ;;  %v756_v10 = vsub.f32 0.0, %v3812_v59  ;;  %v999_v11 = vrot.slane %v3896_v50, 2  ;;  %v1000_v14 = vrot.slane %v3893_v48, 2  ;;  %v867_v15 = vsel %vm792_vm0, %v806_v18, 0.0 }
 0x186   : > { %v674_v1 = vadd.f32 1.0, %v2651_v2  ;;  %v912_v26 = vsel %vm889_vm1, %v910_v54, %v911_v55  ;;  %v3921_v27 = vsel %vm792_vm0, %v808_v62, %v809_v0  ;;  %v3924_v28 = vsel %vm792_vm0, 0.0, %v808_v62 }
 0x187   : > { %2656 = vrcp.f32 %v673_v24  ;;  %v793_v32 = vrot.slane %v747_v57, 7  ;;  %v794_v33 = vrot.slane %v748_v3, 7  ;;  %v660_v34 = vmul.f32 1.442695, %v629_v63  ;;  %v1107_v24 = vld [vmem:[#allocation11 + $0x30] sm:$0xff] }
 0x188   : > { %v913_v13 = vrot.slane %v867_v15, 1  ;;  %v757_v35 = vmul.f32 1.442695, %v755_v7  ;;  %v915_v36 = vrot.slane %v3924_v28, 1  ;;  %v916_v37 = vrot.slane %v3921_v27, 1  ;;  %v1108_v7 = vld [vmem:[#allocation11 + $0x38] sm:$0xff] }
 0x189   : > { %1029 = vrot.lane.b32.xlu1 %v993_v51, %s3088_s30  ;;  %1031 = vrot.lane.b32.xlu0 %v996_v60, %s3088_s30  ;;  %v675_v18 = vadd.f32 1.0, %v2653_v21  ;;  %2658 = vrcp.f32 %v674_v1  ;;  %v998_v25 = vsel %vm978_vm2, %v995_v42, %v997_v9  ;;  %v1001_v30 = vsel %vm978_vm2, %v999_v11, %v1000_v14  ;;  %v1106_v51 = vld [vmem:[#allocation11 + $0x28] sm:$0xff] }
 0x18a   : > { %2660 = vpow2.f32 %v658_v5  ;;  %v759_v38 = vmul.f32 1.442695, %v756_v10  ;;  %v3933_v44 = vsel %vm792_vm0, %v793_v32, %v794_v33  ;;  %v3936_v45 = vsel %vm792_vm0, 0.0, %v793_v32  ;;  %v1529_v9 = vld [vmem:[#allocation11 + $0xc8] sm:$0xff] }
 0x18b   : > { %2662 = vrcp.f32 %v675_v18  ;;  %v2314_v52 = vpack.c.bf16 %v1102_v29, %v1101_v31  ;;  %v2318_v46 = vpack.c.bf16 %v1104_v41, %v1103_v40  ;;  %v914_v42 = vsel %vm889_vm1, %v911_v55, %v913_v13  ;;  %v1110_v13 = vld [vmem:[#allocation11 + $0x48] sm:$0xff] }
 0x18c   : > { %2664 = vpow2.f32 %v660_v34  ;;  %v917_v53 = vsel %vm889_vm1, %v915_v36, %v916_v37  ;;  %v1002_v56 = vrot.slane %v867_v15, 2  ;;  %v890_v62 = vrot.slane %v3936_v45, 1  ;;  %v1109_v34 = vld [vmem:[#allocation11 + $0x40] sm:$0xff] }
 0x18d   : > { %944 = vrot.lane.b32.xlu1 %v909_v8, %s3087_s22  ;;  %946 = vrot.lane.b32.xlu0 %v912_v26, %s3087_s22  ;;  %2666 = vpow2.f32 %v757_v35  ;;  %v891_v63 = vrot.slane %v3933_v44, 1  ;;  %v863_v2 = vsel %vm792_vm0, %v794_v33, 0.0  ;;  %v2322_v55 = vpack.c.bf16 %v1106_v51, %v1105_v58  ;;  %v1528_v8 = vld [vmem:[#allocation11 + $0xc0] sm:$0xff]  ;;  %v1111_v58 = vld [vmem:[#allocation11 + $0x50] sm:$0xff]  ;;  %v1112_v51 = vld [vmem:[#allocation11 + $0x58] sm:$0xff] }
 0x18e   : > { %v2655_v60 = vpop.eup %2654  ;;  %2668 = vpow2.f32 %v759_v38  ;;  %2315 = vmatprep.subr.bf16.mxu0 %v2314_v52  ;;  %v1003_v57 = vsel %vm978_vm2, %v1000_v14, %v1002_v56  ;;  %v893_v3 = vrot.slane %v863_v2, 1  ;;  %v3953_v5 = vsel %vm792_vm0, %v809_v0, 0.0 }
 0x18f   : > { %2317 = vmatpush3.bf16.msra.mxu0 %v2314_v52  ;;  %v892_v10 = vsel %vm889_vm1, %v890_v62, %v891_v63  ;;  %v979_v11 = vrot.slane %v3936_v45, 2  ;;  %v980_v15 = vrot.slane %v3933_v44, 2  ;;  %v3958_v1 = vpack.c.bf16 %v1529_v9, %v1528_v8 }
 0x190   : > { %2319 = vmatprep.subr.bf16.mxu0 %v2318_v46  ;;  %v720_v14 = vmul.f32 %v2655_v60, %v3780_v6  ;;  %v2326_v0 = vpack.c.bf16 %v1108_v7, %v1107_v24  ;;  %v918_v33 = vrot.slane %v3953_v5, 1  ;;  %v894_v6 = vsel %vm889_vm1, %v891_v63, %v893_v3 }
 0x191   : > { %1033 = vrot.lane.b32.xlu1 %v998_v25, %s3088_s30  ;;  %1035 = vrot.lane.b32.xlu0 %v1001_v30, %s3088_s30  ;;  %v2657_v54 = vpop.eup %2656  ;;  %v982_v31 = vrot.slane %v863_v2, 2  ;;  %v1005_v18 = vrot.slane %v3921_v27, 2  ;;  %v1004_v30 = vrot.slane %v3924_v28, 2  ;;  %v2330_v52 = vpack.c.bf16 %v1110_v13, %v1109_v34 }
 0x192   : > { %v721_v26 = vmul.f32 %v2657_v54, %v3801_v43  ;;  %2362 = vmatprep.subr.bf16.mxu1 %v3958_v1  ;;  %v981_v43 = vsel %vm978_vm2, %v979_v11, %v980_v15  ;;  %v811_v40 = vrot.slane %v720_v14, 7  ;;  %v919_v60 = vsel %vm889_vm1, %v916_v37, %v918_v33 }
 0x193   : > { %v2659_v21 = vpop.eup %2658  ;;  %2321 = vmatpush3.bf16.msra.mxu0 %v2318_v46  ;;  %v983_v62 = vsel %vm978_vm2, %v980_v15, %v982_v31  ;;  %v1007_v63 = vrot.slane %v3953_v5, 2  ;;  %v2334_v54 = vpack.c.bf16 %v1112_v51, %v1111_v58  ;;  %v1006_v37 = vsel %vm978_vm2, %v1004_v30, %v1005_v18 }
 0x194   : > { %v2661_v20 = vpop.eup %2660  ;;  %2323 = vmatprep.subr.bf16.mxu0 %v2322_v55  ;;  %v812_v41 = vrot.slane %v721_v26, 7  ;;  %v722_v46 = vmul.f32 %v2659_v21, %v3805_v47 }
 0x195   : > { %948 = vrot.lane.b32.xlu1 %v914_v42, %s3087_s22  ;;  %950 = vrot.lane.b32.xlu0 %v917_v53, %s3087_s22  ;;  %v2663_v32 = vpop.eup %2662  ;;  %v676_v29 = vadd.f32 1.0, %v2661_v20 }
 0x196   : > { %v2665_v35 = vpop.eup %2664  ;;  %v723_v42 = vmul.f32 %v2663_v32, %v3816_v4  ;;  %v3981_v2 = vsel %vm792_vm0, %v811_v40, %v812_v41  ;;  %v869_v47 = vsel %vm792_vm0, %v812_v41, 0.0  ;;  %v3985_v4 = vsel %vm792_vm0, 0.0, %v811_v40 }
 0x197   : > { %v2667_v36 = vpop.eup %2666  ;;  %2325 = vmatpush3.bf16.msra.mxu0 %v2322_v55  ;;  %v677_v38 = vadd.f32 1.0, %v2665_v35  ;;  %2670 = vrcp.f32 %v676_v29  ;;  %v814_v55 = vrot.slane %v722_v46, 7  ;;  %v921_v3 = vrot.slane %v3981_v2, 1 }
 0x198   : > { %v2669_v25 = vpop.eup %2668  ;;  %2327 = vmatprep.subr.bf16.mxu0 %v2326_v0  ;;  %v761_v53 = vadd.f32 1.0, %v2667_v36  ;;  %v815_v24 = vrot.slane %v723_v42, 7  ;;  %v923_v5 = vrot.slane %v869_v47, 1  ;;  %v920_v7 = vrot.slane %v3985_v4, 1 }
 0x199   : > { %1037 = vrot.lane.b32.xlu1 %v1003_v57, %s3088_s30  ;;  %930 = vrot.lane.b32.xlu0 %v892_v10, %s3087_s22  ;;  %v762_v56 = vadd.f32 1.0, %v2669_v25  ;;  %2672 = vrcp.f32 %v677_v38  ;;  %v1008_v57 = vsel %vm978_vm2, %v1005_v18, %v1007_v63  ;;  %v1010_v8 = vrot.slane %v3981_v2, 2 }
 0x19a   : > { %2674 = vrcp.f32 %v761_v53  ;;  %v1009_v9 = vrot.slane %v3985_v4, 2  ;;  %v4002_v10 = vsel %vm792_vm0, %v814_v55, %v815_v24  ;;  %v870_v11 = vsel %vm792_vm0, %v815_v24, 0.0 }
 0x19b   : > { %2329 = vmatpush3.bf16.msra.mxu0 %v2326_v0  ;;  %2676 = vrcp.f32 %v762_v56  ;;  %v924_v21 = vsel %vm889_vm1, %v921_v3, %v923_v5  ;;  %v922_v14 = vsel %vm889_vm1, %v920_v7, %v921_v3  ;;  %v1012_v26 = vrot.slane %v869_v47, 2 }
 0x19c   : > { %2331 = vmatprep.subr.bf16.mxu0 %v2330_v52  ;;  %v4008_v20 = vsel %vm792_vm0, 0.0, %v814_v55  ;;  %v926_v33 = vrot.slane %v4002_v10, 1  ;;  %v928_v34 = vrot.slane %v870_v11, 1  ;;  %v769_v29 = vstv %s553_s2 }
 0x19d   : > { %932 = vrot.lane.b32.xlu1 %v894_v6, %s3087_s22  ;;  %1019 = vrot.lane.b32.xlu0 %v981_v43, %s3088_s30  ;;  %v925_v13 = vrot.slane %v4008_v20, 1  ;;  %v1013_v31 = vsel %vm978_vm2, %v1010_v8, %v1012_v26  ;;  %v1014_v18 = vrot.slane %v4008_v20, 2  ;;  %v1017_v38 = vrot.slane %v870_v11, 2 }
 0x19e   : > { %v929_v30 = vsel %vm889_vm1, %v926_v33, %v928_v34 }
 0x19f   : > { %2333 = vmatpush3.bf16.msra.mxu0 %v2330_v52  ;;  %v927_v46 = vsel %vm889_vm1, %v925_v13, %v926_v33 }
 0x1a0   : > { %2335 = vmatprep.subr.bf16.mxu0 %v2334_v54 }
 0x1a1   : > { %952 = vrot.lane.b32.xlu1 %v919_v60, %s3087_s22  ;;  %1021 = vrot.lane.b32.xlu0 %v983_v62, %s3088_s30  ;;  %v2671_v15 = vpop.eup %2670 }
 0x1a2   : > { %v724_v0 = vmul.f32 %v2671_v15, %v3787_v16  ;;  %v1011_v16 = vsel %vm978_vm2, %v1009_v9, %v1010_v8 }
 0x1a3   : > { %2337 = vmatpush3.bf16.msra.mxu0 %v2334_v54  ;;  %v2673_v32 = vpop.eup %2672 }
 0x1a4   : > { %2339 = vmatprep.subr.bf16.mxu0 %v3958_v1  ;;  %v725_v35 = vmul.f32 %v2673_v32, %v3790_v17  ;;  %v817_v6 = vrot.slane %v724_v0, 7  ;;  %v2675_v43 = vpop.eup %2674  ;;  %v1015_v17 = vrot.slane %v4002_v10, 2 }
 0x1a5   : > { %1041 = vrot.lane.b32.xlu1 %v1008_v57, %s3088_s30  ;;  %1039 = vrot.lane.b32.xlu0 %v1006_v37, %s3088_s30  ;;  %v2677_v36 = vpop.eup %2676  ;;  %v767_v25 = vmul.f32 %v2675_v43, %v3809_v49 }
 0x1a6   : > { %v818_v40 = vrot.slane %v725_v35, 7  ;;  %v4022_v41 = vsel %vm792_vm0, 0.0, %v817_v6  ;;  %v768_v52 = vmul.f32 %v2677_v36, %v3812_v59  ;;  %v1018_v55 = vsel %vm978_vm2, %v1015_v17, %v1017_v38  ;;  %v1530_v36 = vld [vmem:[#allocation11 + $0xd0] sm:$0xff] }
 0x1a7   : > { %v770_v56 = vmul.f32 %v769_v29, %v767_v25  ;;  %v1016_v24 = vsel %vm978_vm2, %v1014_v18, %v1015_v17  ;;  %v1115_v57 = vrot.slane %v4022_v41, 1  ;;  %v1531_v18 = vld [vmem:[#allocation11 + $0xd8] sm:$0xff] }
 0x1a8   : > { %v4032_v42 = vsel %vm792_vm0, %v817_v6, %v818_v40  ;;  %v871_v53 = vsel %vm792_vm0, %v818_v40, 0.0  ;;  %v771_v62 = vmul.f32 %v769_v29, %v768_v52  ;;  %v4083_v38 = vpack.c.bf16 %v1531_v18, %v1530_v36 }
 0x1a9   : > { %956 = vrot.lane.b32.xlu1 %v924_v21, %s3087_s22  ;;  %954 = vrot.lane.b32.xlu0 %v922_v14, %s3087_s22  ;;  %v1116_v49 = vrot.slane %v4032_v42, 1  ;;  %v1118_v58 = vrot.slane %v871_v53, 1  ;;  %v1127_v51 = vrot.slane %v4032_v42, 2  ;;  %v1129_v60 = vrot.slane %v871_v53, 2  ;;  %v1533_v53 = vld [vmem:[#allocation11 + $0xe8] sm:$0xff] }
 0x1aa   : > { %v820_v59 = vrot.slane %v770_v56, 7  ;;  %v821_v54 = vrot.slane %v771_v62, 7  ;;  %v1126_v21 = vrot.slane %v4022_v41, 2 }
 0x1ab   : > { %v1119_v63 = vsel %vm889_vm1, %v1116_v49, %v1118_v58  ;;  %v1130_v47 = vsel %vm978_vm2, %v1127_v51, %v1129_v60  ;;  %v1117_v15 = vsel %vm889_vm1, %v1115_v57, %v1116_v49  ;;  %v1534_v49 = vld [vmem:[#allocation11 + $0xf0] sm:$0xff]  ;;  %v1535_v58 = vld [vmem:[#allocation11 + $0xf8] sm:$0xff] }
 0x1ac   : > { %v4042_v37 = vsel %vm792_vm0, 0.0, %v820_v59  ;;  %v4048_v3 = vsel %vm792_vm0, %v820_v59, %v821_v54  ;;  %v872_v5 = vsel %vm792_vm0, %v821_v54, 0.0  ;;  %v1128_v0 = vsel %vm978_vm2, %v1126_v21, %v1127_v51 }
 0x1ad   : > { %1045 = vrot.lane.b32.xlu1 %v1013_v31, %s3088_s30  ;;  %1043 = vrot.lane.b32.xlu0 %v1011_v16, %s3088_s30  ;;  %v1502_v7 = vrot.slane %v4048_v3, 1  ;;  %v1504_v8 = vrot.slane %v872_v5, 1  ;;  %v1513_v9 = vrot.slane %v4048_v3, 2  ;;  %v1515_v11 = vrot.slane %v872_v5, 2  ;;  %v1538_v5 = vld [vmem:[#allocation11 + $0x110] sm:$0xff] }
 0x1ae   : > { %v1501_v32 = vrot.slane %v4042_v37, 1  ;;  %v1512_v34 = vrot.slane %v4042_v37, 2 }
 0x1af   : > { %v1505_v14 = vsel %vm889_vm1, %v1502_v7, %v1504_v8  ;;  %v1516_v26 = vsel %vm978_vm2, %v1513_v9, %v1515_v11 }
 0x1b0   : > { %v1503_v33 = vsel %vm889_vm1, %v1501_v32, %v1502_v7  ;;  %v1514_v13 = vsel %vm978_vm2, %v1512_v34, %v1513_v9  ;;  %v1539_v7 = vld [vmem:[#allocation11 + $0x118] sm:$0xff] }
 0x1b1   : > { %960 = vrot.lane.b32.xlu1 %v929_v30, %s3087_s22  ;;  %958 = vrot.lane.b32.xlu0 %v927_v46, %s3087_s22  ;;  %v1532_v46 = vld [vmem:[#allocation11 + $0xe0] sm:$0xff]  ;;  %v4127_v21 = vpack.c.bf16 %v1539_v7, %v1538_v5 }
 0x1b2   : > { %v4097_v56 = vpack.c.bf16 %v1533_v53, %v1532_v46 }
 0x1b5   : > { %1049 = vrot.lane.b32.xlu1 %v1018_v55, %s3088_s30  ;;  %1047 = vrot.lane.b32.xlu0 %v1016_v24, %s3088_s30  ;;  %v1536_v55 = vld [vmem:[#allocation11 + $0x100] sm:$0xff]  ;;  %v1537_v24 = vld [vmem:[#allocation11 + $0x108] sm:$0xff] }
 0x1b6   : > { %v4119_v57 = vpack.c.bf16 %v1537_v24, %v1536_v55 }
 0x1b9   : > { %1122 = vrot.lane.b32.xlu1 %v1119_v63, %s3087_s22  ;;  %1120 = vrot.lane.b32.xlu0 %v1117_v15, %s3087_s22  ;;  %v4105_v63 = vpack.c.bf16 %v1535_v58, %v1534_v49 }
 0x1bd   : > { %1133 = vrot.lane.b32.xlu1 %v1130_v47, %s3088_s30  ;;  %1131 = vrot.lane.b32.xlu0 %v1128_v0, %s3088_s30 }
 0x1c1   : > { %1506 = vrot.lane.b32.xlu0 %v1503_v33, %s3087_s22  ;;  %1508 = vrot.lane.b32.xlu1 %v1505_v14, %s3087_s22  ;;  %s2892_s22 = scalar_lea.vmem %s2891_s18, 4096 }
 0x1c2   : > { %p2894_p6 = scmp.lt.s32.totalorder %s2892_s22, %s2886_s29 }
 0x1c4   : > { %p2895_p2 = por %p2894_p6, %p2893_p9 }
 0x1c5   : > { %1517 = vrot.lane.b32.xlu0 %v1514_v13, %s3088_s30  ;;  %1519 = vrot.lane.b32.xlu1 %v1516_v26, %s3088_s30 }
 0x1c6   : > { %p2896_p5 = pnand %p2895_p2, %p2889_p3 }
 0x1eb   : > { %v937_v35 = vpop.permute.xlu1 %936  ;;  %v935_v6 = vpop.permute.xlu0 %934 }
 0x1ec   : > { %v1070_v43 = vsel %vm1067_vm3, %v3827_v39, %v935_v6  ;;  %v1071_v40 = vsel %vm1067_vm3, %v3831_v19, %v937_v35 }
 0x1ef   : > { %v1024_v31 = vpop.permute.xlu1 %1023  ;;  %v939_v16 = vpop.permute.xlu0 %938 }
 0x1f0   : > { %v4075_v29 = vsel %vm1084_vm4, %v1070_v43, %v1024_v31  ;;  %v1072_v25 = vsel %vm1067_vm3, %v3839_v23, %v939_v16 }
 0x1f1   : > { %2170 = vmatprep.mubr.msk.f32.mxu1 %vm1154_vm5, %v4075_v29 }
 0x1f3   : > { %v1026_v30 = vpop.permute.xlu1 %1025  ;;  %v1028_v17 = vpop.permute.xlu0 %1027 }
 0x1f4   : > { %v4086_v39 = vsel %vm1084_vm4, %v1071_v40, %v1026_v30  ;;  %v4089_v52 = vsel %vm1084_vm4, %v1072_v25, %v1028_v17 }
 0x1f5   : > { %2171 = vmatmul.mubr.msk.f32.vlgmr.msra.gmra.mrb[0].mxu1 %vm1154_vm5, %v4086_v39 }
 0x1f6   : > { %2173 = vmatprep.mubr.msk.f32.mxu1 %vm1154_vm5, %v4089_v52  ;;  %2368 = vmatpush3.bf16.msra.mxu1 %v3958_v1 }
 0x1f7   : > { %v941_v19 = vpop.permute.xlu1 %940  ;;  %v943_v23 = vpop.permute.xlu0 %942  ;;  %2363 = vmatprep.subr.bf16.mxu1 %v4083_v38 }
 0x1f8   : > { %v1073_v51 = vsel %vm1067_vm3, %v3847_v61, %v941_v19  ;;  %v1074_v60 = vsel %vm1067_vm3, %v3859_v12, %v943_v23 }
 0x1fa   : > { %2369 = vmatpush3.bf16.msra.mxu1 %v4083_v38 }
 0x1fb   : > { %v1030_v62 = vpop.permute.xlu1 %1029  ;;  %v1032_v59 = vpop.permute.xlu0 %1031  ;;  %2364 = vmatprep.subr.bf16.mxu1 %v4097_v56 }
 0x1fc   : > { %v4108_v47 = vsel %vm1084_vm4, %v1073_v51, %v1030_v62  ;;  %v4111_v54 = vsel %vm1084_vm4, %v1074_v60, %v1032_v59 }
 0x1fd   : > { %2174 = vmatmul.mubr.msk.f32.gmra.mrb[2].mxu1 %vm1154_vm5, %v4108_v47 }
 0x1fe   : > { %2176 = vmatprep.mubr.msk.f32.mxu1 %vm1154_vm5, %v4111_v54  ;;  %2370 = vmatpush3.bf16.msra.mxu1 %v4097_v56 }
 0x1ff   : > { %v945_v61 = vpop.permute.xlu1 %944  ;;  %v947_v12 = vpop.permute.xlu0 %946  ;;  %2365 = vmatprep.subr.bf16.mxu1 %v4105_v63 }
 0x200   : > { %v1075_v8 = vsel %vm1067_vm3, %v3864_v22, %v945_v61  ;;  %v1076_v9 = vsel %vm1067_vm3, %v3896_v50, %v947_v12 }
 0x202   : > { %2371 = vmatpush3.bf16.msra.mxu1 %v4105_v63 }
 0x203   : > { %v1034_v11 = vpop.permute.xlu1 %1033  ;;  %v1036_v15 = vpop.permute.xlu0 %1035  ;;  %2366 = vmatprep.subr.bf16.mxu1 %v4119_v57 }
 0x204   : > { %v4130_v14 = vsel %vm1084_vm4, %v1075_v8, %v1034_v11  ;;  %v4133_v26 = vsel %vm1084_vm4, %v1076_v9, %v1036_v15 }
 0x205   : > { %2177 = vmatmul.mubr.msk.f32.gmra.mrb[4].mxu1 %vm1154_vm5, %v4130_v14 }
 0x206   : > { %2179 = vmatprep.mubr.msk.f32.mxu1 %vm1154_vm5, %v4133_v26  ;;  %2372 = vmatpush3.bf16.msra.mxu1 %v4119_v57 }
 0x207   : > { %v949_v22 = vpop.permute.xlu1 %948  ;;  %v951_v50 = vpop.permute.xlu0 %950  ;;  %2367 = vmatprep.subr.bf16.mxu1 %v4127_v21 }
 0x208   : > { %v1077_v0 = vsel %vm1067_vm3, %v3893_v48, %v949_v22 }
 0x20a   : > { %2373 = vmatpush3.bf16.msra.mxu1 %v4127_v21 }
 0x20b   : > { %v1038_v32 = vpop.permute.xlu1 %1037  ;;  %v931_v33 = vpop.permute.xlu0 %930 }
 0x20c   : > { %v4145_v34 = vsel %vm1084_vm4, %v1077_v0, %v1038_v32  ;;  %v1068_v13 = vsel %vm1067_vm3, %v3936_v45, %v931_v33  ;;  %v1078_v45 = vsel %vm1067_vm3, %v3924_v28, %v951_v50 }
 0x20d   : > { %2180 = vmatmul.mubr.msk.f32.gmra.mrb[6].mxu1 %vm1154_vm5, %v4145_v34 }
 0x20f   : > { %v933_v35 = vpop.permute.xlu1 %932  ;;  %v1020_v6 = vpop.permute.xlu0 %1019 }
 0x210   : > { %v1085_v43 = vsel %vm1084_vm4, %v1068_v13, %v1020_v6  ;;  %v1069_v48 = vsel %vm1067_vm3, %v3933_v44, %v933_v35 }
 0x211   : > { %2218 = vmatprep.mubr.msk.f32.mxu0 %vm1154_vm5, %v1085_v43 }
 0x213   : > { %v953_v31 = vpop.permute.xlu1 %952  ;;  %v1022_v16 = vpop.permute.xlu0 %1021 }
 0x214   : > { %v1086_v36 = vsel %vm1084_vm4, %v1069_v48, %v1022_v16  ;;  %v1079_v18 = vsel %vm1067_vm3, %v3921_v27, %v953_v31 }
 0x215   : > { %2219 = vmatmul.mubr.msk.f32.vlgmr.msra.gmra.mrb[0].mxu0 %vm1154_vm5, %v1086_v36 }
 0x216   : > { %2221 = vmatprep.mubr.msk.f32.mxu0 %vm1154_vm5, %v4075_v29  ;;  %2341 = vmatpush3.bf16.msra.mxu0 %v3958_v1 }
 0x217   : > { %v1042_v40 = vpop.permute.xlu1 %1041  ;;  %v1040_v25 = vpop.permute.xlu0 %1039  ;;  %2343 = vmatprep.subr.bf16.mxu0 %v4083_v38 }
 0x218   : > { %v4166_v44 = vsel %vm1084_vm4, %v1079_v18, %v1042_v40  ;;  %v4169_v30 = vsel %vm1084_vm4, %v1078_v45, %v1040_v25 }
 0x219   : > { %2182 = vmatprep.mubr.msk.f32.mxu1 %vm1154_vm5, %v4169_v30  ;;  %2222 = vmatmul.mubr.msk.f32.gmra.mrb[2].mxu0 %vm1154_vm5, %v4086_v39 }
 0x21a   : > { %2183 = vmatmul.mubr.msk.f32.gmra.mrb[8].mxu1 %vm1154_vm5, %v4166_v44  ;;  %2224 = vmatprep.mubr.msk.f32.mxu0 %vm1154_vm5, %v4089_v52 }
 0x21b   : > { %v957_v27 = vpop.permute.xlu1 %956  ;;  %v955_v28 = vpop.permute.xlu0 %954  ;;  %2345 = vmatpush3.bf16.msra.mxu0 %v4083_v38 }
 0x21c   : > { %2347 = vmatprep.subr.bf16.mxu0 %v4097_v56  ;;  %v1081_v1 = vsel %vm1067_vm3, %v3981_v2, %v957_v27  ;;  %v1080_v29 = vsel %vm1067_vm3, %v3985_v4, %v955_v28  ;;  %v4270_v28 = vld [vmem:[%s483_s20] ss:$0 sm:$0xff]  ;;  %s4574_s20 = smov %s4573_s26 }
 0x21d   : > { %2225 = vmatmul.mubr.msk.f32.gmra.mrb[4].mxu0 %vm1154_vm5, %v4108_v47 }
 0x21e   : > { %2227 = vmatprep.mubr.msk.f32.mxu0 %vm1154_vm5, %v4111_v54 }
 0x21f   : > { %v1046_v17 = vpop.permute.xlu1 %1045  ;;  %v1044_v39 = vpop.permute.xlu0 %1043  ;;  %2349 = vmatpush3.bf16.msra.mxu0 %v4097_v56 }
 0x220   : > { %v1098_v38 = vsel %vm1084_vm4, %v1081_v1, %v1046_v17  ;;  %v1097_v46 = vsel %vm1084_vm4, %v1080_v29, %v1044_v39  ;;  %2351 = vmatprep.subr.bf16.mxu0 %v4105_v63 }
 0x221   : > { %2185 = vmatprep.mubr.msk.f32.mxu1 %vm1154_vm5, %v1097_v46  ;;  %2228 = vmatmul.mubr.msk.f32.gmra.mrb[6].mxu0 %vm1154_vm5, %v4130_v14 }
 0x222   : > { %2186 = vmatmul.mubr.msk.f32.gmra.mrb[10].mxu1 %vm1154_vm5, %v1098_v38  ;;  %2230 = vmatprep.mubr.msk.f32.mxu0 %vm1154_vm5, %v4133_v26 }
 0x223   : > { %v961_v2 = vpop.permute.xlu1 %960  ;;  %v959_v4 = vpop.permute.xlu0 %958  ;;  %2353 = vmatpush3.bf16.msra.mxu0 %v4105_v63 }
 0x224   : > { %2355 = vmatprep.subr.bf16.mxu0 %v4119_v57  ;;  %v1083_v53 = vsel %vm1067_vm3, %v4002_v10, %v961_v2  ;;  %v1082_v19 = vsel %vm1067_vm3, %v4008_v20, %v959_v4 }
 0x225   : > { %2231 = vmatmul.mubr.msk.f32.gmra.mrb[8].mxu0 %vm1154_vm5, %v4145_v34 }
 0x226   : > { %2233 = vmatprep.mubr.msk.f32.mxu0 %vm1154_vm5, %v4169_v30 }
 0x227   : > { %v1050_v23 = vpop.permute.xlu1 %1049  ;;  %v1048_v56 = vpop.permute.xlu0 %1047  ;;  %2357 = vmatpush3.bf16.msra.mxu0 %v4119_v57 }
 0x228   : > { %v1100_v49 = vsel %vm1084_vm4, %v1083_v53, %v1050_v23  ;;  %v1099_v58 = vsel %vm1084_vm4, %v1082_v19, %v1048_v56  ;;  %2359 = vmatprep.subr.bf16.mxu0 %v4127_v21 }
 0x229   : > { %2188 = vmatprep.mubr.msk.f32.mxu1 %vm1154_vm5, %v1099_v58  ;;  %2234 = vmatmul.mubr.msk.f32.gmra.mrb[10].mxu0 %vm1154_vm5, %v4166_v44 }
 0x22a   : > { %2189 = vmatmul.mubr.msk.f32.gmra.mrb[12].mxu1 %vm1154_vm5, %v1100_v49  ;;  %2236 = vmatprep.mubr.msk.f32.mxu0 %vm1154_vm5, %v1097_v46 }
 0x22b   : > { %v1123_v10 = vpop.permute.xlu1 %1122  ;;  %v1121_v20 = vpop.permute.xlu0 %1120  ;;  %2361 = vmatpush3.bf16.msra.mxu0 %v4127_v21 }
 0x22c   : > { %v1138_v51 = vsel %vm1067_vm3, %v4032_v42, %v1123_v10  ;;  %v1137_v60 = vsel %vm1067_vm3, %v4022_v41, %v1121_v20 }
 0x22d   : > { %2237 = vmatmul.mubr.msk.f32.gmra.mrb[12].mxu0 %vm1154_vm5, %v1098_v38 }
 0x22e   : > { %2239 = vmatprep.mubr.msk.f32.mxu0 %vm1154_vm5, %v1099_v58 }
 0x22f   : > { %v1134_v62 = vpop.permute.xlu1 %1133  ;;  %v1132_v59 = vpop.permute.xlu0 %1131 }
 0x230   : > { %v1140_v63 = vsel %vm1084_vm4, %v1138_v51, %v1134_v62  ;;  %v1139_v55 = vsel %vm1084_vm4, %v1137_v60, %v1132_v59 }
 0x231   : > { %2191 = vmatprep.mubr.msk.f32.mxu1 %vm1154_vm5, %v1139_v55  ;;  %2240 = vmatmul.mubr.msk.f32.gmra.mrb[14].mxu0 %vm1154_vm5, %v1100_v49 }
 0x232   : > { %2192 = vmatmul.mubr.msk.f32.gmra.mrb[14].mxu1 %vm1154_vm5, %v1140_v63  ;;  %2266 = vmatprep.mubr.msk.f32.mxu0 %vm1154_vm5, %v4089_v52 }
 0x233   : > { %2278 = vmatprep.mubr.msk.f32.mxu1 %vm1154_vm5, %v1097_v46  ;;  %v1507_v42 = vpop.permute.xlu0 %1506  ;;  %v1509_v41 = vpop.permute.xlu1 %1508 }
 0x234   : > { %v1523_v24 = vsel %vm1067_vm3, %v4042_v37, %v1507_v42 }
 0x235   : > { %2267 = vmatmul.mubr.msk.f32.vlgmr.msra.gmra.mrb[0].mxu0 %vm1154_vm5, %v4108_v47 }
 0x236   : > { %2269 = vmatprep.mubr.msk.f32.mxu0 %vm1154_vm5, %v4111_v54  ;;  %2279 = vmatmul.mubr.msk.f32.vlgmr.msra.gmra.mrb[16].mxu1 %vm1154_vm5, %v1098_v38  ;;  %v1524_v54 = vsel %vm1067_vm3, %v4048_v3, %v1509_v41 }
 0x237   : > { %2281 = vmatprep.mubr.msk.f32.mxu1 %vm1154_vm5, %v1099_v58  ;;  %v1518_v52 = vpop.permute.xlu0 %1517  ;;  %v1520_v37 = vpop.permute.xlu1 %1519 }
 0x238   : > { %v1525_v47 = vsel %vm1084_vm4, %v1523_v24, %v1518_v52  ;;  %v1526_v61 = vsel %vm1084_vm4, %v1524_v54, %v1520_v37 }
 0x239   : > { %2270 = vmatmul.mubr.msk.f32.gmra.mrb[2].mxu0 %vm1154_vm5, %v4130_v14 }
 0x23a   : > { %2272 = vmatprep.mubr.msk.f32.mxu0 %vm1154_vm5, %v4133_v26  ;;  %2282 = vmatmul.mubr.msk.f32.gmra.mrb[18].mxu1 %vm1154_vm5, %v1100_v49 }
 0x23b   : > { %2284 = vmatprep.mubr.msk.f32.mxu1 %vm1154_vm5, %v1139_v55 }
 0x23d   : > { %2273 = vmatmul.mubr.msk.f32.gmra.mrb[4].mxu0 %vm1154_vm5, %v4145_v34 }
 0x23e   : > { %2275 = vmatprep.mubr.msk.f32.mxu0 %vm1154_vm5, %v4169_v30  ;;  %2285 = vmatmul.mubr.msk.f32.gmra.mrb[20].mxu1 %vm1154_vm5, %v1140_v63 }
 0x23f   : > { %2287 = vmatprep.mubr.msk.f32.mxu1 %vm1154_vm5, %v1525_v47 }
 0x241   : > { %2276 = vmatmul.mubr.msk.f32.gmra.mrb[6].mxu0 %vm1154_vm5, %v4166_v44 }
 0x242   : > { %2288 = vmatmul.mubr.msk.f32.gmra.mrb[22].mxu1 %vm1154_vm5, %v1526_v61 }
 0x2c8   : > { %v2172_v12 = vpop.f32.mrb[0].mxu1 }
 0x2c9   : > { %v1269_v57 = vpop.f32.mrb[1].mxu1 }
 0x2d0   : > { %v2175_v5 = vpop.f32.mrb[2].mxu1 }
 0x2d1   : > { %v1279_v7 = vpop.f32.mrb[3].mxu1 }
 0x2d8   : > { %v2178_v3 = vpop.f32.mrb[4].mxu1 }
 0x2d9   : > { %v4260_v8 = vpop.f32.mrb[5].mxu1 }
 0x2e0   : > { %v4262_v9 = vpop.f32.mrb[6].mxu1 }
 0x2e1   : > { %v4264_v11 = vpop.f32.mrb[7].mxu1 }
 0x2ed   : > { %v2184_v15 = vpop.f32.mrb[8].mxu1 }
 0x2ee   : > { %v1309_v21 = vpop.f32.mrb[9].mxu1 }
 0x2f5   : > { %v2187_v14 = vpop.f32.mrb[10].mxu1 }
 0x2f6   : > { %v1319_v26 = vpop.f32.mrb[11].mxu1 }
 0x2f8   : > { %v2232_v22 = vpop.f32.mrb[8].mxu0 }
 0x2f9   : > { %v1466_v50 = vadd.f32 %v2232_v22, %v2184_v15  ;;  %v1460_v0 = vpop.f32.mrb[9].mxu0 }
 0x2fa   : > { %v1461_v32 = vadd.f32 %v1460_v0, %v1309_v21 }
 0x2fc   : > { %v2235_v33 = vpop.f32.mrb[10].mxu0 }
 0x2fd   : > { %v1476_v34 = vadd.f32 %v2235_v33, %v2187_v14  ;;  %v2190_v13 = vpop.f32.mrb[12].mxu1  ;;  %v1470_v35 = vpop.f32.mrb[11].mxu0 }
 0x2fe   : > { %v1471_v6 = vadd.f32 %v1470_v35, %v1319_v26  ;;  %v1329_v43 = vpop.f32.mrb[13].mxu1 }
 0x300   : > { %v2238_v48 = vpop.f32.mrb[12].mxu0 }
 0x301   : > { %v1486_v31 = vadd.f32 %v2238_v48, %v2190_v13  ;;  %v1480_v16 = vpop.f32.mrb[13].mxu0 }
 0x302   : > { %v1481_v36 = vadd.f32 %v1480_v16, %v1329_v43 }
 0x304   : > { %v2241_v45 = vpop.f32.mrb[14].mxu0 }
 0x305   : > { %v2193_v18 = vpop.f32.mrb[14].mxu1  ;;  %v1490_v40 = vpop.f32.mrb[15].mxu0 }
 0x306   : > { %v1496_v25 = vadd.f32 %v2241_v45, %v2193_v18  ;;  %v1339_v44 = vpop.f32.mrb[15].mxu1 }
 0x307   : > { %v4266_v30 = vadd.f32 %v1490_v40, %v1339_v44 }
 0x308   : > { %v2268_v27 = vpop.f32.mrb[0].mxu0 }
 0x309   : > { %v2374_v1 = vadd.f32 %v2268_v27, %v2172_v12  ;;  %v1612_v29 = vpop.f32.mrb[1].mxu0  ;;  %v2280_v17 = vpop.f32.mrb[16].mxu1 }
 0x30a   : > { %v2375_v39 = vadd.f32 %v1612_v29, %v1269_v57  ;;  %v1700_v38 = vadd.f32 %v2280_v17, %v1466_v50  ;;  %v1652_v46 = vpop.f32.mrb[17].mxu1 }
 0x30b   : > { %v1715_v2 = vadd.f32 %v2374_v1, %v4270_v28  ;;  %v1699_v4 = vadd.f32 %v1652_v46, %v1461_v32 }
 0x30c   : > { %v1714_v53 = vadd.f32 %v2375_v39, %v4270_v28  ;;  %v1723_v19 = vadd.f32 %v4270_v28, %v1700_v38  ;;  %v2271_v23 = vpop.f32.mrb[2].mxu0 }
 0x30d   : > { %1731 = vst.msk [vmem:[%s4276_s24 + $0x8] sm:$0xff] %vm1067_vm3, %v1715_v2  ;;  %v1722_v56 = vadd.f32 %v4270_v28, %v1699_v4  ;;  %v2376_v49 = vadd.f32 %v2271_v23, %v2175_v5  ;;  %v1622_v58 = vpop.f32.mrb[3].mxu0  ;;  %v2283_v10 = vpop.f32.mrb[18].mxu1 }
 0x30e   : > { %1730 = vst.msk [vmem:[%s4276_s24] sm:$0xff] %vm1067_vm3, %v1714_v53  ;;  %1739 = vst.msk [vmem:[%s4276_s24 + $0x48] sm:$0xff] %vm1067_vm3, %v1723_v19  ;;  %v2377_v20 = vadd.f32 %v1622_v58, %v1279_v7  ;;  %v1702_v51 = vadd.f32 %v2283_v10, %v1476_v34  ;;  %v1662_v60 = vpop.f32.mrb[19].mxu1 }
 0x30f   : > { %1738 = vst.msk [vmem:[%s4276_s24 + $0x40] sm:$0xff] %vm1067_vm3, %v1722_v56  ;;  %v1717_v62 = vadd.f32 %v2376_v49, %v4270_v28  ;;  %v1701_v59 = vadd.f32 %v1662_v60, %v1471_v6 }
 0x310   : > { %v1716_v63 = vadd.f32 %v2377_v20, %v4270_v28  ;;  %v1725_v55 = vadd.f32 %v4270_v28, %v1702_v51  ;;  %v2274_v42 = vpop.f32.mrb[4].mxu0 }
 0x311   : > { %1733 = vst.msk [vmem:[%s4276_s24 + $0x18] sm:$0xff] %vm1067_vm3, %v1717_v62  ;;  %v1724_v41 = vadd.f32 %v4270_v28, %v1701_v59  ;;  %v2378_v24 = vadd.f32 %v2274_v42, %v2178_v3  ;;  %v1632_v52 = vpop.f32.mrb[5].mxu0  ;;  %v2286_v47 = vpop.f32.mrb[20].mxu1 }
 0x312   : > { %1732 = vst.msk [vmem:[%s4276_s24 + $0x10] sm:$0xff] %vm1067_vm3, %v1716_v63  ;;  %1741 = vst.msk [vmem:[%s4276_s24 + $0x58] sm:$0xff] %vm1067_vm3, %v1725_v55  ;;  %v2379_v54 = vadd.f32 %v1632_v52, %v4260_v8  ;;  %v1704_v37 = vadd.f32 %v2286_v47, %v1486_v31  ;;  %v1672_v61 = vpop.f32.mrb[21].mxu1 }
 0x313   : > { %1740 = vst.msk [vmem:[%s4276_s24 + $0x50] sm:$0xff] %vm1067_vm3, %v1724_v41  ;;  %v1719_v12 = vadd.f32 %v2378_v24, %v4270_v28  ;;  %v1703_v57 = vadd.f32 %v1672_v61, %v1481_v36 }
 0x314   : > { %v1718_v5 = vadd.f32 %v2379_v54, %v4270_v28  ;;  %v1727_v7 = vadd.f32 %v4270_v28, %v1704_v37  ;;  %v2277_v3 = vpop.f32.mrb[6].mxu0 }
 0x315   : > { %1735 = vst.msk [vmem:[%s4276_s24 + $0x28] sm:$0xff] %vm1067_vm3, %v1719_v12  ;;  %v1726_v8 = vadd.f32 %v4270_v28, %v1703_v57  ;;  %v2380_v15 = vadd.f32 %v2277_v3, %v4262_v9  ;;  %v1642_v21 = vpop.f32.mrb[7].mxu0  ;;  %v2289_v14 = vpop.f32.mrb[22].mxu1 }
 0x316   : > { %1734 = vst.msk [vmem:[%s4276_s24 + $0x20] sm:$0xff] %vm1067_vm3, %v1718_v5  ;;  %1743 = vst.msk [vmem:[%s4276_s24 + $0x68] sm:$0xff] %vm1067_vm3, %v1727_v7  ;;  %v2381_v26 = vadd.f32 %v1642_v21, %v4264_v11  ;;  %v1706_v22 = vadd.f32 %v2289_v14, %v1496_v25  ;;  %v1682_v50 = vpop.f32.mrb[23].mxu1 }
 0x317   : > { %1742 = vst.msk [vmem:[%s4276_s24 + $0x60] sm:$0xff] %vm1067_vm3, %v1726_v8  ;;  %v1721_v9 = vadd.f32 %v2380_v15, %v4270_v28  ;;  %v1705_v0 = vadd.f32 %v1682_v50, %v4266_v30 }
 0x318   : > { %v1720_v32 = vadd.f32 %v2381_v26, %v4270_v28  ;;  %v1729_v33 = vadd.f32 %v4270_v28, %v1706_v22 }
 0x319   : > { %1737 = vst.msk [vmem:[%s4276_s24 + $0x38] sm:$0xff] %vm1067_vm3, %v1721_v9  ;;  %v1728_v11 = vadd.f32 %v4270_v28, %v1705_v0 }
 0x31a   : > { %1736 = vst.msk [vmem:[%s4276_s24 + $0x30] sm:$0xff] %vm1067_vm3, %v1720_v32  ;;  %1745 = vst.msk [vmem:[%s4276_s24 + $0x78] sm:$0xff] %vm1067_vm3, %v1729_v33 }
 0x31b   : > { %1744 = vst.msk [vmem:[%s4276_s24 + $0x70] sm:$0xff] %vm1067_vm3, %v1728_v11 }
 0x31c   : > { %2899 = shalt.err (!%p2896_p5)
}
 0x31d   : > { %s2900_s9 = scalar_lea.hbm %s4324_s12, 2048  ;;  %s2904_s10 = scalar_lea.hbm %s4574_s20, 8192 }
 0x31e   : > { %p2901_p0 = scmp.ne.s32.totalorder %s4324_s12, %s2900_s9  ;;  %p2905_p7 = scmp.lt.u32.totalorder %s4324_s12, %s4574_s20 }
 0x31f   : > { %p2906_p10 = scmp.lt.u32.totalorder %s2904_s10, %s2900_s9  ;;  %p2908_p4 = scmp.lt.u32.totalorder %s2900_s9, %s4324_s12 }
 0x320   : > { %p2902_p8 = pnand %p2901_p0, %p4575_p1 }
 0x321   : > { %p2907_p11 = por %p2906_p10, %p2905_p7 }
 0x322   : > { %p2903_p13 = pneg %p2902_p8 }
 0x323   : > { %p2909_p12 = por %p2908_p4, %p2907_p11 }
 0x325   : > { %p2910_p3 = pnand %p2909_p12, %p2903_p13 }
 0x327   : > { %2913 = shalt.err (!%p2910_p3)
}
 0x328   : > { %s3090_s0 = smov 128   ;;  %s3091_s24 = smov 8  }
 0x329   : > { %2422 = dma.vmem_to_hbm [thread:$0]  (%p4575_p1), %s4326_s28, 2048, %s4324_s12, %s4339_s16, %s3090_s0, %s3090_s0, %s3091_s24  }
 0x32a PF: > { %s4576_s3 = sld [smem:[#allocation28_spill]]  ;;  %s4577_s4 = sld [smem:[#allocation37_spill]] }
 0x32b   : > { %p2454_p9 = scmp.ge.s32.totalorder %s3076_s17, 2 }
 0x330   : > { %s1778_s13 = sand.u32 1, %s4576_s3   ;;  %p4578_p6 = scmp.ne.s32.totalorder %s4577_s4, 0 }
 0x331   : > { %s1779_s25 = scalar_lea.sflag [#allocation4], %s1778_s13 }
 0x332   : > { %p2448_p2 = pnand %p2454_p9, %p4578_p6 }
 0x334   : > { %3007 = dma.done.wait (!%p2448_p2), %s1779_s25, 2048  }
 0x335   : > { %3009 = vsyncadd (!%p2448_p2), %s1779_s25, 4294965248  ;;  %s30_s17 = sadd.s32 1, %s3076_s17   ;;  %s4580_s24 = sld [smem:[#allocation22_spill]] }
 0x336   : > { %p4368_p5 = scmp.ge.s32.totalorder %s30_s17, 6   ;;  %s4581_s25 = sld [smem:[#allocation23_spill]] }
 0x337   : > { %s4582_s26 = sld [smem:[#allocation41_spill]]  ;;  %s4583_s27 = sld [smem:[#allocation25_spill]] }
 0x338   : > { %s4584_s28 = sld [smem:[#allocation26_spill]]  ;;  %s4585_s1 = sld [smem:[#allocation27_spill]] }
 0x339   : > { %s4586_s9 = sld [smem:[#allocation39_spill]]  ;;  %s4587_s7 = sld [smem:[#allocation29_spill]] }
 0x33a   : > { %s4588_s12 = sld [smem:[#allocation38_spill]]  ;;  %s4589_s13 = sld [smem:[#allocation32_spill]] }
 0x33b   : > { %s4590_s16 = sld [smem:[#allocation33_spill]]  ;;  %s4591_s15 = sld [smem:[#allocation34_spill]] }
 0x33c   : > { %s4592_s18 = sld [smem:[#allocation35_spill]]  ;;  %s4593_s29 = smov %s4615_s14 }
 0x33d   : > { %s4594_s30 = smov %s3040_s8  ;;  %s4596_s10 = smov %s3052_s11 }
 0x33e   : > { %s4595_s8 = smov %s4585_s1  ;;  %29 = sbr.rel (!%p4368_p5) target bundleno = 26 (0x1a), region = 158 }
 0x33f   : > { %s4597_s11 = smov %s4587_s7 }
 0x341   : > { %s4598_s14 = smov %s4590_s16 }
 0x342   : > { %s4599_s16 = smov %s4592_s18 }
 0x345   :  { %1784 = vsyncpa [#allocation3], 1 }
 0x346   :  { %1786 = vsyncpa [#allocation3 + $0x1], 1 }
 0x347   :  { %1787 = vsyncpa [#allocation6], 1 }
 0x348   :  { %1789 = vsyncpa [#allocation6 + $0x1], 1 }
 0x349   :  { %1790 = vsyncpa [#allocation9], 1 }
 0x34a   :  { %1792 = vsyncpa [#allocation9 + $0x1], 1 }
 0x34b   :  { %1793 = vsyncpa [#allocation12], 1 }
 0x34c   :  { %1794 = vsyncpa [#allocation4], 1 }
 0x34d   :  { %1796 = vsyncpa [#allocation4 + $0x1], 1 }

// kernel: resnet_block_forward.7
= control target key start
LH: loop header
LB: loop body
LE: loop exit
PB: predicated region body
PF: predicated region fallthrough
CT: control target
= control target key end

     0   :  { %s4674_s0 = inlined_call_operand.hbm [shape: f32[2,16,16,32], index: 0, kind: input, shape index: {}, may-alias: {0,1,2}]   ;;  %s4675_s1 = inlined_call_operand.hbm [shape: f32[2,16,16,32], index: 1, kind: input, shape index: {}, may-alias: {0,1,2}]   ;;  %s4676_s2 = inlined_call_operand.hbm [shape: f32[2,16,16,32], index: 2, kind: input, shape index: {}, may-alias: {0,1,2}]   ;;  %s4677_s3 = inlined_call_operand.hbm [shape: f32[2,1,32], index: 3, kind: input, shape index: {}]   ;;  %s4678_s4 = inlined_call_operand.hbm [shape: f32[2,1,32], index: 4, kind: input, shape index: {}]   ;;  %s4679_s5 = inlined_call_operand.hbm [shape: f32[3,96,32], index: 5, kind: input, shape index: {}]   ;;  %s4680_s6 = inlined_call_operand.hbm [shape: f32[2,1,32], index: 6, kind: input, shape index: {}]   ;;  %s4681_s7 = inlined_call_operand.hbm [shape: f32[2,16,16,32], index: 7, kind: input, shape index: {}]   ;;  %s4682_s8 = inlined_call_operand.hbm [shape: f32[2,16,16,32], index: 8, kind: output, shape index: {}]  }
   0x1   :  { %4745 = sst [smem:[#allocation52_spill]] %s4674_s0 }
   0x2   :  { %4746 = sst [smem:[#allocation53_spill]] %s4675_s1 }
   0x3   :  { %4747 = sst [smem:[#allocation54_spill]] %s4676_s2 }
   0x4   :  { %4748 = sst [smem:[#allocation55_spill]] %s4677_s3 }
   0x5   :  { %4749 = sst [smem:[#allocation56_spill]] %s4678_s4 }
   0x6   :  { %4750 = sst [smem:[#allocation57_spill]] %s4679_s5 }
   0x7   :  { %4751 = sst [smem:[#allocation58_spill]] %s4680_s6 }
   0x8   :  { %4752 = sst [smem:[#allocation59_spill]] %s4681_s7 }
   0x9   :  { %4753 = sst [smem:[#allocation60_spill]] %s4682_s8 }
   0xa   :  { %13 = vsyncpa [#allocation3], 0 }
   0xb   :  { %15 = vsyncpa [#allocation3 + $0x1], 0 }
   0xc   :  { %16 = vsyncpa [#allocation6], 0 }
   0xd   :  { %18 = vsyncpa [#allocation6 + $0x1], 0 }
   0xe   :  { %19 = vsyncpa [#allocation9], 0 }
   0xf   :  { %21 = vsyncpa [#allocation9 + $0x1], 0 }
  0x10   :  { %22 = vsyncpa [#allocation12], 0 }
  0x11   :  { %23 = vsyncpa [#allocation4], 0 }
  0x12   :  { %25 = vsyncpa [#allocation4 + $0x1], 0  ;;  %s3309_s27 = smov 0   ;;  %s3311_s28 = smov 0  }
  0x13   :  { %s3313_s29 = smov 0   ;;  %s3315_s30 = smov 0  }
  0x14   :  { %s3317_s9 = smov 0   ;;  %s3319_s10 = smov 0  }
  0x15   :  { %s3321_s11 = smov 0   ;;  %s3323_s12 = smov 0  }
  0x16   :  { %s3325_s13 = smov 0   ;;  %s3327_s14 = smov 0  }
  0x17   :  { %s3329_s15 = smov 0   ;;  %s3331_s16 = smov 0  }
  0x18   :  { %s3333_s17 = smov 0   ;;  %s3335_s18 = smov 0  }
  0x19   :  { %s3337_s19 = smov 0   ;;  %s3339_s20 = smov 0  }
  0x1a   :  { %s3341_s21 = smov 0  }
  0x1b LB: > { %4754 = sst [smem:[#allocation24_spill]] %s3183_s27  ;;  %s40_s22 = sadd.s32 1, %s3239_s19  ;;  %s3247_s21 = sphi %s3341_s21, %s31_s21   ;;  %s3243_s20 = sphi %s3339_s20, %s4880_s20   ;;  %s3239_s19 = sphi %s3337_s19, %s4879_s19   ;;  %s3235_s18 = sphi %s3335_s18, %s4878_s18   ;;  %s3231_s17 = sphi %s3333_s17, %s4877_s17   ;;  %s3227_s16 = sphi %s3331_s16, %s4876_s16   ;;  %s3223_s15 = sphi %s3329_s15, %s4884_s15   ;;  %s3219_s14 = sphi %s3327_s14, %s4883_s14   ;;  %s3215_s13 = sphi %s3325_s13, %s4874_s13   ;;  %s3211_s12 = sphi %s3323_s12, %s4882_s12   ;;  %s3207_s11 = sphi %s3321_s11, %s4872_s11   ;;  %s3203_s10 = sphi %s3319_s10, %s4871_s10   ;;  %s3199_s9 = sphi %s3317_s9, %s4870_s9   ;;  %s3195_s30 = sphi %s3315_s30, %s4869_s30   ;;  %s3191_s29 = sphi %s3313_s29, %s4868_s29   ;;  %s3187_s28 = sphi %s3311_s28, %s4867_s28   ;;  %s3183_s27 = sphi %s3309_s27, %s4866_s27  }
  0x1c   : > { %4755 = sst [smem:[#allocation25_spill]] %s3187_s28  ;;  %s43_s23 = sadd.s32 1, %s3243_s20 }
  0x1d   : > { %4756 = sst [smem:[#allocation26_spill]] %s3191_s29  ;;  %p41_p0 = scmp.ge.s32.totalorder %s40_s22, 2 }
  0x1e   : > { %4757 = sst [smem:[#allocation27_spill]] %s3195_s30  ;;  %p4708_p1 = scmp.eq.s32.totalorder %s3247_s21, 0 }
  0x1f   : > { %4758 = sst [smem:[#allocation28_spill]] %s3199_s9  ;;  %s2093_s24 = sshll.u32 %s3239_s19, 3 }
  0x20   : > { %4759 = sst [smem:[#allocation29_spill]] %s3203_s10  ;;  %s88_s25 = sadd.s32 1, %s3215_s13 }
  0x21   : > { %4760 = sst [smem:[#allocation30_spill]] %s3207_s11  ;;  %s4886_s22 = smov (%p41_p0, %s40_s22), 0 }
  0x22   : > { %4761 = sst [smem:[#allocation31_spill]] %s3211_s12  ;;  %s4888_s23 = smov (!%p41_p0, %s43_s23), %s3243_s20 }
  0x23   : > { %4762 = sst [smem:[#allocation32_spill]] %s3215_s13  ;;  %s2094_s8 = sadd.s32 4294967295, %s2093_s24 }
  0x24   : > { %4763 = sst [smem:[#allocation33_spill]] %s3219_s14  ;;  %p45_p2 = scmp.ge.s32.totalorder %s4888_s23, 2 }
  0x25   : > { %4764 = sst [smem:[#allocation34_spill]] %s3227_s16  ;;  %p77_p3 = scmp.gt.s32.totalorder %s2094_s8, 0 }
  0x26   : > { %4765 = sst [smem:[#allocation35_spill]] %s3231_s17  ;;  %p95_p4 = scmp.ne.s32.totalorder %s3215_s13, %s3211_s12 }
  0x27   : > { %4766 = sst [smem:[#allocation36_spill]] %s3235_s18  ;;  %s2095_s18 = sshll.u32 %s4886_s22, 3 }
  0x28   : > { %4767 = sst [smem:[#allocation37_spill]] %s3239_s19  ;;  %s4890_s23 = smov (%p45_p2, %s4888_s23), 0 }
  0x29   : > { %4768 = sst [smem:[#allocation38_spill]] %s3243_s20  ;;  %s4892_s8 = smov (!%p77_p3, %s2094_s8), 0 }
  0x2a   : > { %4769 = sst [smem:[#allocation39_spill]] %s3247_s21  ;;  %s3411_s17 = ssub.s32 %s3243_s20, %s4890_s23 }
  0x2b   : > { %4770 = sst [smem:[#allocation40_spill]] %s4886_s22  ;;  %s2096_s5 = sadd.s32 4294967295, %s2095_s18 }
  0x2c   : > { %4771 = sst [smem:[#allocation41_spill]] %s4890_s23  ;;  %p81_p5 = scmp.gt.s32.totalorder %s2096_s5, 0 }
  0x2d   : > { %p3415_p6 = por %p95_p4, %p4708_p1  ;;  %s3421_s6 = sadd.s32 8, %s2093_s24 }
  0x2e   : > { %s4894_s5 = smov (!%p81_p5, %s2096_s5), 0  ;;  %s3424_s4 = sadd.s32 8, %s2095_s18 }
  0x2f   : > { %4773 = sst [smem:[#allocation42_spill]] %s3424_s4  ;;  %s84_s23 = ssub.s32 %s4892_s8, %s4894_s5 }
  0x30   : > { %s85_s3 = sor.u32 %s84_s23, %s3411_s17  ;;  %p4699_p11 = scmp.lt.s32.totalorder %s3247_s21, 4 }
  0x31   : > { %p86_p10 = scmp.eq.s32.totalorder %s85_s3, 0  ;;  %s3433_s28 = sand.u32 1, %s3247_s21  }
  0x32   : > { %4775 = sst [smem:[#allocation44_spill]] %s3433_s28  ;;  %s3436_s24 = sshll.u32 %s3243_s20, 5 }
  0x33   : > { %s3430_s27 = scalar_select %p86_p10, %s3215_s13, %s88_s25  }
  0x34   : > { %s355_s11 = sand.u32 1, %s3215_s13   ;;  %s2110_s18 = sshll.u32 %s4892_s8, 1 }
  0x35   : > { %4774 = sst [smem:[#allocation43_spill]] %s3430_s27  ;;  %s2107_s12 = sshll.u32 %s355_s11, 4 }
  0x36   : > { %s367_s29 = sadd.s32 %s2110_s18, %s3436_s24  ;;  %s357_s5 = scalar_lea.vmem [#allocation5], %s2107_s12 }
  0x37   : > { %s2112_s2 = sshll.u32 %s367_s29, 7  ;;  %s370_s30 = sshll.u32 %s357_s5, 4  ;;  %s3445_s30 = int_to_ptr.vmem [resolvable:$true] %s370_s30 }
  0x38   : > { %s4776_s1 = sld [smem:[#allocation53_spill]]  ;;  %p3451_p12 = pnand %p4699_p11, %p3415_p6 }
  0x39   : > { %s3456_s8 = scalar_lea.sflag [#allocation6], %s3433_s28 }
  0x3a   : > { %p2817_p0 = pneg %p3451_p12 }
  0x3e   : > { %s3443_s3 = scalar_lea.hbm %s4776_s1, %s2112_s2  ;;  %s2820_s9 = scalar_lea.hbm %s4776_s1, 8192 }
  0x3f   : > { %s2815_s29 = scalar_lea.hbm %s3443_s3, 256  ;;  %p2821_p4 = scmp.lt.u32.totalorder %s3443_s3, %s4776_s1 }
  0x40   : > { %p2816_p13 = scmp.ne.s32.totalorder %s3443_s3, %s2815_s29  ;;  %p2822_p5 = scmp.lt.u32.totalorder %s2820_s9, %s2815_s29 }
  0x41   : > { %p2824_p10 = scmp.lt.u32.totalorder %s2815_s29, %s3443_s3 }
  0x42   : > { %p2818_p2 = pnand %p2817_p0, %p2816_p13  ;;  %p2823_p6 = por %p2822_p5, %p2821_p4 }
  0x44   : > { %p2819_p3 = pneg %p2818_p2  ;;  %p2825_p7 = por %p2824_p10, %p2823_p6 }
  0x46   : > { %p2826_p9 = pnand %p2825_p7, %p2819_p3 }
  0x48   : > { %2829 = shalt.err (!%p2826_p9)
}
  0x49   : > { %s2830_s25 = scalar_lea.vmem %s3445_s30, 256  ;;  %s3249_s26 = smov [#allocation5]  }
  0x4a   : > { %p2831_p13 = scmp.ne.s32.totalorder %s3445_s30, %s2830_s25  ;;  %s2835_s18 = sshll.u32 %s3249_s26, 4  ;;  %s2836_s18 = int_to_ptr.vmem [resolvable:$false] %s2835_s18 }
  0x4b   : > { %s2837_s5 = scalar_lea.vmem %s2836_s18, 512  ;;  %p2838_p11 = scmp.lt.s32.totalorder %s3445_s30, %s2836_s18 }
  0x4c   : > { %p2833_p2 = pnand %p2831_p13, %p2817_p0  ;;  %p2839_p4 = scmp.lt.s32.totalorder %s2837_s5, %s2830_s25 }
  0x4e   : > { %p2834_p8 = pneg %p2833_p2  ;;  %p2840_p5 = por %p2839_p4, %p2838_p11 }
  0x50   : > { %p2841_p6 = pnand %p2840_p5, %p2834_p8 }
  0x52   : > { %2844 = shalt.err (!%p2841_p6)
}
  0x53   : > { %s4700_s29 = smov 128   ;;  %s4702_s2 = smov 8  }
  0x54   : > { %2568 = dma.hbm_to_vmem [thread:$0]  (!%p3451_p12), %s3443_s3, 256, %s3445_s30, %s3456_s8, %s4700_s29, %s4700_s29, %s4702_s2  }
  0x55   : > { %s3488_s4 = sadd.s32 4294967295, %s3247_s21   ;;  %s2092_s9 = sadd.s32 4294967294, %s3247_s21  }
  0x56   : > { %s4778_s12 = ssub.s32 %s3239_s19, %s4886_s22  ;;  %s52_s25 = sadd.s32 1, %s3227_s16 }
  0x57   : > { %s49_s23 = sor.u32 %s4778_s12, %s3411_s17  ;;  %p59_p8 = scmp.ne.s32.totalorder %s3227_s16, %s3223_s15 }
  0x58   : > { %p50_p7 = scmp.eq.s32.totalorder %s49_s23, 0  ;;  %p4707_p9 = scmp.ne.s32.totalorder %s3223_s15, %s3219_s14 }
  0x59   : > { %p290_p11 = scmp.eq.s32.totalorder %s3488_s4, 3  ;;  %p3506_p0 = por %p4708_p1, %p59_p8 }
  0x5a   : > { %s3502_s26 = scalar_select %p50_p7, %s3227_s16, %s52_s25  }
  0x5b   : > { %p3510_p12 = por %p290_p11, %p59_p8  ;;  %p296_p3 = scmp.eq.s32.totalorder %s2092_s9, 3 }
  0x5c   : > { %4779 = sst [smem:[#allocation45_spill]] %s3502_s26  ;;  %s331_s3 = sand.u32 1, %s3227_s16  }
  0x5d   : > { %s4781_s30 = scalar_select %p3510_p12, 1, 0 }
  0x5e   : > { %p3518_p10 = por %p296_p3, %p4707_p9  ;;  %s2102_s5 = sshll.u32 %s331_s3, 7 }
  0x5f   : > { %4782 = sst [smem:[#allocation46_spill]] %s4781_s30  ;;  %s2191_s12 = sshll.u32 %s3239_s19, 4 }
  0x60   : > { %s4783_s18 = scalar_select %p3518_p10, 1, 0 }
  0x61   : > { %s340_s23 = sadd.s32 %s2191_s12, %s3436_s24  ;;  %s333_s25 = scalar_lea.vmem [#allocation2], %s2102_s5 }
  0x62   : > { %4784 = sst [smem:[#allocation47_spill]] %s4783_s18  ;;  %s343_s29 = sshll.u32 %s333_s25, 4  ;;  %s3524_s29 = int_to_ptr.vmem [resolvable:$true] %s343_s29 }
  0x63   : > { %s2106_s2 = sshll.u32 %s340_s23, 7  ;;  %s4785_s0 = sld [smem:[#allocation52_spill]] }
  0x64   : > { %p4786_p13 = scmp.lt.s32.totalorder %s3247_s21, 4  ;;  %s4789_s7 = sld [smem:[#allocation59_spill]] }
  0x65   : > { %s462_s1 = scalar_lea.vmem [#allocation14], %s2102_s5  ;;  %s4711_s11 = scalar_lea.sflag [#allocation3], %s3433_s28 }
  0x66   : > { %p3535_p2 = pnand %p4786_p13, %p3506_p0  ;;  %s3544_s22 = sshll.u32 %s462_s1, 4  ;;  %s3578_s22 = int_to_ptr.vmem [resolvable:$true] %s3544_s22 }
  0x68   : > { %s4787_s9 = scalar_select %p3535_p2, 1, 0 }
  0x69   : > { %s3529_s26 = scalar_lea.hbm %s4785_s0, %s2106_s2  ;;  %p4721_p5 = pneg %p3535_p2 }
  0x6a   : > { %4788 = sst [smem:[#allocation48_spill]] %s4787_s9  ;;  %s3542_s23 = scalar_lea.hbm %s4789_s7, %s2106_s2 }
  0x6b   : > { %4790 = sst [smem:[#allocation49_spill]] %s3542_s23  ;;  %s2845_s25 = scalar_lea.hbm %s3529_s26, 2048 }
  0x6c   : > { %p2846_p4 = scmp.ne.s32.totalorder %s3529_s26, %s2845_s25  ;;  %s2850_s3 = scalar_lea.hbm %s4785_s0, 8192 }
  0x6d   : > { %p2851_p8 = scmp.lt.u32.totalorder %s3529_s26, %s4785_s0  ;;  %p2852_p11 = scmp.lt.u32.totalorder %s2850_s3, %s2845_s25 }
  0x6e   : > { %p2848_p6 = pnand %p4721_p5, %p2846_p4  ;;  %p2854_p3 = scmp.lt.u32.totalorder %s2845_s25, %s3529_s26 }
  0x6f   : > { %p2853_p0 = por %p2852_p11, %p2851_p8 }
  0x70   : > { %p2849_p7 = pneg %p2848_p6 }
  0x71   : > { %p2855_p13 = por %p2854_p3, %p2853_p0 }
  0x73   : > { %p2856_p9 = pnand %p2855_p13, %p2849_p7 }
  0x75   : > { %2859 = shalt.err (!%p2856_p9)
}
  0x76   : > { %s2860_s2 = scalar_lea.vmem %s3524_s29, 2048  ;;  %s3252_s16 = smov [#allocation2]  }
  0x77   : > { %p2861_p4 = scmp.ne.s32.totalorder %s3524_s29, %s2860_s2  ;;  %s2865_s19 = sshll.u32 %s3252_s16, 4  ;;  %s2866_s19 = int_to_ptr.vmem [resolvable:$false] %s2865_s19 }
  0x78   : > { %s2867_s27 = scalar_lea.vmem %s2866_s19, 4096  ;;  %p2868_p10 = scmp.lt.s32.totalorder %s3524_s29, %s2866_s19 }
  0x79   : > { %p2863_p6 = pnand %p2861_p4, %p4721_p5  ;;  %p2869_p8 = scmp.lt.s32.totalorder %s2867_s27, %s2860_s2 }
  0x7b   : > { %p2864_p1 = pneg %p2863_p6  ;;  %p2870_p11 = por %p2869_p8, %p2868_p10 }
  0x7d   : > { %p2871_p0 = pnand %p2870_p11, %p2864_p1 }
  0x7f   : > { %2874 = shalt.err (!%p2871_p0)
}
  0x80   : > { %s4791_s5 = smov 8   ;;  %s4792_s1 = smov 128  }
  0x81   : > { %s4793_s25 = sld [smem:[#allocation42_spill]]  ;;  %s4794_s3 = sld [smem:[#allocation28_spill]] }
  0x82   : > { %s4795_s12 = sld [smem:[#allocation27_spill]]  ;;  %4796 = sst [smem:[#allocation42_spill]] %s3578_s22 }
  0x83   : > { %2565 = dma.hbm_to_vmem [thread:$0]  (!%p3535_p2), %s3529_s26, 2048, %s3524_s29, %s4711_s11, %s4792_s1, %s4792_s1, %s4791_s5  }
  0x84   : > { %s124_s2 = sadd.s32 1, %s3203_s10  ;;  %p4797_p1 = scmp.lt.s32.totalorder %s3421_s6, 15 }
  0x85   : > { %s382_s19 = sand.u32 1, %s3203_s10   ;;  %p4799_p3 = scmp.eq.s32.totalorder %s3247_s21, 0 }
  0x86   : > { %s4896_s6 = smov (!%p4797_p1, %s3421_s6), 15  ;;  %s2113_s0 = sshll.u32 %s382_s19, 4 }
  0x87   : > { %p4798_p9 = scmp.lt.s32.totalorder %s4793_s25, 15  ;;  %p131_p10 = scmp.ne.s32.totalorder %s3203_s10, %s4794_s3 }
  0x88   : > { %s2115_s13 = sshll.u32 %s4896_s6, 1  ;;  %s384_s26 = scalar_lea.vmem [#allocation7], %s2113_s0 }
  0x89   : > { %s4898_s25 = smov (!%p4798_p9, %s4793_s25), 15  ;;  %p133_p13 = por %p131_p10, %p4799_p3 }
  0x8a   : > { %s120_s16 = ssub.s32 %s4896_s6, %s4898_s25  ;;  %s394_s29 = sadd.s32 %s2115_s13, %s3436_s24 }
  0x8b   : > { %s121_s27 = sor.u32 %s120_s16, %s3411_s17  ;;  %s397_s11 = sshll.u32 %s384_s26, 4  ;;  %s3599_s11 = int_to_ptr.vmem [resolvable:$true] %s397_s11 }
  0x8c   : > { %p122_p4 = scmp.eq.s32.totalorder %s121_s27, 0  ;;  %s2117_s30 = sshll.u32 %s394_s29, 7 }
  0x8d   : > { %s4801_s9 = sld [smem:[#allocation54_spill]]  ;;  %p4803_p6 = scmp.lt.s32.totalorder %s3247_s21, 4 }
  0x8e   : > { %s3596_s18 = scalar_select %p122_p4, %s3203_s10, %s124_s2  }
  0x8f   : > { %p3608_p8 = pnand %p4803_p6, %p133_p13 }
  0x90   : > { %4800 = sst [smem:[#allocation50_spill]] %s3596_s18 }
  0x91   : > { %p2877_p0 = pneg %p3608_p8 }
  0x93   : > { %s4802_s23 = smov %s4801_s9  ;;  %s3604_s28 = scalar_lea.hbm %s4801_s9, %s2117_s30 }
  0x94   : > { %s2875_s0 = scalar_lea.hbm %s3604_s28, 256  ;;  %s2880_s24 = scalar_lea.hbm %s4802_s23, 8192 }
  0x95   : > { %p2876_p11 = scmp.ne.s32.totalorder %s3604_s28, %s2875_s0  ;;  %p2881_p10 = scmp.lt.u32.totalorder %s3604_s28, %s4802_s23 }
  0x96   : > { %p2882_p3 = scmp.lt.u32.totalorder %s2880_s24, %s2875_s0  ;;  %p2884_p4 = scmp.lt.u32.totalorder %s2875_s0, %s3604_s28 }
  0x97   : > { %p2878_p1 = pnand %p2877_p0, %p2876_p11 }
  0x98   : > { %p2883_p13 = por %p2882_p3, %p2881_p10 }
  0x99   : > { %p2879_p9 = pneg %p2878_p1 }
  0x9a   : > { %p2885_p6 = por %p2884_p4, %p2883_p13 }
  0x9c   : > { %p2886_p5 = pnand %p2885_p6, %p2879_p9 }
  0x9e   : > { %2889 = shalt.err (!%p2886_p5)
}
  0x9f   : > { %s2890_s22 = scalar_lea.vmem %s3599_s11, 256  ;;  %s3253_s25 = smov [#allocation7]  }
  0xa0   : > { %p2891_p11 = scmp.ne.s32.totalorder %s3599_s11, %s2890_s22  ;;  %s2895_s2 = sshll.u32 %s3253_s25, 4  ;;  %s2896_s2 = int_to_ptr.vmem [resolvable:$false] %s2895_s2 }
  0xa1   : > { %s2897_s16 = scalar_lea.vmem %s2896_s2, 512  ;;  %p2898_p12 = scmp.lt.s32.totalorder %s3599_s11, %s2896_s2 }
  0xa2   : > { %p2893_p1 = pnand %p2891_p11, %p2877_p0  ;;  %p2899_p10 = scmp.lt.s32.totalorder %s2897_s16, %s2890_s22 }
  0xa4   : > { %p2894_p7 = pneg %p2893_p1  ;;  %p2900_p3 = por %p2899_p10, %p2898_p12 }
  0xa6   : > { %p2901_p13 = pnand %p2900_p3, %p2894_p7 }
  0xa8   : > { %2904 = shalt.err (!%p2901_p13)
}
  0xa9   : > { %s4805_s19 = sld [smem:[#allocation26_spill]]  ;;  %s4806_s27 = sld [smem:[#allocation31_spill]] }
  0xaa   : > { %s4807_s29 = sld [smem:[#allocation30_spill]]  ;;  %s4808_s26 = sld [smem:[#allocation25_spill]] }
  0xab   : > { %s4809_s6 = sld [smem:[#allocation24_spill]]  ;;  %p4723_p12 = scmp.eq.s32.totalorder %s3488_s4, 0 }
  0xac   : > { %2571 = dma.hbm_to_vmem [thread:$0]  (!%p3608_p8), %s3604_s28, 256, %s3599_s11, %s3456_s8, %s4792_s1, %s4792_s1, %s4791_s5  }
  0xad   : > { %p148_p5 = scmp.eq.s32.totalorder %s3411_s17, 0  ;;  %p4810_p7 = scmp.ne.s32.totalorder %s3223_s15, %s3219_s14 }
  0xae   : > { %s4811_s7 = sld [smem:[#allocation44_spill]]  ;;  %p4815_p6 = scmp.ne.s32.totalorder %s4794_s3, %s4795_s12 }
  0xaf   : > { %s150_s0 = sadd.s32 1, %s4805_s19  ;;  %p3649_p0 = por %p4723_p12, %p4810_p7 }
  0xb0   : > { %p4813_p9 = scmp.ne.s32.totalorder %s4806_s27, %s4807_s29  ;;  %p3667_p8 = por %p4815_p6, %p4723_p12 }
  0xb1   : > { %s4812_s13 = scalar_select %p3649_p0, 1, 0 }
  0xb2   : > { %p3658_p4 = por %p4813_p9, %p4723_p12  ;;  %p157_p11 = scmp.ne.s32.totalorder %s4805_s19, %s4808_s26 }
  0xb3   : > { %s4816_s28 = scalar_select %p3667_p8, 1, 0 }
  0xb4   : > { %s4814_s24 = scalar_select %p3658_p4, 1, 0 }
  0xb5   : > { %s3674_s17 = scalar_select %p148_p5, %s4805_s19, %s150_s0  }
  0xb6   : > { %p4818_p1 = scmp.eq.s32.totalorder %s3247_s21, 0  ;;  %p163_p3 = scmp.ne.s32.totalorder %s4808_s26, %s4809_s6 }
  0xb7   : > { %4817 = sst [smem:[#allocation51_spill]] %s3674_s17  ;;  %s3681_s11 = sand.u32 1, %s4805_s19  }
  0xb8   : > { %p159_p10 = por %p157_p11, %p4818_p1  ;;  %p3685_p13 = por %p163_p3, %p4723_p12 }
  0xb9   : > { %s3690_s9 = sshll.u32 %s3243_s20, 4  ;;  %s410_s3 = scalar_lea.vmem [#allocation8], %s3681_s11 }
  0xba   : > { %s4819_s30 = scalar_select %p3685_p13, 1, 0 }
  0xbb   : > { %s417_s12 = sshll.u32 %s410_s3, 4  ;;  %s4821_s2 = sld [smem:[#allocation55_spill]]  ;;  %s3699_s12 = int_to_ptr.vmem [resolvable:$true] %s417_s12 }
  0xbc   : > { %4820 = sst [smem:[#allocation27_spill]] %s4819_s30  ;;  %p4822_p5 = scmp.lt.s32.totalorder %s3247_s21, 4 }
  0xbe   : > { %p3703_p7 = pnand %p4822_p5, %p159_p10 }
  0xc0   : > { %s4823_s19 = scalar_select %p3703_p7, 1, 0 }
  0xc1   : > { %s3697_s16 = scalar_lea.hbm %s4821_s2, %s3690_s9  ;;  %p3712_p6 = pneg %p3703_p7 }
  0xc2   : > { %s2905_s29 = scalar_lea.hbm %s3697_s16, 16  ;;  %s2910_s3 = scalar_lea.hbm %s4821_s2, 32 }
  0xc3   : > { %p2906_p9 = scmp.ne.s32.totalorder %s3697_s16, %s2905_s29  ;;  %p2911_p10 = scmp.lt.u32.totalorder %s3697_s16, %s4821_s2 }
  0xc4   : > { %s4824_s26 = scalar_select %p3712_p6, 1, 0 }
  0xc5   : > { %p2908_p11 = pnand %p3712_p6, %p2906_p9  ;;  %p2912_p3 = scmp.lt.u32.totalorder %s2910_s3, %s2905_s29 }
  0xc6   : > { %p2914_p12 = scmp.lt.u32.totalorder %s2905_s29, %s3697_s16 }
  0xc7   : > { %p2909_p1 = pneg %p2908_p11  ;;  %p2913_p5 = por %p2912_p3, %p2911_p10 }
  0xc9   : > { %p2915_p13 = por %p2914_p12, %p2913_p5 }
  0xcb   : > { %p2916_p8 = pnand %p2915_p13, %p2909_p1 }
  0xcd   : > { %2919 = shalt.err (!%p2916_p8)
}
  0xce   : > { %s2920_s27 = scalar_lea.vmem %s3699_s12, 16  ;;  %s3254_s6 = smov [#allocation8]  }
  0xcf   : > { %p2921_p9 = scmp.ne.s32.totalorder %s3699_s12, %s2920_s27  ;;  %s2925_s0 = sshll.u32 %s3254_s6, 4  ;;  %s2926_s0 = int_to_ptr.vmem [resolvable:$false] %s2925_s0 }
  0xd0   : > { %s2927_s22 = scalar_lea.vmem %s2926_s0, 32  ;;  %p2928_p0 = scmp.lt.s32.totalorder %s3699_s12, %s2926_s0 }
  0xd1   : > { %p2923_p11 = pnand %p2921_p9, %p3712_p6  ;;  %p2929_p2 = scmp.lt.s32.totalorder %s2927_s22, %s2920_s27 }
  0xd3   : > { %p2924_p4 = pneg %p2923_p11  ;;  %p2930_p10 = por %p2929_p2, %p2928_p0 }
  0xd5   : > { %p2931_p3 = pnand %p2930_p10, %p2924_p4 }
  0xd7   : > { %2934 = shalt.err (!%p2931_p3)
}
  0xd8   : > { %s4825_s29 = scalar_lea.sflag [#allocation9], %s4811_s7  ;;  %p2099_p12 = scmp.ge.s32.totalorder %s3247_s21, 1 }
  0xd9   : > { %2574 = dma.hbm_to_vmem [thread:$0]  (!%p3703_p7), %s3697_s16, 16, %s3699_s12, %s4825_s29  }
  0xda   : > { %p303_p8 = scmp.lt.s32.totalorder %s3247_s21, 5  ;;  %s3255_s3 = smov [#allocation11]  }
  0xdb   : > { %s315_s25 = sshll.u32 %s3255_s3, 4  ;;  %s4827_s22 = sld [smem:[#allocation56_spill]]  ;;  %s3743_s25 = int_to_ptr.vmem [resolvable:$true] %s315_s25 }
  0xdc   : > { %p3739_p13 = pnand %p2099_p12, %p303_p8  ;;  %s427_s12 = scalar_lea.vmem [#allocation10], %s3681_s11 }
  0xdd   : > { %s434_s16 = sshll.u32 %s427_s12, 4  ;;  %p4828_p0 = scmp.eq.s32.totalorder %s3488_s4, 0  ;;  %s3754_s16 = int_to_ptr.vmem [resolvable:$true] %s434_s16 }
  0xde   : > { %s4826_s27 = scalar_select %p3739_p13, 1, 0 }
  0xdf   : > { %p2558_p2 = pneg %p3739_p13  ;;  %s4830_s6 = sld [smem:[#allocation58_spill]] }
  0xe1   : > { %s3749_s2 = scalar_lea.hbm %s4827_s22, %s3690_s9  ;;  %p3758_p4 = pnand %p2558_p2, %p4828_p0 }
  0xe2   : > { %s2935_s20 = scalar_lea.hbm %s3749_s2, 16  ;;  %s2940_s12 = scalar_lea.hbm %s4827_s22, 32 }
  0xe3   : > { %s4829_s29 = scalar_select %p3758_p4, 1, 0 }
  0xe4   : > { %p2936_p1 = scmp.ne.s32.totalorder %s3749_s2, %s2935_s20  ;;  %p2941_p11 = scmp.lt.u32.totalorder %s3749_s2, %s4827_s22 }
  0xe5   : > { %s3766_s0 = scalar_lea.hbm %s4830_s6, %s3690_s9  ;;  %p2942_p10 = scmp.lt.u32.totalorder %s2940_s12, %s2935_s20 }
  0xe6   : > { %p2938_p5 = pnand %p2936_p1, %p3712_p6  ;;  %p2944_p12 = scmp.lt.u32.totalorder %s2935_s20, %s3749_s2 }
  0xe7   : > { %p2943_p3 = por %p2942_p10, %p2941_p11 }
  0xe8   : > { %p2939_p9 = pneg %p2938_p5 }
  0xe9   : > { %p2945_p8 = por %p2944_p12, %p2943_p3 }
  0xeb   : > { %p2946_p2 = pnand %p2945_p8, %p2939_p9 }
  0xed   : > { %2949 = shalt.err (!%p2946_p2)
}
  0xee   : > { %s2950_s23 = scalar_lea.vmem %s3754_s16, 16  ;;  %s3256_s10 = smov [#allocation10]  }
  0xef   : > { %p2951_p0 = scmp.ne.s32.totalorder %s3754_s16, %s2950_s23  ;;  %s2955_s18 = sshll.u32 %s3256_s10, 4  ;;  %s2956_s18 = int_to_ptr.vmem [resolvable:$false] %s2955_s18 }
  0xf0   : > { %s2957_s14 = scalar_lea.vmem %s2956_s18, 32  ;;  %p2958_p13 = scmp.lt.s32.totalorder %s3754_s16, %s2956_s18 }
  0xf1   : > { %p2953_p1 = pnand %p2951_p0, %p3712_p6  ;;  %p2959_p4 = scmp.lt.s32.totalorder %s2957_s14, %s2950_s23 }
  0xf3   : > { %p2954_p5 = pneg %p2953_p1  ;;  %p2960_p11 = por %p2959_p4, %p2958_p13 }
  0xf5   : > { %p2961_p10 = pnand %p2960_p11, %p2954_p5 }
  0xf7   : > { %2964 = shalt.err (!%p2961_p10)
}
  0xf8   : > { %s4831_s20 = scalar_lea.sflag [#allocation9], %s4811_s7  ;;  %s444_s17 = scalar_lea.vmem [#allocation13], %s3681_s11 }
  0xf9   : > { %2577 = dma.hbm_to_vmem [thread:$0]  (!%p3703_p7), %s3749_s2, 16, %s3754_s16, %s4831_s20  }
  0xfa   : > { %s451_s9 = sshll.u32 %s444_s17, 4  ;;  %s4832_s10 = sld [smem:[#allocation57_spill]]  ;;  %s452_s9 = int_to_ptr.vmem [resolvable:$true] %s451_s9 }
  0xfb   : > { %p4834_p4 = scmp.ne.s32.totalorder %s4829_s29, 0 }
  0xfd   : > { %p2967_p9 = pneg %p4834_p4 }
 0x100   : > { %s4833_s22 = smov %s4832_s10  ;;  %s2965_s21 = scalar_lea.hbm %s4832_s10, 4608 }
 0x101   : > { %p2966_p13 = scmp.ne.s32.totalorder %s4833_s22, %s2965_s21  ;;  %p2972_p8 = scmp.lt.u32.totalorder %s2965_s21, %s4833_s22 }
 0x103   : > { %p2968_p3 = pnand %p2967_p9, %p2966_p13 }
 0x105   : > { %p2969_p12 = pneg %p2968_p3 }
 0x107   : > { %p2974_p2 = pnand %p2972_p8, %p2969_p12 }
 0x109   : > { %2977 = shalt.err (!%p2974_p2)
}
 0x10a   : > { %s2978_s11 = scalar_lea.vmem %s3743_s25, 4608  ;;  %p2986_p11 = scmp.lt.s32.totalorder %s3743_s25, %s3743_s25 }
 0x10b   : > { %p2979_p0 = scmp.ne.s32.totalorder %s3743_s25, %s2978_s11  ;;  %p2987_p10 = scmp.lt.s32.totalorder %s2978_s11, %s2978_s11 }
 0x10d   : > { %p2981_p1 = pnand %p2979_p0, %p2967_p9  ;;  %p2988_p7 = por %p2987_p10, %p2986_p11 }
 0x10f   : > { %p2982_p5 = pneg %p2981_p1 }
 0x111   : > { %p2989_p6 = pnand %p2988_p7, %p2982_p5 }
 0x113   : > { %2992 = shalt.err (!%p2989_p6)
}
 0x114   : > { %2561 = dma.hbm_to_vmem [thread:$0]  (!%p4834_p4), %s4833_s22, 4608, %s3743_s25, [#allocation12], %s4792_s1, %s4792_s1, %s4791_s5  }
 0x115   : > { %s2993_s2 = scalar_lea.hbm %s3766_s0, 16  ;;  %p4835_p7 = scmp.ne.s32.totalorder %s4824_s26, 0 }
 0x116   : > { %p2994_p13 = scmp.ne.s32.totalorder %s3766_s0, %s2993_s2  ;;  %s2998_s20 = scalar_lea.hbm %s4830_s6, 32 }
 0x117   : > { %p2999_p3 = scmp.lt.u32.totalorder %s3766_s0, %s4830_s6  ;;  %p3000_p12 = scmp.lt.u32.totalorder %s2998_s20, %s2993_s2 }
 0x118   : > { %p2996_p6 = pnand %p2994_p13, %p4835_p7  ;;  %p3002_p2 = scmp.lt.u32.totalorder %s2993_s2, %s3766_s0 }
 0x119   : > { %p3001_p8 = por %p3000_p12, %p2999_p3 }
 0x11a   : > { %p2997_p9 = pneg %p2996_p6 }
 0x11b   : > { %p3003_p0 = por %p3002_p2, %p3001_p8 }
 0x11d   : > { %p3004_p1 = pnand %p3003_p0, %p2997_p9 }
 0x11f   : > { %3007 = shalt.err (!%p3004_p1)
}
 0x120   : > { %s3008_s25 = scalar_lea.vmem %s452_s9, 16  ;;  %s3257_s12 = smov [#allocation13]  }
 0x121   : > { %p3009_p4 = scmp.ne.s32.totalorder %s452_s9, %s3008_s25  ;;  %s3013_s10 = sshll.u32 %s3257_s12, 4  ;;  %s3014_s10 = int_to_ptr.vmem [resolvable:$false] %s3013_s10 }
 0x122   : > { %s3015_s18 = scalar_lea.vmem %s3014_s10, 32  ;;  %p3016_p10 = scmp.lt.s32.totalorder %s452_s9, %s3014_s10 }
 0x123   : > { %p3011_p5 = pnand %p3009_p4, %p4835_p7  ;;  %p3017_p13 = scmp.lt.s32.totalorder %s3015_s18, %s3008_s25 }
 0x125   : > { %p3012_p11 = pneg %p3011_p5  ;;  %p3018_p6 = por %p3017_p13, %p3016_p10 }
 0x127   : > { %p3019_p3 = pnand %p3018_p6, %p3012_p11 }
 0x129   : > { %3022 = shalt.err (!%p3019_p3)
}
 0x12a   : > { %p4836_p12 = scmp.ne.s32.totalorder %s4823_s19, 0  ;;  %s4837_s23 = scalar_lea.sflag [#allocation3], %s4811_s7 }
 0x12b   : > { %s4838_s14 = sld [smem:[#allocation49_spill]]  ;;  %s4839_s11 = sld [smem:[#allocation48_spill]] }
 0x12c   : > { %2580 = dma.hbm_to_vmem [thread:$0]  (!%p4836_p12), %s3766_s0, 16, %s452_s9, %s4837_s23  }
 0x12d   : > { %s4842_s2 = sld [smem:[#allocation59_spill]] }
 0x131   : > { %s3023_s26 = scalar_lea.hbm %s4838_s14, 2048  ;;  %p4840_p9 = scmp.ne.s32.totalorder %s4839_s11, 0 }
 0x132   : > { %p3024_p7 = scmp.ne.s32.totalorder %s4838_s14, %s3023_s26  ;;  %p3032_p11 = scmp.lt.u32.totalorder %s3023_s26, %s4838_s14 }
 0x133   : > { %p4841_p8 = pneg %p4840_p9  ;;  %s3028_s16 = scalar_lea.hbm %s4842_s2, 8192 }
 0x134   : > { %p3029_p1 = scmp.lt.u32.totalorder %s4838_s14, %s4842_s2  ;;  %p3030_p4 = scmp.lt.u32.totalorder %s3028_s16, %s3023_s26 }
 0x135   : > { %p3026_p2 = pnand %p3024_p7, %p4841_p8 }
 0x136   : > { %p3031_p5 = por %p3030_p4, %p3029_p1 }
 0x137   : > { %p3027_p0 = pneg %p3026_p2 }
 0x138   : > { %p3033_p10 = por %p3032_p11, %p3031_p5 }
 0x13a   : > { %p3034_p13 = pnand %p3033_p10, %p3027_p0 }
 0x13c   : > { %3037 = shalt.err (!%p3034_p13)
}
 0x13d   : > { %s4843_s7 = sld [smem:[#allocation42_spill]]  ;;  %p4844_p3 = pmov %p4841_p8 }
 0x13e   : > { %s3258_s9 = smov [#allocation14]  }
 0x13f   : > { %s3043_s20 = sshll.u32 %s3258_s9, 4  ;;  %s3044_s20 = int_to_ptr.vmem [resolvable:$false] %s3043_s20 }
 0x140   : > { %s3045_s17 = scalar_lea.vmem %s3044_s20, 4096 }
 0x143   : > { %s3038_s0 = scalar_lea.vmem %s4843_s7, 2048  ;;  %p3046_p8 = scmp.lt.s32.totalorder %s4843_s7, %s3044_s20 }
 0x144   : > { %p3039_p6 = scmp.ne.s32.totalorder %s4843_s7, %s3038_s0  ;;  %p3047_p2 = scmp.lt.s32.totalorder %s3045_s17, %s3038_s0 }
 0x146   : > { %p3041_p12 = pnand %p3039_p6, %p4844_p3  ;;  %p3048_p1 = por %p3047_p2, %p3046_p8 }
 0x148   : > { %p3042_p7 = pneg %p3041_p12 }
 0x14a   : > { %p3049_p4 = pnand %p3048_p1, %p3042_p7 }
 0x14c   : > { %3052 = shalt.err (!%p3049_p4)
}
 0x14d   : > { %2583 = dma.hbm_to_vmem [thread:$0]  (!%p4840_p9), %s4838_s14, 2048, %s4843_s7, %s3456_s8, %s4792_s1, %s4792_s1, %s4791_s5  }
 0x14e   : > { %p4845_p0 = scmp.ne.s32.totalorder %s4826_s27, 0 }
 0x14f   : > { %s486_s3 = sand.u32 (!%p4845_p0), 1, %s3488_s4   ;;  %s488_s25 = sand.u32 (!%p4845_p0), 1, %s3223_s15  }
 0x150   : > { %484 = sbr.rel (%p4845_p0) target bundleno = 861 (0x35d), region = 52  ;;  %s3868_s12 = sshll.u32 (!%p4845_p0), %s488_s25, 7 }
 0x151   : > { %s487_s10 = scalar_lea.sflag (!%p4845_p0), [#allocation3], %s486_s3  ;;  %s3871_s18 = scalar_lea.vmem (!%p4845_p0), [#allocation2], %s3868_s12 }
 0x152   : > { %p4846_p5 = scmp.ne.s32.totalorder (!%p4845_p0), %s4812_s13, 0 }
 0x157   : > { %3150 = dma.done.wait (%p4846_p5), %s487_s10, 2048  }
 0x158   : > { %3152 = vsyncadd (%p4846_p5), %s487_s10, 4294965248  ;;  %s4847_s8 = sld [smem:[#allocation31_spill]]  ;;  %s496_s27 = scalar_lea.sflag [#allocation6], %s486_s3 }
 0x159   : > { %p4848_p9 = scmp.ne.s32.totalorder %s4814_s24, 0 }
 0x15e   : > { %s497_s5 = sand.u32 1, %s4847_s8  }
 0x15f   : > { %s3878_s1 = sshll.u32 %s497_s5, 4 }
 0x160   : > { %s499_s23 = scalar_lea.vmem [#allocation5], %s3878_s1 }
 0x161   : > { %3154 = dma.done.wait (%p4848_p9), %s496_s27, 256  }
 0x162   : > { %3156 = vsyncadd (%p4848_p9), %s496_s27, 4294967040  ;;  %s4849_s14 = sld [smem:[#allocation28_spill]]  ;;  %p4850_p11 = scmp.ne.s32.totalorder %s4816_s28, 0 }
 0x168   : > { %s506_s11 = sand.u32 1, %s4849_s14  }
 0x169   : > { %s3886_s26 = sshll.u32 %s506_s11, 4 }
 0x16a   : > { %s508_s21 = scalar_lea.vmem [#allocation7], %s3886_s26 }
 0x16b   : > { %3158 = dma.done.wait (%p4850_p11), %s496_s27, 256  }
 0x16c   : > { %3160 = vsyncadd (%p4850_p11), %s496_s27, 4294967040  ;;  %s4851_s30 = sld [smem:[#allocation25_spill]]  ;;  %s514_s19 = scalar_lea.sflag [#allocation9], %s486_s3 }
 0x16d   : > { %s4852_s2 = sld [smem:[#allocation27_spill]] }
 0x172   : > { %s3894_s16 = sand.u32 1, %s4851_s30  }
 0x173   : > { %s516_s24 = scalar_lea.vmem [#allocation8], %s3894_s16  ;;  %p4853_p10 = scmp.ne.s32.totalorder %s4852_s2, 0 }
 0x175   : > { %3162 = dma.done.wait (%p4853_p10), %s514_s19, 32  }
 0x176   : > { %3164 = vsyncadd (%p4853_p10), %s514_s19, 4294967264  ;;  %s524_s29 = scalar_lea.vmem [#allocation10], %s3894_s16  ;;  %p4854_p13 = scmp.eq.s32.totalorder %s3488_s4, 0 }
 0x178   : > { %3166 = dma.done.wait (%p4854_p13), [#allocation12], 4608   ;;  %p4855_p6 = pmov %p4854_p13 }
 0x179   : > { %s536_s28 = scalar_lea.vmem [#allocation13], %s3894_s16 }
 0x17a   : > { %3168 = vsyncadd (%p4855_p6), [#allocation12], 4294962688 }
 0x17b   : > { %3170 = dma.done.wait (%p4853_p10), %s487_s10, 16  }
 0x17c   : > { %3172 = vsyncadd (%p4853_p10), %s487_s10, 4294967280  ;;  %s3912_s7 = scalar_lea.vmem [#allocation14], %s3868_s12 }
 0x17d   : > { %3174 = dma.done.wait (%p4846_p5), %s496_s27, 2048  }
 0x17e   : > { %3176 = vsyncadd (%p4846_p5), %s496_s27, 4294965248  ;;  %v3918_v0 = vld [vmem:[%s516_s24] ss:$0 sm:$0xff]  ;;  %v625_v3 = vld [vmem:[%s3871_s18 + $0x8] sm:$0xff]  ;;  %vm862_vm0 = vcmask 1040384   ;;  %vm959_vm1 = vcmask 1046528  }
 0x17f   : > { %v3920_v1 = vld [vmem:[%s524_s29] ss:$0 sm:$0xff]  ;;  %v626_v5 = vld [vmem:[%s3871_s18 + $0x10] sm:$0xff]  ;;  %v627_v6 = vld [vmem:[%s3871_s18 + $0x18] sm:$0xff]  ;;  %v647_v7 = vmul.f32 %v3918_v0, %v625_v3  ;;  %vm1048_vm2 = vcmask 1045504   ;;  %s4856_s4 = sld [smem:[#allocation35_spill]] }
 0x180   : > { %v624_v2 = vld [vmem:[%s3871_s18] sm:$0xff]  ;;  %v648_v8 = vmul.f32 %v3918_v0, %v626_v5  ;;  %v649_v9 = vmul.f32 %v3918_v0, %v627_v6  ;;  %v629_v11 = vld [vmem:[%s3871_s18 + $0x28] sm:$0xff]  ;;  %v630_v12 = vld [vmem:[%s3871_s18 + $0x30] sm:$0xff]  ;;  %s3259_s13 = smov 32   ;;  %s3260_s9 = smov 64   ;;  %vm1137_vm3 = vcmask 261120  }
 0x181   : > { %v646_v4 = vmul.f32 %v3918_v0, %v624_v2  ;;  %v628_v10 = vld [vmem:[%s3871_s18 + $0x20] sm:$0xff]  ;;  %v651_v15 = vmul.f32 %v3918_v0, %v629_v11  ;;  %v631_v16 = vld [vmem:[%s3871_s18 + $0x38] sm:$0xff]  ;;  %v652_v17 = vmul.f32 %v3918_v0, %v630_v12  ;;  %v3941_v18 = vadd.f32 %v3920_v1, %v647_v7  ;;  %v633_v31 = vld [vmem:[%s3871_s18 + $0x48] sm:$0xff]  ;;  %s4510_s10 = scalar_lea.vmem [#allocation15], %s3868_s12  ;;  %s4859_s26 = sld [smem:[#allocation60_spill]] }
 0x182   : > { %v650_v14 = vmul.f32 %v3918_v0, %v628_v10  ;;  %v3944_v19 = vadd.f32 %v3920_v1, %v648_v8  ;;  %v3947_v20 = vadd.f32 %v3920_v1, %v649_v9  ;;  %v653_v21 = vmul.f32 %v3918_v0, %v631_v16  ;;  %v632_v26 = vld [vmem:[%s3871_s18 + $0x40] sm:$0xff]  ;;  %v797_v37 = vld [vmem:[%s499_s23 + $0x8] sm:$0xff]  ;;  %v634_v53 = vld [vmem:[%s3871_s18 + $0x50] sm:$0xff]  ;;  %s1865_s27 = sshll.u32 %s4510_s10, 4  ;;  %s4589_s30 = scalar_lea.sflag [#allocation4], %s488_s25  ;;  %s4577_s27 = int_to_ptr.vmem [resolvable:$true] %s1865_s27 }
 0x183   : > { %v3934_v13 = vadd.f32 %v3920_v1, %v646_v4  ;;  %v3955_v24 = vadd.f32 %v3920_v1, %v651_v15  ;;  %v3958_v25 = vadd.f32 %v3920_v1, %v652_v17  ;;  %v685_v27 = vsub.f32 0.0, %v3941_v18  ;;  %v796_v32 = vld [vmem:[%s499_s23] sm:$0xff]  ;;  %v639_v63 = vld [vmem:[%s3871_s18 + $0x78] sm:$0xff]  ;;  %s4858_s23 = sld [smem:[#allocation46_spill]]  ;;  %s3053_s2 = scalar_lea.vmem %s4577_s27, 2048 }
 0x184   : > { %v3952_v23 = vadd.f32 %v3920_v1, %v650_v14  ;;  %v686_v28 = vsub.f32 0.0, %v3944_v19  ;;  %v687_v29 = vsub.f32 0.0, %v3947_v20  ;;  %v3965_v30 = vadd.f32 %v3920_v1, %v653_v21  ;;  %v638_v62 = vld [vmem:[%s3871_s18 + $0x70] sm:$0xff]  ;;  %v635_v4 = vld [vmem:[%s3871_s18 + $0x58] sm:$0xff]  ;;  %v636_v7 = vld [vmem:[%s3871_s18 + $0x60] sm:$0xff]  ;;  %p3054_p7 = scmp.ne.s32.totalorder %s4577_s27, %s3053_s2  ;;  %s3261_s16 = smov [#allocation15]  }
 0x185   : > { %v684_v22 = vsub.f32 0.0, %v3934_v13  ;;  %v689_v35 = vsub.f32 0.0, %v3955_v24  ;;  %v690_v36 = vsub.f32 0.0, %v3958_v25  ;;  %v702_v38 = vmul.f32 1.442695, %v685_v27  ;;  %v819_v21 = vld [vmem:[%s508_s21] sm:$0xff] }
 0x186   : > { %v688_v34 = vsub.f32 0.0, %v3952_v23  ;;  %v704_v39 = vmul.f32 1.442695, %v686_v28  ;;  %v706_v40 = vmul.f32 1.442695, %v687_v29  ;;  %v654_v41 = vmul.f32 %v3918_v0, %v632_v26  ;;  %v637_v27 = vld [vmem:[%s3871_s18 + $0x68] sm:$0xff] }
 0x187   : > { %v700_v33 = vmul.f32 1.442695, %v684_v22  ;;  %v691_v43 = vsub.f32 0.0, %v3965_v30  ;;  %v710_v44 = vmul.f32 1.442695, %v689_v35  ;;  %v655_v45 = vmul.f32 %v3918_v0, %v633_v31  ;;  %p618_p3 = scmp.gt.s32.totalorder %s4856_s4, 0 }
 0x188   : > { %v708_v42 = vmul.f32 1.442695, %v688_v34  ;;  %v3979_v46 = vadd.f32 %v3920_v1, %v654_v41  ;;  %v712_v47 = vmul.f32 1.442695, %v690_v36  ;;  %v798_v48 = vmul.f32 %v3918_v0, %v796_v32  ;;  %v1212_v34 = vld [vmem:[#allocation11 + $0x60] sm:$0xff]  ;;  %p621_p12 = scmp.lt.s32.totalorder %s4856_s4, 1 }
 0x189   : > { %2735 = vpow2.f32 %v700_v33  ;;  %v799_v49 = vmul.f32 %v3918_v0, %v797_v37  ;;  %v714_v50 = vmul.f32 1.442695, %v691_v43  ;;  %v3984_v51 = vadd.f32 %v3920_v1, %v655_v45  ;;  %v820_v33 = vld [vmem:[%s508_s21 + $0x8] sm:$0xff]  ;;  %s4090_s0 = scalar_select %p618_p3, 1, 0 }
 0x18a   : > { %2737 = vpow2.f32 %v702_v38  ;;  %v692_v52 = vsub.f32 0.0, %v3979_v46  ;;  %v3989_v54 = vadd.f32 %v3920_v1, %v798_v48  ;;  %v656_v60 = vmul.f32 %v3918_v0, %v634_v53  ;;  %v1213_v38 = vld [vmem:[#allocation11 + $0x68] sm:$0xff]  ;;  %s4217_s17 = scalar_select %p621_p12, 1, 0 }
 0x18b   : > { %2739 = vpow2.f32 %v704_v39  ;;  %v3992_v55 = vadd.f32 %v3920_v1, %v799_v49  ;;  %v693_v56 = vsub.f32 0.0, %v3984_v51  ;;  %v660_v8 = vmul.f32 %v3918_v0, %v638_v62  ;;  %v1214_v39 = vld [vmem:[#allocation11 + $0x70] sm:$0xff]  ;;  %s620_s20 = scvt.s32.f32 %s4090_s0  ;;  %s4857_s18 = sld [smem:[#allocation36_spill]] }
 0x18c   : > { %2741 = vpow2.f32 %v706_v40  ;;  %v716_v57 = vmul.f32 1.442695, %v692_v52  ;;  %v802_v58 = vsub.f32 0.0, %v3989_v54  ;;  %v4002_v6 = vadd.f32 %v3920_v1, %v656_v60  ;;  %v1215_v40 = vld [vmem:[#allocation11 + $0x78] sm:$0xff]  ;;  %v1216_v60 = vld [vmem:[#allocation11 + $0x80] sm:$0xff]  ;;  %s623_s3 = scvt.s32.f32 %s4217_s17  ;;  %s2193_s12 = sshll.u32 %s4856_s4, 4 }
 0x18d   : > { %2743 = vpow2.f32 %v708_v42  ;;  %v803_v59 = vsub.f32 0.0, %v3992_v55  ;;  %v718_v61 = vmul.f32 1.442695, %v693_v56  ;;  %v661_v9 = vmul.f32 %v3918_v0, %v639_v63  ;;  %p4860_p8 = scmp.ne.s32.totalorder %s4858_s23, 0  ;;  %s3057_s19 = sshll.u32 %s3261_s16, 4  ;;  %s3058_s19 = int_to_ptr.vmem [resolvable:$false] %s3057_s19 }
 0x18e   : > { %2745 = vpow2.f32 %v710_v44  ;;  %v804_v2 = vmul.f32 1.442695, %v802_v58  ;;  %v657_v15 = vmul.f32 %v3918_v0, %v635_v4  ;;  %v4009_v16 = vadd.f32 %v3920_v1, %v660_v8  ;;  %s3059_s24 = scalar_lea.vmem %s3058_s19, 4096  ;;  %p3060_p4 = scmp.lt.s32.totalorder %s4577_s27, %s3058_s19 }
 0x18f   : > { %2747 = vpow2.f32 %v712_v47  ;;  %v806_v3 = vmul.f32 1.442695, %v803_v59  ;;  %v4012_v17 = vadd.f32 %v3920_v1, %v661_v9  ;;  %v658_v28 = vmul.f32 %v3918_v0, %v636_v7  ;;  %p3055_p2 = pnand %p3054_p7, %p4860_p8  ;;  %p3061_p0 = scmp.lt.s32.totalorder %s3059_s24, %s3053_s2 }
 0x190   : > { %2749 = vpow2.f32 %v714_v50  ;;  %v694_v32 = vsub.f32 0.0, %v4002_v6  ;;  %v821_v37 = vmul.f32 %v3918_v0, %v819_v21  ;;  %v4023_v43 = vadd.f32 %v3920_v1, %v657_v15 }
 0x191   : > { %2751 = vpow2.f32 %v716_v57  ;;  %v659_v44 = vmul.f32 %v3918_v0, %v637_v27  ;;  %v4027_v47 = vadd.f32 %v3920_v1, %v658_v28  ;;  %v822_v48 = vmul.f32 %v3918_v0, %v820_v33  ;;  %s2187_s8 = sshll.u32 %s4857_s18, 5  ;;  %p3056_p1 = pneg %p3055_p2 }
 0x192   : > { %2753 = vpow2.f32 %v718_v61  ;;  %v4031_v49 = vadd.f32 %v3920_v1, %v821_v37  ;;  %v720_v52 = vmul.f32 1.442695, %v694_v32  ;;  %v2422_v53 = vpack.c.bf16 %v1213_v38, %v1212_v34  ;;  %v1217_v61 = vld [vmem:[#allocation11 + $0x88] sm:$0xff]  ;;  %s4545_s5 = sadd.s32 %s2193_s12, %s2187_s8  ;;  %p3062_p5 = por %p3061_p0, %p3060_p4 }
 0x193   : > { %v2736_v5 = vpop.eup %2735  ;;  %2755 = vpow2.f32 %v804_v2  ;;  %v2426_v56 = vpack.c.bf16 %v1215_v40, %v1214_v39  ;;  %v4034_v59 = vadd.f32 %v3920_v1, %v822_v48  ;;  %v695_v2 = vsub.f32 0.0, %v4023_v43  ;;  %s2188_s1 = sshll.u32 %s4545_s5, 7 }
 0x194   : > { %v2738_v10 = vpop.eup %2737  ;;  %v732_v11 = vadd.f32 1.0, %v2736_v5  ;;  %2757 = vpow2.f32 %v806_v3  ;;  %2423 = vmatprep.subr.bf16.mxu1 %v2422_v53  ;;  %v4038_v4 = vadd.f32 %v3920_v1, %v659_v44  ;;  %v696_v5 = vsub.f32 0.0, %v4027_v47  ;;  %s4575_s21 = scalar_lea.hbm %s4859_s26, %s2188_s1  ;;  %p3063_p9 = pnand %p3062_p5, %p3056_p1 }
 0x195   : > { %v2740_v12 = vpop.eup %2739  ;;  %v733_v14 = vadd.f32 1.0, %v2738_v10  ;;  %2425 = vmatpush3.bf16.msra.mxu1 %v2422_v53  ;;  %v2430_v8 = vpack.c.bf16 %v1217_v61, %v1216_v60  ;;  %v722_v21 = vmul.f32 1.442695, %v695_v2  ;;  %v1223_v2 = vld [vmem:[#allocation11 + $0xb8] sm:$0xff]  ;;  %vm1154_vm4 = vcmask 523264  }
 0x196   : > { %v2742_v22 = vpop.eup %2741  ;;  %2759 = vrcp.f32 %v732_v11  ;;  %v734_v26 = vadd.f32 1.0, %v2740_v12  ;;  %2427 = vmatprep.subr.bf16.mxu1 %v2426_v56  ;;  %v1218_v11 = vld [vmem:[#allocation11 + $0x90] sm:$0xff]  ;;  %v1219_v12 = vld [vmem:[#allocation11 + $0x98] sm:$0xff]  ;;  %vm1224_vm5 = vcmask 785408  }
 0x197   : > { %v2744_v29 = vpop.eup %2743  ;;  %2761 = vrcp.f32 %v733_v14  ;;  %v735_v31 = vadd.f32 1.0, %v2742_v22  ;;  %v1220_v22 = vld [vmem:[#allocation11 + $0xa0] sm:$0xff] }
 0x198   : > { %v2746_v35 = vpop.eup %2745  ;;  %2763 = vrcp.f32 %v734_v26  ;;  %v736_v36 = vadd.f32 1.0, %v2744_v29  ;;  %v1221_v26 = vld [vmem:[#allocation11 + $0xa8] sm:$0xff]  ;;  %v697_v29 = vsub.f32 0.0, %v4038_v4 }
 0x199   : > { %v2748_v41 = vpop.eup %2747  ;;  %2765 = vrcp.f32 %v735_v31  ;;  %v737_v42 = vadd.f32 1.0, %v2746_v35  ;;  %v724_v31 = vmul.f32 1.442695, %v696_v5  ;;  %2429 = vmatpush3.bf16.msra.mxu1 %v2426_v56  ;;  %v4046_v38 = vpack.c.bf16 %v1221_v26, %v1220_v22 }
 0x19a   : > { %v2750_v45 = vpop.eup %2749  ;;  %2767 = vrcp.f32 %v736_v36  ;;  %v738_v58 = vadd.f32 1.0, %v2748_v41  ;;  %2431 = vmatprep.subr.bf16.mxu1 %v2430_v8  ;;  %v726_v26 = vmul.f32 1.442695, %v697_v29 }
 0x19b   : > { %v2752_v50 = vpop.eup %2751  ;;  %2769 = vrcp.f32 %v737_v42  ;;  %v739_v63 = vadd.f32 1.0, %v2750_v45 }
 0x19c   : > { %v2754_v57 = vpop.eup %2753  ;;  %v740_v3 = vadd.f32 1.0, %v2752_v50  ;;  %2771 = vpow2.f32 %v720_v52 }
 0x19d   : > { %v2756_v62 = vpop.eup %2755  ;;  %v741_v7 = vadd.f32 1.0, %v2754_v57  ;;  %2773 = vrcp.f32 %v738_v58  ;;  %2433 = vmatpush3.bf16.msra.mxu1 %v2430_v8 }
 0x19e   : > { %v2758_v0 = vpop.eup %2757  ;;  %v808_v10 = vadd.f32 1.0, %v2756_v62  ;;  %2775 = vrcp.f32 %v739_v63  ;;  %v1222_v63 = vld [vmem:[#allocation11 + $0xb0] sm:$0xff] }
 0x19f   : > { %v809_v1 = vadd.f32 1.0, %v2758_v0  ;;  %2777 = vrcp.f32 %v740_v3 }
 0x1a0   : > { %v2760_v9 = vpop.eup %2759  ;;  %2779 = vrcp.f32 %v741_v7 }
 0x1a1   : > { %v2762_v14 = vpop.eup %2761  ;;  %v780_v15 = vmul.f32 %v2760_v9, %v3934_v13  ;;  %v2434_v13 = vpack.c.bf16 %v1219_v12, %v1218_v11  ;;  %2781 = vrcp.f32 %v808_v10 }
 0x1a2   : > { %v2764_v27 = vpop.eup %2763  ;;  %v781_v28 = vmul.f32 %v2762_v14, %v3941_v18  ;;  %2783 = vrcp.f32 %v809_v1  ;;  %v2442_v1 = vpack.c.bf16 %v1223_v2, %v1222_v63  ;;  %v699_v63 = vsub.f32 0.0, %v4012_v17 }
 0x1a3   : > { %v2766_v32 = vpop.eup %2765  ;;  %v866_v33 = vrot.slane %v780_v15, 7  ;;  %v782_v34 = vmul.f32 %v2764_v27, %v3944_v19  ;;  %2435 = vmatprep.subr.bf16.mxu1 %v2434_v13  ;;  %2785 = vpow2.f32 %v722_v21 }
 0x1a4   : > { %v2768_v35 = vpop.eup %2767  ;;  %v867_v36 = vrot.slane %v781_v28, 7  ;;  %v783_v37 = vmul.f32 %v2766_v32, %v3947_v20  ;;  %2437 = vmatpush3.bf16.msra.mxu1 %v2434_v13  ;;  %2787 = vpow2.f32 %v724_v31 }
 0x1a5   : > { %v2770_v18 = vpop.eup %2769  ;;  %v4049_v39 = vsel %vm862_vm0, 0.0, %v866_v33  ;;  %v869_v40 = vrot.slane %v782_v34, 7  ;;  %v784_v41 = vmul.f32 %v2768_v35, %v3952_v23  ;;  %2439 = vmatprep.subr.bf16.mxu1 %v4046_v38  ;;  %2789 = vpow2.f32 %v726_v26 }
 0x1a6   : > { %v4053_v19 = vsel %vm862_vm0, %v866_v33, %v867_v36  ;;  %v934_v42 = vsel %vm862_vm0, %v867_v36, 0.0  ;;  %v965_v44 = vrot.slane %v4049_v39, 1  ;;  %v1054_v20 = vrot.slane %v4049_v39, 2  ;;  %v4064_v57 = vpop.eup %2771 }
 0x1a7   : > { %v966_v45 = vrot.slane %v4053_v19, 1  ;;  %v968_v48 = vrot.slane %v934_v42, 1  ;;  %v1055_v50 = vrot.slane %v4053_v19, 2  ;;  %v870_v52 = vrot.slane %v783_v37, 7  ;;  %v2774_v0 = vpop.eup %2773 }
 0x1a8   : > { %v4061_v23 = vsel %vm862_vm0, 0.0, %v869_v40  ;;  %v785_v53 = vmul.f32 %v2770_v18, %v3955_v24  ;;  %v872_v56 = vrot.slane %v784_v41, 7  ;;  %v1057_v62 = vrot.slane %v934_v42, 2  ;;  %v2776_v8 = vpop.eup %2775  ;;  %2441 = vmatpush3.bf16.msra.mxu1 %v4046_v38 }
 0x1a9   : > { %v969_v58 = vsel %vm959_vm1, %v966_v45, %v968_v48  ;;  %v967_v60 = vsel %vm959_vm1, %v965_v44, %v966_v45  ;;  %v4069_v61 = vsel %vm862_vm0, %v869_v40, %v870_v52  ;;  %v1056_v24 = vsel %vm1048_vm2, %v1054_v20, %v1055_v50  ;;  %v2778_v14 = vpop.eup %2777  ;;  %2443 = vmatprep.subr.bf16.mxu1 %v2442_v1 }
 0x1aa   : > { %1006 = vrot.lane.b32.xlu1 %v969_v58, %s3259_s13  ;;  %1004 = vrot.lane.b32.xlu0 %v967_v60, %s3259_s13  ;;  %v970_v3 = vrot.slane %v4061_v23, 1  ;;  %v971_v5 = vrot.slane %v4069_v61, 1  ;;  %v1059_v7 = vrot.slane %v4061_v23, 2  ;;  %v1060_v9 = vrot.slane %v4069_v61, 2  ;;  %v2780_v21 = vpop.eup %2779 }
 0x1ab   : > { %v935_v10 = vsel %vm862_vm0, %v870_v52, 0.0  ;;  %v873_v11 = vrot.slane %v785_v53, 7  ;;  %v4081_v12 = vsel %vm862_vm0, 0.0, %v872_v56  ;;  %v2782_v27 = vpop.eup %2781  ;;  %v1058_v28 = vsel %vm1048_vm2, %v1055_v50, %v1057_v62 }
 0x1ac   : > { %v972_v15 = vsel %vm959_vm1, %v970_v3, %v971_v5  ;;  %v973_v32 = vrot.slane %v935_v10, 1  ;;  %v975_v33 = vrot.slane %v4081_v12, 1  ;;  %v2784_v34 = vpop.eup %2783  ;;  %v1061_v13 = vsel %vm1048_vm2, %v1059_v7, %v1060_v9  ;;  %2445 = vmatpush3.bf16.msra.mxu1 %v2442_v1 }
 0x1ad   : > { %v4086_v22 = vsel %vm862_vm0, %v872_v56, %v873_v11  ;;  %v786_v31 = vmul.f32 %v2774_v0, %v3958_v25  ;;  %v787_v29 = vmul.f32 %v2776_v8, %v3965_v30  ;;  %v1062_v36 = vrot.slane %v935_v10, 2  ;;  %v2786_v40 = vpop.eup %2785 }
 0x1ae   : > { %1093 = vrot.lane.b32.xlu1 %v1056_v24, %s3260_s9  ;;  %1008 = vrot.lane.b32.xlu0 %v972_v15, %s3259_s13  ;;  %v976_v35 = vrot.slane %v4086_v22, 1  ;;  %v1064_v41 = vrot.slane %v4081_v12, 2  ;;  %v1065_v42 = vrot.slane %v4086_v22, 2  ;;  %v936_v25 = vsel %vm862_vm0, %v873_v11, 0.0  ;;  %v2788_v2 = vpop.eup %2787 }
 0x1af   : > { %v875_v37 = vrot.slane %v786_v31, 7  ;;  %v876_v18 = vrot.slane %v787_v29, 7  ;;  %v788_v30 = vmul.f32 %v2778_v14, %v3979_v46  ;;  %v974_v38 = vsel %vm959_vm1, %v971_v5, %v973_v32  ;;  %v1171_v31 = vld [vmem:[#allocation11] sm:$0xff]  ;;  %v1172_v29 = vld [vmem:[#allocation11 + $0x8] sm:$0xff] }
 0x1b0   : > { %v977_v44 = vsel %vm959_vm1, %v975_v33, %v976_v35  ;;  %v4111_v20 = vmul.f32 %v2780_v21, %v3984_v51  ;;  %v698_v45 = vsub.f32 0.0, %v4009_v16  ;;  %v814_v52 = vmul.f32 %v2782_v27, %v3989_v54  ;;  %v2790_v21 = vpop.eup %2789 }
 0x1b1   : > { %v4115_v48 = vsel %vm862_vm0, %v875_v37, %v876_v18  ;;  %v4118_v50 = vsel %vm862_vm0, 0.0, %v875_v37  ;;  %v815_v46 = vmul.f32 %v2784_v34, %v3992_v55  ;;  %v978_v53 = vrot.slane %v936_v25, 1 }
 0x1b2   : > { %1095 = vrot.lane.b32.xlu1 %v1058_v28, %s3260_s9  ;;  %1097 = vrot.lane.b32.xlu0 %v1061_v13, %s3260_s9  ;;  %v816_v56 = vstv %s620_s20  ;;  %v742_v58 = vadd.f32 1.0, %v4064_v57  ;;  %v1063_v51 = vsel %vm1048_vm2, %v1060_v9, %v1062_v36  ;;  %v1066_v60 = vsel %vm1048_vm2, %v1064_v41, %v1065_v42  ;;  %v1174_v41 = vld [vmem:[#allocation11 + $0x18] sm:$0xff] }
 0x1b3   : > { %v878_v62 = vrot.slane %v788_v30, 7  ;;  %v980_v54 = vrot.slane %v4118_v50, 1  ;;  %v981_v55 = vrot.slane %v4115_v48, 1  ;;  %v879_v0 = vrot.slane %v4111_v20, 7 }
 0x1b4   : > { %v743_v24 = vadd.f32 1.0, %v2786_v40  ;;  %v817_v57 = vmul.f32 %v816_v56, %v814_v52  ;;  %v818_v3 = vmul.f32 %v816_v56, %v815_v46  ;;  %v728_v5 = vmul.f32 1.442695, %v698_v45  ;;  %v1173_v40 = vld [vmem:[#allocation11 + $0x10] sm:$0xff] }
 0x1b5   : > { %v825_v7 = vsub.f32 0.0, %v4031_v49  ;;  %v979_v8 = vsel %vm959_vm1, %v976_v35, %v978_v53  ;;  %v1067_v9 = vrot.slane %v936_v25, 2  ;;  %2791 = vrcp.f32 %v742_v58  ;;  %v1175_v58 = vld [vmem:[#allocation11 + $0x20] sm:$0xff] }
 0x1b6   : > { %1010 = vrot.lane.b32.xlu1 %v974_v38, %s3259_s13  ;;  %1012 = vrot.lane.b32.xlu0 %v977_v44, %s3259_s13  ;;  %v826_v10 = vsub.f32 0.0, %v4034_v59  ;;  %v1069_v11 = vrot.slane %v4118_v50, 2  ;;  %v1070_v14 = vrot.slane %v4115_v48, 2  ;;  %v937_v15 = vsel %vm862_vm0, %v876_v18, 0.0 }
 0x1b7   : > { %v744_v1 = vadd.f32 1.0, %v2788_v2  ;;  %v982_v26 = vsel %vm959_vm1, %v980_v54, %v981_v55  ;;  %v4143_v27 = vsel %vm862_vm0, %v878_v62, %v879_v0  ;;  %v4146_v28 = vsel %vm862_vm0, 0.0, %v878_v62 }
 0x1b8   : > { %2793 = vrcp.f32 %v743_v24  ;;  %v863_v32 = vrot.slane %v817_v57, 7  ;;  %v864_v33 = vrot.slane %v818_v3, 7  ;;  %v730_v34 = vmul.f32 1.442695, %v699_v63  ;;  %v1177_v24 = vld [vmem:[#allocation11 + $0x30] sm:$0xff] }
 0x1b9   : > { %v983_v13 = vrot.slane %v937_v15, 1  ;;  %v827_v35 = vmul.f32 1.442695, %v825_v7  ;;  %v985_v36 = vrot.slane %v4146_v28, 1  ;;  %v986_v37 = vrot.slane %v4143_v27, 1  ;;  %v1178_v7 = vld [vmem:[#allocation11 + $0x38] sm:$0xff] }
 0x1ba   : > { %1099 = vrot.lane.b32.xlu1 %v1063_v51, %s3260_s9  ;;  %1101 = vrot.lane.b32.xlu0 %v1066_v60, %s3260_s9  ;;  %v745_v18 = vadd.f32 1.0, %v2790_v21  ;;  %2795 = vrcp.f32 %v744_v1  ;;  %v1068_v25 = vsel %vm1048_vm2, %v1065_v42, %v1067_v9  ;;  %v1071_v30 = vsel %vm1048_vm2, %v1069_v11, %v1070_v14  ;;  %v1176_v51 = vld [vmem:[#allocation11 + $0x28] sm:$0xff] }
 0x1bb   : > { %2797 = vpow2.f32 %v728_v5  ;;  %v829_v38 = vmul.f32 1.442695, %v826_v10  ;;  %v4155_v44 = vsel %vm862_vm0, %v863_v32, %v864_v33  ;;  %v4158_v45 = vsel %vm862_vm0, 0.0, %v863_v32  ;;  %v1599_v9 = vld [vmem:[#allocation11 + $0xc8] sm:$0xff] }
 0x1bc   : > { %2799 = vrcp.f32 %v745_v18  ;;  %v2446_v52 = vpack.c.bf16 %v1172_v29, %v1171_v31  ;;  %v2450_v46 = vpack.c.bf16 %v1174_v41, %v1173_v40  ;;  %v984_v42 = vsel %vm959_vm1, %v981_v55, %v983_v13  ;;  %v1180_v13 = vld [vmem:[#allocation11 + $0x48] sm:$0xff] }
 0x1bd   : > { %2801 = vpow2.f32 %v730_v34  ;;  %v987_v53 = vsel %vm959_vm1, %v985_v36, %v986_v37  ;;  %v1072_v56 = vrot.slane %v937_v15, 2  ;;  %v960_v62 = vrot.slane %v4158_v45, 1  ;;  %v1179_v34 = vld [vmem:[#allocation11 + $0x40] sm:$0xff] }
 0x1be   : > { %1014 = vrot.lane.b32.xlu1 %v979_v8, %s3259_s13  ;;  %1016 = vrot.lane.b32.xlu0 %v982_v26, %s3259_s13  ;;  %2803 = vpow2.f32 %v827_v35  ;;  %v961_v63 = vrot.slane %v4155_v44, 1  ;;  %v933_v2 = vsel %vm862_vm0, %v864_v33, 0.0  ;;  %v2454_v55 = vpack.c.bf16 %v1176_v51, %v1175_v58  ;;  %v1598_v8 = vld [vmem:[#allocation11 + $0xc0] sm:$0xff]  ;;  %v1181_v58 = vld [vmem:[#allocation11 + $0x50] sm:$0xff]  ;;  %v1182_v51 = vld [vmem:[#allocation11 + $0x58] sm:$0xff] }
 0x1bf   : > { %v2792_v60 = vpop.eup %2791  ;;  %2805 = vpow2.f32 %v829_v38  ;;  %2447 = vmatprep.subr.bf16.mxu0 %v2446_v52  ;;  %v1073_v57 = vsel %vm1048_vm2, %v1070_v14, %v1072_v56  ;;  %v963_v3 = vrot.slane %v933_v2, 1  ;;  %v4175_v5 = vsel %vm862_vm0, %v879_v0, 0.0 }
 0x1c0   : > { %2449 = vmatpush3.bf16.msra.mxu0 %v2446_v52  ;;  %v962_v10 = vsel %vm959_vm1, %v960_v62, %v961_v63  ;;  %v1049_v11 = vrot.slane %v4158_v45, 2  ;;  %v1050_v15 = vrot.slane %v4155_v44, 2  ;;  %v4180_v1 = vpack.c.bf16 %v1599_v9, %v1598_v8 }
 0x1c1   : > { %2451 = vmatprep.subr.bf16.mxu0 %v2450_v46  ;;  %v790_v14 = vmul.f32 %v2792_v60, %v4002_v6  ;;  %v2458_v0 = vpack.c.bf16 %v1178_v7, %v1177_v24  ;;  %v988_v33 = vrot.slane %v4175_v5, 1  ;;  %v964_v6 = vsel %vm959_vm1, %v961_v63, %v963_v3 }
 0x1c2   : > { %1103 = vrot.lane.b32.xlu1 %v1068_v25, %s3260_s9  ;;  %1105 = vrot.lane.b32.xlu0 %v1071_v30, %s3260_s9  ;;  %v2794_v54 = vpop.eup %2793  ;;  %v1052_v31 = vrot.slane %v933_v2, 2  ;;  %v1075_v18 = vrot.slane %v4143_v27, 2  ;;  %v1074_v30 = vrot.slane %v4146_v28, 2  ;;  %v2462_v52 = vpack.c.bf16 %v1180_v13, %v1179_v34 }
 0x1c3   : > { %v791_v26 = vmul.f32 %v2794_v54, %v4023_v43  ;;  %2494 = vmatprep.subr.bf16.mxu1 %v4180_v1  ;;  %v1051_v43 = vsel %vm1048_vm2, %v1049_v11, %v1050_v15  ;;  %v881_v40 = vrot.slane %v790_v14, 7  ;;  %v989_v60 = vsel %vm959_vm1, %v986_v37, %v988_v33 }
 0x1c4   : > { %v2796_v21 = vpop.eup %2795  ;;  %2453 = vmatpush3.bf16.msra.mxu0 %v2450_v46  ;;  %v1053_v62 = vsel %vm1048_vm2, %v1050_v15, %v1052_v31  ;;  %v1077_v63 = vrot.slane %v4175_v5, 2  ;;  %v2466_v54 = vpack.c.bf16 %v1182_v51, %v1181_v58  ;;  %v1076_v37 = vsel %vm1048_vm2, %v1074_v30, %v1075_v18 }
 0x1c5   : > { %v2798_v20 = vpop.eup %2797  ;;  %2455 = vmatprep.subr.bf16.mxu0 %v2454_v55  ;;  %v882_v41 = vrot.slane %v791_v26, 7  ;;  %v792_v46 = vmul.f32 %v2796_v21, %v4027_v47 }
 0x1c6   : > { %1018 = vrot.lane.b32.xlu1 %v984_v42, %s3259_s13  ;;  %1020 = vrot.lane.b32.xlu0 %v987_v53, %s3259_s13  ;;  %v2800_v32 = vpop.eup %2799  ;;  %v746_v29 = vadd.f32 1.0, %v2798_v20 }
 0x1c7   : > { %v2802_v35 = vpop.eup %2801  ;;  %v793_v42 = vmul.f32 %v2800_v32, %v4038_v4  ;;  %v4203_v2 = vsel %vm862_vm0, %v881_v40, %v882_v41  ;;  %v939_v47 = vsel %vm862_vm0, %v882_v41, 0.0  ;;  %v4207_v4 = vsel %vm862_vm0, 0.0, %v881_v40 }
 0x1c8   : > { %v2804_v36 = vpop.eup %2803  ;;  %2457 = vmatpush3.bf16.msra.mxu0 %v2454_v55  ;;  %v747_v38 = vadd.f32 1.0, %v2802_v35  ;;  %2807 = vrcp.f32 %v746_v29  ;;  %v884_v55 = vrot.slane %v792_v46, 7  ;;  %v991_v3 = vrot.slane %v4203_v2, 1 }
 0x1c9   : > { %v2806_v25 = vpop.eup %2805  ;;  %2459 = vmatprep.subr.bf16.mxu0 %v2458_v0  ;;  %v831_v53 = vadd.f32 1.0, %v2804_v36  ;;  %v885_v24 = vrot.slane %v793_v42, 7  ;;  %v993_v5 = vrot.slane %v939_v47, 1  ;;  %v990_v7 = vrot.slane %v4207_v4, 1 }
 0x1ca   : > { %1107 = vrot.lane.b32.xlu1 %v1073_v57, %s3260_s9  ;;  %1000 = vrot.lane.b32.xlu0 %v962_v10, %s3259_s13  ;;  %v832_v56 = vadd.f32 1.0, %v2806_v25  ;;  %2809 = vrcp.f32 %v747_v38  ;;  %v1078_v57 = vsel %vm1048_vm2, %v1075_v18, %v1077_v63  ;;  %v1080_v8 = vrot.slane %v4203_v2, 2 }
 0x1cb   : > { %2811 = vrcp.f32 %v831_v53  ;;  %v1079_v9 = vrot.slane %v4207_v4, 2  ;;  %v4224_v10 = vsel %vm862_vm0, %v884_v55, %v885_v24  ;;  %v940_v11 = vsel %vm862_vm0, %v885_v24, 0.0 }
 0x1cc   : > { %2461 = vmatpush3.bf16.msra.mxu0 %v2458_v0  ;;  %2813 = vrcp.f32 %v832_v56  ;;  %v994_v21 = vsel %vm959_vm1, %v991_v3, %v993_v5  ;;  %v992_v14 = vsel %vm959_vm1, %v990_v7, %v991_v3  ;;  %v1082_v26 = vrot.slane %v939_v47, 2 }
 0x1cd   : > { %2463 = vmatprep.subr.bf16.mxu0 %v2462_v52  ;;  %v4230_v20 = vsel %vm862_vm0, 0.0, %v884_v55  ;;  %v996_v33 = vrot.slane %v4224_v10, 1  ;;  %v998_v34 = vrot.slane %v940_v11, 1  ;;  %v839_v29 = vstv %s623_s3 }
 0x1ce   : > { %1002 = vrot.lane.b32.xlu1 %v964_v6, %s3259_s13  ;;  %1089 = vrot.lane.b32.xlu0 %v1051_v43, %s3260_s9  ;;  %v995_v13 = vrot.slane %v4230_v20, 1  ;;  %v1083_v31 = vsel %vm1048_vm2, %v1080_v8, %v1082_v26  ;;  %v1084_v18 = vrot.slane %v4230_v20, 2  ;;  %v1087_v38 = vrot.slane %v940_v11, 2 }
 0x1cf   : > { %v999_v30 = vsel %vm959_vm1, %v996_v33, %v998_v34 }
 0x1d0   : > { %2465 = vmatpush3.bf16.msra.mxu0 %v2462_v52  ;;  %v997_v46 = vsel %vm959_vm1, %v995_v13, %v996_v33 }
 0x1d1   : > { %2467 = vmatprep.subr.bf16.mxu0 %v2466_v54 }
 0x1d2   : > { %1022 = vrot.lane.b32.xlu1 %v989_v60, %s3259_s13  ;;  %1091 = vrot.lane.b32.xlu0 %v1053_v62, %s3260_s9  ;;  %v2808_v15 = vpop.eup %2807 }
 0x1d3   : > { %v794_v0 = vmul.f32 %v2808_v15, %v4009_v16  ;;  %v1081_v16 = vsel %vm1048_vm2, %v1079_v9, %v1080_v8 }
 0x1d4   : > { %2469 = vmatpush3.bf16.msra.mxu0 %v2466_v54  ;;  %v2810_v32 = vpop.eup %2809 }
 0x1d5   : > { %2471 = vmatprep.subr.bf16.mxu0 %v4180_v1  ;;  %v795_v35 = vmul.f32 %v2810_v32, %v4012_v17  ;;  %v887_v6 = vrot.slane %v794_v0, 7  ;;  %v2812_v43 = vpop.eup %2811  ;;  %v1085_v17 = vrot.slane %v4224_v10, 2 }
 0x1d6   : > { %1111 = vrot.lane.b32.xlu1 %v1078_v57, %s3260_s9  ;;  %1109 = vrot.lane.b32.xlu0 %v1076_v37, %s3260_s9  ;;  %v2814_v36 = vpop.eup %2813  ;;  %v837_v25 = vmul.f32 %v2812_v43, %v4031_v49 }
 0x1d7   : > { %v888_v40 = vrot.slane %v795_v35, 7  ;;  %v4244_v41 = vsel %vm862_vm0, 0.0, %v887_v6  ;;  %v838_v52 = vmul.f32 %v2814_v36, %v4034_v59  ;;  %v1088_v55 = vsel %vm1048_vm2, %v1085_v17, %v1087_v38  ;;  %v1600_v36 = vld [vmem:[#allocation11 + $0xd0] sm:$0xff] }
 0x1d8   : > { %v840_v56 = vmul.f32 %v839_v29, %v837_v25  ;;  %v1086_v24 = vsel %vm1048_vm2, %v1084_v18, %v1085_v17  ;;  %v1185_v57 = vrot.slane %v4244_v41, 1  ;;  %v1601_v18 = vld [vmem:[#allocation11 + $0xd8] sm:$0xff] }
 0x1d9   : > { %v4254_v42 = vsel %vm862_vm0, %v887_v6, %v888_v40  ;;  %v941_v53 = vsel %vm862_vm0, %v888_v40, 0.0  ;;  %v841_v62 = vmul.f32 %v839_v29, %v838_v52  ;;  %v4305_v38 = vpack.c.bf16 %v1601_v18, %v1600_v36 }
 0x1da   : > { %1026 = vrot.lane.b32.xlu1 %v994_v21, %s3259_s13  ;;  %1024 = vrot.lane.b32.xlu0 %v992_v14, %s3259_s13  ;;  %v1186_v49 = vrot.slane %v4254_v42, 1  ;;  %v1188_v58 = vrot.slane %v941_v53, 1  ;;  %v1197_v51 = vrot.slane %v4254_v42, 2  ;;  %v1199_v60 = vrot.slane %v941_v53, 2  ;;  %v1603_v53 = vld [vmem:[#allocation11 + $0xe8] sm:$0xff] }
 0x1db   : > { %v890_v59 = vrot.slane %v840_v56, 7  ;;  %v891_v54 = vrot.slane %v841_v62, 7  ;;  %v1196_v21 = vrot.slane %v4244_v41, 2 }
 0x1dc   : > { %v1189_v63 = vsel %vm959_vm1, %v1186_v49, %v1188_v58  ;;  %v1200_v47 = vsel %vm1048_vm2, %v1197_v51, %v1199_v60  ;;  %v1187_v15 = vsel %vm959_vm1, %v1185_v57, %v1186_v49  ;;  %v1604_v49 = vld [vmem:[#allocation11 + $0xf0] sm:$0xff]  ;;  %v1605_v58 = vld [vmem:[#allocation11 + $0xf8] sm:$0xff] }
 0x1dd   : > { %v4264_v37 = vsel %vm862_vm0, 0.0, %v890_v59  ;;  %v4270_v3 = vsel %vm862_vm0, %v890_v59, %v891_v54  ;;  %v942_v5 = vsel %vm862_vm0, %v891_v54, 0.0  ;;  %v1198_v0 = vsel %vm1048_vm2, %v1196_v21, %v1197_v51 }
 0x1de   : > { %1115 = vrot.lane.b32.xlu1 %v1083_v31, %s3260_s9  ;;  %1113 = vrot.lane.b32.xlu0 %v1081_v16, %s3260_s9  ;;  %v1572_v7 = vrot.slane %v4270_v3, 1  ;;  %v1574_v8 = vrot.slane %v942_v5, 1  ;;  %v1583_v9 = vrot.slane %v4270_v3, 2  ;;  %v1585_v11 = vrot.slane %v942_v5, 2  ;;  %v1608_v5 = vld [vmem:[#allocation11 + $0x110] sm:$0xff] }
 0x1df   : > { %v1571_v32 = vrot.slane %v4264_v37, 1  ;;  %v1582_v34 = vrot.slane %v4264_v37, 2 }
 0x1e0   : > { %v1575_v14 = vsel %vm959_vm1, %v1572_v7, %v1574_v8  ;;  %v1586_v26 = vsel %vm1048_vm2, %v1583_v9, %v1585_v11 }
 0x1e1   : > { %v1573_v33 = vsel %vm959_vm1, %v1571_v32, %v1572_v7  ;;  %v1584_v13 = vsel %vm1048_vm2, %v1582_v34, %v1583_v9  ;;  %v1609_v7 = vld [vmem:[#allocation11 + $0x118] sm:$0xff] }
 0x1e2   : > { %1030 = vrot.lane.b32.xlu1 %v999_v30, %s3259_s13  ;;  %1028 = vrot.lane.b32.xlu0 %v997_v46, %s3259_s13  ;;  %v1602_v46 = vld [vmem:[#allocation11 + $0xe0] sm:$0xff]  ;;  %v4349_v21 = vpack.c.bf16 %v1609_v7, %v1608_v5 }
 0x1e3   : > { %v4319_v56 = vpack.c.bf16 %v1603_v53, %v1602_v46 }
 0x1e6   : > { %1119 = vrot.lane.b32.xlu1 %v1088_v55, %s3260_s9  ;;  %1117 = vrot.lane.b32.xlu0 %v1086_v24, %s3260_s9  ;;  %v1606_v55 = vld [vmem:[#allocation11 + $0x100] sm:$0xff]  ;;  %v1607_v24 = vld [vmem:[#allocation11 + $0x108] sm:$0xff] }
 0x1e7   : > { %v4341_v57 = vpack.c.bf16 %v1607_v24, %v1606_v55 }
 0x1ea   : > { %1192 = vrot.lane.b32.xlu1 %v1189_v63, %s3259_s13  ;;  %1190 = vrot.lane.b32.xlu0 %v1187_v15, %s3259_s13  ;;  %v4327_v63 = vpack.c.bf16 %v1605_v58, %v1604_v49 }
 0x1ee   : > { %1203 = vrot.lane.b32.xlu1 %v1200_v47, %s3260_s9  ;;  %1201 = vrot.lane.b32.xlu0 %v1198_v0, %s3260_s9 }
 0x1f2   : > { %1576 = vrot.lane.b32.xlu0 %v1573_v33, %s3259_s13  ;;  %1578 = vrot.lane.b32.xlu1 %v1575_v14, %s3259_s13 }
 0x1f6   : > { %1587 = vrot.lane.b32.xlu0 %v1584_v13, %s3260_s9  ;;  %1589 = vrot.lane.b32.xlu1 %v1586_v26, %s3260_s9 }
 0x21c   : > { %v1007_v35 = vpop.permute.xlu1 %1006  ;;  %v1005_v6 = vpop.permute.xlu0 %1004 }
 0x21d   : > { %v1140_v43 = vsel %vm1137_vm3, %v4049_v39, %v1005_v6  ;;  %v1141_v40 = vsel %vm1137_vm3, %v4053_v19, %v1007_v35 }
 0x220   : > { %v1094_v31 = vpop.permute.xlu1 %1093  ;;  %v1009_v16 = vpop.permute.xlu0 %1008 }
 0x221   : > { %v4297_v29 = vsel %vm1154_vm4, %v1140_v43, %v1094_v31  ;;  %v1142_v25 = vsel %vm1137_vm3, %v4061_v23, %v1009_v16 }
 0x222   : > { %2302 = vmatprep.mubr.msk.f32.mxu1 %vm1224_vm5, %v4297_v29 }
 0x224   : > { %v1096_v30 = vpop.permute.xlu1 %1095  ;;  %v1098_v17 = vpop.permute.xlu0 %1097 }
 0x225   : > { %v4308_v39 = vsel %vm1154_vm4, %v1141_v40, %v1096_v30  ;;  %v4311_v52 = vsel %vm1154_vm4, %v1142_v25, %v1098_v17 }
 0x226   : > { %2303 = vmatmul.mubr.msk.f32.vlgmr.msra.gmra.mrb[0].mxu1 %vm1224_vm5, %v4308_v39 }
 0x227   : > { %2305 = vmatprep.mubr.msk.f32.mxu1 %vm1224_vm5, %v4311_v52  ;;  %2500 = vmatpush3.bf16.msra.mxu1 %v4180_v1 }
 0x228   : > { %v1011_v19 = vpop.permute.xlu1 %1010  ;;  %v1013_v23 = vpop.permute.xlu0 %1012  ;;  %2495 = vmatprep.subr.bf16.mxu1 %v4305_v38 }
 0x229   : > { %v1143_v51 = vsel %vm1137_vm3, %v4069_v61, %v1011_v19  ;;  %v1144_v60 = vsel %vm1137_vm3, %v4081_v12, %v1013_v23 }
 0x22b   : > { %2501 = vmatpush3.bf16.msra.mxu1 %v4305_v38 }
 0x22c   : > { %v1100_v62 = vpop.permute.xlu1 %1099  ;;  %v1102_v59 = vpop.permute.xlu0 %1101  ;;  %2496 = vmatprep.subr.bf16.mxu1 %v4319_v56 }
 0x22d   : > { %v4330_v47 = vsel %vm1154_vm4, %v1143_v51, %v1100_v62  ;;  %v4333_v54 = vsel %vm1154_vm4, %v1144_v60, %v1102_v59 }
 0x22e   : > { %2306 = vmatmul.mubr.msk.f32.gmra.mrb[2].mxu1 %vm1224_vm5, %v4330_v47 }
 0x22f   : > { %2308 = vmatprep.mubr.msk.f32.mxu1 %vm1224_vm5, %v4333_v54  ;;  %2502 = vmatpush3.bf16.msra.mxu1 %v4319_v56 }
 0x230   : > { %v1015_v61 = vpop.permute.xlu1 %1014  ;;  %v1017_v12 = vpop.permute.xlu0 %1016  ;;  %2497 = vmatprep.subr.bf16.mxu1 %v4327_v63 }
 0x231   : > { %v1145_v8 = vsel %vm1137_vm3, %v4086_v22, %v1015_v61  ;;  %v1146_v9 = vsel %vm1137_vm3, %v4118_v50, %v1017_v12 }
 0x233   : > { %2503 = vmatpush3.bf16.msra.mxu1 %v4327_v63 }
 0x234   : > { %v1104_v11 = vpop.permute.xlu1 %1103  ;;  %v1106_v15 = vpop.permute.xlu0 %1105  ;;  %2498 = vmatprep.subr.bf16.mxu1 %v4341_v57 }
 0x235   : > { %v4352_v14 = vsel %vm1154_vm4, %v1145_v8, %v1104_v11  ;;  %v4355_v26 = vsel %vm1154_vm4, %v1146_v9, %v1106_v15 }
 0x236   : > { %2309 = vmatmul.mubr.msk.f32.gmra.mrb[4].mxu1 %vm1224_vm5, %v4352_v14 }
 0x237   : > { %2311 = vmatprep.mubr.msk.f32.mxu1 %vm1224_vm5, %v4355_v26  ;;  %2504 = vmatpush3.bf16.msra.mxu1 %v4341_v57 }
 0x238   : > { %v1019_v22 = vpop.permute.xlu1 %1018  ;;  %v1021_v50 = vpop.permute.xlu0 %1020  ;;  %2499 = vmatprep.subr.bf16.mxu1 %v4349_v21 }
 0x239   : > { %v1147_v0 = vsel %vm1137_vm3, %v4115_v48, %v1019_v22 }
 0x23b   : > { %2505 = vmatpush3.bf16.msra.mxu1 %v4349_v21 }
 0x23c   : > { %v1108_v32 = vpop.permute.xlu1 %1107  ;;  %v1001_v33 = vpop.permute.xlu0 %1000 }
 0x23d   : > { %v4367_v34 = vsel %vm1154_vm4, %v1147_v0, %v1108_v32  ;;  %v1138_v13 = vsel %vm1137_vm3, %v4158_v45, %v1001_v33  ;;  %v1148_v45 = vsel %vm1137_vm3, %v4146_v28, %v1021_v50 }
 0x23e   : > { %2312 = vmatmul.mubr.msk.f32.gmra.mrb[6].mxu1 %vm1224_vm5, %v4367_v34 }
 0x240   : > { %v1003_v35 = vpop.permute.xlu1 %1002  ;;  %v1090_v6 = vpop.permute.xlu0 %1089 }
 0x241   : > { %v1155_v43 = vsel %vm1154_vm4, %v1138_v13, %v1090_v6  ;;  %v1139_v48 = vsel %vm1137_vm3, %v4155_v44, %v1003_v35 }
 0x242   : > { %2350 = vmatprep.mubr.msk.f32.mxu0 %vm1224_vm5, %v1155_v43 }
 0x244   : > { %v1023_v31 = vpop.permute.xlu1 %1022  ;;  %v1092_v16 = vpop.permute.xlu0 %1091 }
 0x245   : > { %v1156_v36 = vsel %vm1154_vm4, %v1139_v48, %v1092_v16  ;;  %v1149_v18 = vsel %vm1137_vm3, %v4143_v27, %v1023_v31 }
 0x246   : > { %2351 = vmatmul.mubr.msk.f32.vlgmr.msra.gmra.mrb[0].mxu0 %vm1224_vm5, %v1156_v36 }
 0x247   : > { %2353 = vmatprep.mubr.msk.f32.mxu0 %vm1224_vm5, %v4297_v29  ;;  %2473 = vmatpush3.bf16.msra.mxu0 %v4180_v1 }
 0x248   : > { %v1112_v40 = vpop.permute.xlu1 %1111  ;;  %v1110_v25 = vpop.permute.xlu0 %1109  ;;  %2475 = vmatprep.subr.bf16.mxu0 %v4305_v38 }
 0x249   : > { %v4388_v44 = vsel %vm1154_vm4, %v1149_v18, %v1112_v40  ;;  %v4391_v30 = vsel %vm1154_vm4, %v1148_v45, %v1110_v25 }
 0x24a   : > { %2314 = vmatprep.mubr.msk.f32.mxu1 %vm1224_vm5, %v4391_v30  ;;  %2354 = vmatmul.mubr.msk.f32.gmra.mrb[2].mxu0 %vm1224_vm5, %v4308_v39 }
 0x24b   : > { %2315 = vmatmul.mubr.msk.f32.gmra.mrb[8].mxu1 %vm1224_vm5, %v4388_v44  ;;  %2356 = vmatprep.mubr.msk.f32.mxu0 %vm1224_vm5, %v4311_v52 }
 0x24c   : > { %v1027_v27 = vpop.permute.xlu1 %1026  ;;  %v1025_v28 = vpop.permute.xlu0 %1024  ;;  %2477 = vmatpush3.bf16.msra.mxu0 %v4305_v38 }
 0x24d   : > { %2479 = vmatprep.subr.bf16.mxu0 %v4319_v56  ;;  %v1151_v1 = vsel %vm1137_vm3, %v4203_v2, %v1027_v27  ;;  %v1150_v29 = vsel %vm1137_vm3, %v4207_v4, %v1025_v28  ;;  %v4498_v28 = vld [vmem:[%s536_s28] ss:$0 sm:$0xff] }
 0x24e   : > { %2357 = vmatmul.mubr.msk.f32.gmra.mrb[4].mxu0 %vm1224_vm5, %v4330_v47 }
 0x24f   : > { %2359 = vmatprep.mubr.msk.f32.mxu0 %vm1224_vm5, %v4333_v54 }
 0x250   : > { %v1116_v17 = vpop.permute.xlu1 %1115  ;;  %v1114_v39 = vpop.permute.xlu0 %1113  ;;  %2481 = vmatpush3.bf16.msra.mxu0 %v4319_v56 }
 0x251   : > { %v1168_v38 = vsel %vm1154_vm4, %v1151_v1, %v1116_v17  ;;  %v1167_v46 = vsel %vm1154_vm4, %v1150_v29, %v1114_v39  ;;  %2483 = vmatprep.subr.bf16.mxu0 %v4327_v63  ;;  %v1801_v39 = vld [vmem:[%s3912_s7 + $0x8] sm:$0xff] }
 0x252   : > { %2317 = vmatprep.mubr.msk.f32.mxu1 %vm1224_vm5, %v1167_v46  ;;  %2360 = vmatmul.mubr.msk.f32.gmra.mrb[6].mxu0 %vm1224_vm5, %v4352_v14 }
 0x253   : > { %2318 = vmatmul.mubr.msk.f32.gmra.mrb[10].mxu1 %vm1224_vm5, %v1168_v38  ;;  %2362 = vmatprep.mubr.msk.f32.mxu0 %vm1224_vm5, %v4355_v26 }
 0x254   : > { %v1031_v2 = vpop.permute.xlu1 %1030  ;;  %v1029_v4 = vpop.permute.xlu0 %1028  ;;  %2485 = vmatpush3.bf16.msra.mxu0 %v4327_v63 }
 0x255   : > { %2487 = vmatprep.subr.bf16.mxu0 %v4341_v57  ;;  %v1153_v53 = vsel %vm1137_vm3, %v4224_v10, %v1031_v2  ;;  %v1152_v19 = vsel %vm1137_vm3, %v4230_v20, %v1029_v4 }
 0x256   : > { %2363 = vmatmul.mubr.msk.f32.gmra.mrb[8].mxu0 %vm1224_vm5, %v4367_v34 }
 0x257   : > { %2365 = vmatprep.mubr.msk.f32.mxu0 %vm1224_vm5, %v4391_v30 }
 0x258   : > { %v1120_v23 = vpop.permute.xlu1 %1119  ;;  %v1118_v56 = vpop.permute.xlu0 %1117  ;;  %2489 = vmatpush3.bf16.msra.mxu0 %v4341_v57 }
 0x259   : > { %v1170_v49 = vsel %vm1154_vm4, %v1153_v53, %v1120_v23  ;;  %v1169_v58 = vsel %vm1154_vm4, %v1152_v19, %v1118_v56  ;;  %2491 = vmatprep.subr.bf16.mxu0 %v4349_v21  ;;  %v1800_v53 = vld [vmem:[%s3912_s7] sm:$0xff]  ;;  %v1809_v19 = vld [vmem:[%s3912_s7 + $0x48] sm:$0xff] }
 0x25a   : > { %2320 = vmatprep.mubr.msk.f32.mxu1 %vm1224_vm5, %v1169_v58  ;;  %2366 = vmatmul.mubr.msk.f32.gmra.mrb[10].mxu0 %vm1224_vm5, %v4388_v44 }
 0x25b   : > { %2321 = vmatmul.mubr.msk.f32.gmra.mrb[12].mxu1 %vm1224_vm5, %v1170_v49  ;;  %2368 = vmatprep.mubr.msk.f32.mxu0 %vm1224_vm5, %v1167_v46 }
 0x25c   : > { %v1193_v10 = vpop.permute.xlu1 %1192  ;;  %v1191_v20 = vpop.permute.xlu0 %1190  ;;  %2493 = vmatpush3.bf16.msra.mxu0 %v4349_v21 }
 0x25d   : > { %v1208_v51 = vsel %vm1137_vm3, %v4254_v42, %v1193_v10  ;;  %v1207_v60 = vsel %vm1137_vm3, %v4244_v41, %v1191_v20 }
 0x25e   : > { %2369 = vmatmul.mubr.msk.f32.gmra.mrb[12].mxu0 %vm1224_vm5, %v1168_v38 }
 0x25f   : > { %2371 = vmatprep.mubr.msk.f32.mxu0 %vm1224_vm5, %v1169_v58 }
 0x260   : > { %v1204_v62 = vpop.permute.xlu1 %1203  ;;  %v1202_v59 = vpop.permute.xlu0 %1201 }
 0x261   : > { %v1210_v63 = vsel %vm1154_vm4, %v1208_v51, %v1204_v62  ;;  %v1209_v55 = vsel %vm1154_vm4, %v1207_v60, %v1202_v59 }
 0x262   : > { %2323 = vmatprep.mubr.msk.f32.mxu1 %vm1224_vm5, %v1209_v55  ;;  %2372 = vmatmul.mubr.msk.f32.gmra.mrb[14].mxu0 %vm1224_vm5, %v1170_v49 }
 0x263   : > { %2324 = vmatmul.mubr.msk.f32.gmra.mrb[14].mxu1 %vm1224_vm5, %v1210_v63  ;;  %2398 = vmatprep.mubr.msk.f32.mxu0 %vm1224_vm5, %v4311_v52 }
 0x264   : > { %2410 = vmatprep.mubr.msk.f32.mxu1 %vm1224_vm5, %v1167_v46  ;;  %v1577_v42 = vpop.permute.xlu0 %1576  ;;  %v1579_v41 = vpop.permute.xlu1 %1578 }
 0x265   : > { %v1593_v24 = vsel %vm1137_vm3, %v4264_v37, %v1577_v42  ;;  %v1803_v42 = vld [vmem:[%s3912_s7 + $0x18] sm:$0xff] }
 0x266   : > { %2399 = vmatmul.mubr.msk.f32.vlgmr.msra.gmra.mrb[0].mxu0 %vm1224_vm5, %v4330_v47 }
 0x267   : > { %2401 = vmatprep.mubr.msk.f32.mxu0 %vm1224_vm5, %v4333_v54  ;;  %2411 = vmatmul.mubr.msk.f32.vlgmr.msra.gmra.mrb[16].mxu1 %vm1224_vm5, %v1168_v38  ;;  %v1594_v54 = vsel %vm1137_vm3, %v4270_v3, %v1579_v41 }
 0x268   : > { %2413 = vmatprep.mubr.msk.f32.mxu1 %vm1224_vm5, %v1169_v58  ;;  %v1588_v52 = vpop.permute.xlu0 %1587  ;;  %v1590_v37 = vpop.permute.xlu1 %1589  ;;  %v1808_v58 = vld [vmem:[%s3912_s7 + $0x40] sm:$0xff] }
 0x269   : > { %v1595_v47 = vsel %vm1154_vm4, %v1593_v24, %v1588_v52  ;;  %v1596_v61 = vsel %vm1154_vm4, %v1594_v54, %v1590_v37  ;;  %v1802_v37 = vld [vmem:[%s3912_s7 + $0x10] sm:$0xff] }
 0x26a   : > { %2402 = vmatmul.mubr.msk.f32.gmra.mrb[2].mxu0 %vm1224_vm5, %v4352_v14 }
 0x26b   : > { %2404 = vmatprep.mubr.msk.f32.mxu0 %vm1224_vm5, %v4355_v26  ;;  %2414 = vmatmul.mubr.msk.f32.gmra.mrb[18].mxu1 %vm1224_vm5, %v1170_v49 }
 0x26c   : > { %2416 = vmatprep.mubr.msk.f32.mxu1 %vm1224_vm5, %v1209_v55 }
 0x26e   : > { %2405 = vmatmul.mubr.msk.f32.gmra.mrb[4].mxu0 %vm1224_vm5, %v4367_v34 }
 0x26f   : > { %2407 = vmatprep.mubr.msk.f32.mxu0 %vm1224_vm5, %v4391_v30  ;;  %2417 = vmatmul.mubr.msk.f32.gmra.mrb[20].mxu1 %vm1224_vm5, %v1210_v63 }
 0x270   : > { %2419 = vmatprep.mubr.msk.f32.mxu1 %vm1224_vm5, %v1595_v47 }
 0x272   : > { %2408 = vmatmul.mubr.msk.f32.gmra.mrb[6].mxu0 %vm1224_vm5, %v4388_v44 }
 0x273   : > { %2420 = vmatmul.mubr.msk.f32.gmra.mrb[22].mxu1 %vm1224_vm5, %v1596_v61  ;;  %v1811_v61 = vld [vmem:[%s3912_s7 + $0x58] sm:$0xff] }
 0x2f9   : > { %v2304_v12 = vpop.f32.mrb[0].mxu1 }
 0x2fa   : > { %v1339_v57 = vpop.f32.mrb[1].mxu1 }
 0x301   : > { %v2307_v5 = vpop.f32.mrb[2].mxu1 }
 0x302   : > { %v1349_v7 = vpop.f32.mrb[3].mxu1 }
 0x309   : > { %v4482_v3 = vpop.f32.mrb[4].mxu1 }
 0x30a   : > { %v4484_v8 = vpop.f32.mrb[5].mxu1 }
 0x311   : > { %v4486_v9 = vpop.f32.mrb[6].mxu1 }
 0x312   : > { %v4488_v11 = vpop.f32.mrb[7].mxu1 }
 0x31e   : > { %v2316_v15 = vpop.f32.mrb[8].mxu1 }
 0x31f   : > { %v1379_v21 = vpop.f32.mrb[9].mxu1 }
 0x326   : > { %v2319_v14 = vpop.f32.mrb[10].mxu1 }
 0x327   : > { %v1389_v26 = vpop.f32.mrb[11].mxu1 }
 0x329   : > { %v2364_v22 = vpop.f32.mrb[8].mxu0 }
 0x32a   : > { %v1536_v50 = vadd.f32 %v2364_v22, %v2316_v15  ;;  %v1530_v0 = vpop.f32.mrb[9].mxu0 }
 0x32b   : > { %v1531_v32 = vadd.f32 %v1530_v0, %v1379_v21 }
 0x32d   : > { %v2367_v33 = vpop.f32.mrb[10].mxu0 }
 0x32e   : > { %v1546_v34 = vadd.f32 %v2367_v33, %v2319_v14  ;;  %v2322_v13 = vpop.f32.mrb[12].mxu1  ;;  %v1540_v35 = vpop.f32.mrb[11].mxu0  ;;  %v1805_v33 = vld [vmem:[%s3912_s7 + $0x28] sm:$0xff] }
 0x32f   : > { %v1541_v6 = vadd.f32 %v1540_v35, %v1389_v26  ;;  %v1399_v43 = vpop.f32.mrb[13].mxu1 }
 0x331   : > { %v2370_v48 = vpop.f32.mrb[12].mxu0 }
 0x332   : > { %v1556_v31 = vadd.f32 %v2370_v48, %v2322_v13  ;;  %v1550_v16 = vpop.f32.mrb[13].mxu0  ;;  %v1813_v48 = vld [vmem:[%s3912_s7 + $0x68] sm:$0xff] }
 0x333   : > { %v4490_v36 = vadd.f32 %v1550_v16, %v1399_v43  ;;  %v1804_v43 = vld [vmem:[%s3912_s7 + $0x20] sm:$0xff] }
 0x335   : > { %v2373_v45 = vpop.f32.mrb[14].mxu0 }
 0x336   : > { %v2325_v18 = vpop.f32.mrb[14].mxu1  ;;  %v1560_v40 = vpop.f32.mrb[15].mxu0 }
 0x337   : > { %v4492_v25 = vadd.f32 %v2373_v45, %v2325_v18  ;;  %v1409_v44 = vpop.f32.mrb[15].mxu1 }
 0x338   : > { %v4494_v30 = vadd.f32 %v1560_v40, %v1409_v44 }
 0x339   : > { %v2400_v27 = vpop.f32.mrb[0].mxu0 }
 0x33a   : > { %v2506_v1 = vadd.f32 %v2400_v27, %v2304_v12  ;;  %v1682_v29 = vpop.f32.mrb[1].mxu0  ;;  %v2412_v17 = vpop.f32.mrb[16].mxu1 }
 0x33b   : > { %v2507_v38 = vadd.f32 %v1682_v29, %v1339_v57  ;;  %v1770_v46 = vadd.f32 %v2412_v17, %v1536_v50  ;;  %v1722_v2 = vpop.f32.mrb[17].mxu1 }
 0x33c   : > { %v1785_v4 = vadd.f32 %v2506_v1, %v4498_v28  ;;  %v1769_v23 = vadd.f32 %v1722_v2, %v1531_v32 }
 0x33d   : > { %v1784_v56 = vadd.f32 %v2507_v38, %v4498_v28  ;;  %v1793_v49 = vadd.f32 %v4498_v28, %v1770_v46  ;;  %v2403_v10 = vpop.f32.mrb[2].mxu0 }
 0x33e   : > { %v1817_v20 = vadd.f32 %v1801_v39, %v1785_v4  ;;  %v1792_v51 = vadd.f32 %v4498_v28, %v1769_v23  ;;  %v2508_v60 = vadd.f32 %v2403_v10, %v2307_v5  ;;  %v1692_v62 = vpop.f32.mrb[3].mxu0  ;;  %v2415_v59 = vpop.f32.mrb[18].mxu1  ;;  %v1807_v39 = vld [vmem:[%s3912_s7 + $0x38] sm:$0xff] }
 0x33f   : > { %v1816_v63 = vadd.f32 %v1800_v53, %v1784_v56  ;;  %v1825_v55 = vadd.f32 %v1809_v19, %v1793_v49  ;;  %v2509_v41 = vadd.f32 %v1692_v62, %v1349_v7  ;;  %v1772_v24 = vadd.f32 %v2415_v59, %v1546_v34  ;;  %v1732_v52 = vpop.f32.mrb[19].mxu1  ;;  %v1810_v7 = vld [vmem:[%s3912_s7 + $0x50] sm:$0xff]  ;;  %v1815_v19 = vld [vmem:[%s3912_s7 + $0x78] sm:$0xff] }
 0x340   : > { %1833 = vst.msk [vmem:[%s4510_s10 + $0x8] sm:$0xff] %vm1137_vm3, %v1817_v20  ;;  %v1824_v47 = vadd.f32 %v1808_v58, %v1792_v51  ;;  %v1787_v54 = vadd.f32 %v2508_v60, %v4498_v28  ;;  %v1771_v12 = vadd.f32 %v1732_v52, %v1541_v6  ;;  %v1806_v53 = vld [vmem:[%s3912_s7 + $0x30] sm:$0xff] }
 0x341   : > { %1832 = vst.msk [vmem:[%s4510_s10] sm:$0xff] %vm1137_vm3, %v1816_v63  ;;  %1841 = vst.msk [vmem:[%s4510_s10 + $0x48] sm:$0xff] %vm1137_vm3, %v1825_v55  ;;  %v1786_v57 = vadd.f32 %v2509_v41, %v4498_v28  ;;  %v1795_v5 = vadd.f32 %v4498_v28, %v1772_v24  ;;  %v2406_v15 = vpop.f32.mrb[4].mxu0  ;;  %v1814_v56 = vld [vmem:[%s3912_s7 + $0x70] sm:$0xff] }
 0x342   : > { %1840 = vst.msk [vmem:[%s4510_s10 + $0x40] sm:$0xff] %vm1137_vm3, %v1824_v47  ;;  %v1819_v21 = vadd.f32 %v1803_v42, %v1787_v54  ;;  %v1794_v14 = vadd.f32 %v4498_v28, %v1771_v12  ;;  %v2510_v26 = vadd.f32 %v2406_v15, %v4482_v3  ;;  %v1702_v22 = vpop.f32.mrb[5].mxu0  ;;  %v2418_v50 = vpop.f32.mrb[20].mxu1 }
 0x343   : > { %v1818_v0 = vadd.f32 %v1802_v37, %v1786_v57  ;;  %v1827_v32 = vadd.f32 %v1811_v61, %v1795_v5  ;;  %v2511_v34 = vadd.f32 %v1702_v22, %v4484_v8  ;;  %v1774_v13 = vadd.f32 %v2418_v50, %v1556_v31  ;;  %v1742_v35 = vpop.f32.mrb[21].mxu1  ;;  %v1812_v31 = vld [vmem:[%s3912_s7 + $0x60] sm:$0xff] }
 0x344   : > { %1835 = vst.msk [vmem:[%s4510_s10 + $0x18] sm:$0xff] %vm1137_vm3, %v1819_v21  ;;  %v1826_v6 = vadd.f32 %v1810_v7, %v1794_v14  ;;  %v1789_v3 = vadd.f32 %v2510_v26, %v4498_v28  ;;  %v1773_v16 = vadd.f32 %v1742_v35, %v4490_v36 }
 0x345   : > { %1834 = vst.msk [vmem:[%s4510_s10 + $0x10] sm:$0xff] %vm1137_vm3, %v1818_v0  ;;  %1843 = vst.msk [vmem:[%s4510_s10 + $0x58] sm:$0xff] %vm1137_vm3, %v1827_v32  ;;  %v1788_v45 = vadd.f32 %v2511_v34, %v4498_v28  ;;  %v1797_v8 = vadd.f32 %v4498_v28, %v1774_v13  ;;  %v2409_v18 = vpop.f32.mrb[6].mxu0 }
 0x346   : > { %1842 = vst.msk [vmem:[%s4510_s10 + $0x50] sm:$0xff] %vm1137_vm3, %v1826_v6  ;;  %v1821_v40 = vadd.f32 %v1805_v33, %v1789_v3  ;;  %v1796_v36 = vadd.f32 %v4498_v28, %v1773_v16  ;;  %v2512_v44 = vadd.f32 %v2409_v18, %v4486_v9  ;;  %v1712_v27 = vpop.f32.mrb[7].mxu0  ;;  %v2421_v1 = vpop.f32.mrb[22].mxu1 }
 0x347   : > { %v1820_v29 = vadd.f32 %v1804_v43, %v1788_v45  ;;  %v1829_v17 = vadd.f32 %v1813_v48, %v1797_v8  ;;  %v2513_v38 = vadd.f32 %v1712_v27, %v4488_v11  ;;  %v1776_v46 = vadd.f32 %v2421_v1, %v4492_v25  ;;  %v1752_v2 = vpop.f32.mrb[23].mxu1 }
 0x348   : > { %1837 = vst.msk [vmem:[%s4510_s10 + $0x28] sm:$0xff] %vm1137_vm3, %v1821_v40  ;;  %v1828_v4 = vadd.f32 %v1812_v31, %v1796_v36  ;;  %v1791_v9 = vadd.f32 %v2512_v44, %v4498_v28  ;;  %v1775_v23 = vadd.f32 %v1752_v2, %v4494_v30 }
 0x349   : > { %1836 = vst.msk [vmem:[%s4510_s10 + $0x20] sm:$0xff] %vm1137_vm3, %v1820_v29  ;;  %1845 = vst.msk [vmem:[%s4510_s10 + $0x68] sm:$0xff] %vm1137_vm3, %v1829_v17  ;;  %v1790_v11 = vadd.f32 %v2513_v38, %v4498_v28  ;;  %v1799_v25 = vadd.f32 %v4498_v28, %v1776_v46 }
 0x34a   : > { %1844 = vst.msk [vmem:[%s4510_s10 + $0x60] sm:$0xff] %vm1137_vm3, %v1828_v4  ;;  %v1823_v49 = vadd.f32 %v1807_v39, %v1791_v9  ;;  %v1798_v30 = vadd.f32 %v4498_v28, %v1775_v23 }
 0x34b   : > { %v1822_v58 = vadd.f32 %v1806_v53, %v1790_v11  ;;  %v1831_v10 = vadd.f32 %v1815_v19, %v1799_v25 }
 0x34c   : > { %1839 = vst.msk [vmem:[%s4510_s10 + $0x38] sm:$0xff] %vm1137_vm3, %v1823_v49  ;;  %v1830_v20 = vadd.f32 %v1814_v56, %v1798_v30 }
 0x34d   : > { %1838 = vst.msk [vmem:[%s4510_s10 + $0x30] sm:$0xff] %vm1137_vm3, %v1822_v58  ;;  %1847 = vst.msk [vmem:[%s4510_s10 + $0x78] sm:$0xff] %vm1137_vm3, %v1831_v10 }
 0x34e   : > { %1846 = vst.msk [vmem:[%s4510_s10 + $0x70] sm:$0xff] %vm1137_vm3, %v1830_v20 }
 0x34f   : > { %3066 = shalt.err (!%p3063_p9)
}
 0x350   : > { %s3067_s25 = scalar_lea.hbm %s4575_s21, 2048  ;;  %s3071_s7 = scalar_lea.hbm %s4859_s26, 8192 }
 0x351   : > { %p3068_p11 = scmp.ne.s32.totalorder %s4575_s21, %s3067_s25  ;;  %p3072_p6 = scmp.lt.u32.totalorder %s4575_s21, %s4859_s26 }
 0x352   : > { %p3073_p3 = scmp.lt.u32.totalorder %s3071_s7, %s3067_s25  ;;  %p3075_p7 = scmp.lt.u32.totalorder %s3067_s25, %s4575_s21 }
 0x353   : > { %p3069_p10 = pnand %p3068_p11, %p4860_p8 }
 0x354   : > { %p3074_p12 = por %p3073_p3, %p3072_p6 }
 0x355   : > { %p3070_p13 = pneg %p3069_p10 }
 0x356   : > { %p3076_p2 = por %p3075_p7, %p3074_p12 }
 0x358   : > { %p3077_p1 = pnand %p3076_p2, %p3070_p13 }
 0x35a   : > { %3080 = shalt.err (!%p3077_p1)
}
 0x35b   : > { %s3262_s0 = smov 128   ;;  %s3263_s9 = smov 8  }
 0x35c   : > { %2556 = dma.vmem_to_hbm [thread:$0]  (%p4860_p8), %s4577_s27, 2048, %s4575_s21, %s4589_s30, %s3262_s0, %s3262_s0, %s3263_s9  }
 0x35d PF: > { %s4861_s20 = sld [smem:[#allocation39_spill]]  ;;  %s4862_s17 = sld [smem:[#allocation33_spill]] }
 0x35e   : > { %s4863_s3 = sld [smem:[#allocation47_spill]] }
 0x363   : > { %p2591_p4 = scmp.ge.s32.totalorder %s4861_s20, 2  ;;  %s1880_s10 = sand.u32 1, %s4862_s17  }
 0x364   : > { %p4864_p0 = scmp.ne.s32.totalorder %s4863_s3, 0  ;;  %s1881_s18 = scalar_lea.sflag [#allocation4], %s1880_s10 }
 0x366   : > { %p2585_p5 = pnand %p2591_p4, %p4864_p0 }
 0x368   : > { %3178 = dma.done.wait (!%p2585_p5), %s1881_s18, 2048  }
 0x369   : > { %3180 = vsyncadd (!%p2585_p5), %s1881_s18, 4294965248  ;;  %s31_s21 = sadd.s32 1, %s4861_s20   ;;  %s4866_s27 = sld [smem:[#allocation25_spill]] }
 0x36a   : > { %p4618_p9 = scmp.ge.s32.totalorder %s31_s21, 6   ;;  %s4867_s28 = sld [smem:[#allocation26_spill]] }
 0x36b   : > { %s4868_s29 = sld [smem:[#allocation51_spill]]  ;;  %s4869_s30 = sld [smem:[#allocation28_spill]] }
 0x36c   : > { %s4870_s9 = sld [smem:[#allocation29_spill]]  ;;  %s4871_s10 = sld [smem:[#allocation50_spill]] }
 0x36d   : > { %s4872_s11 = sld [smem:[#allocation31_spill]]  ;;  %s4873_s8 = sld [smem:[#allocation32_spill]] }
 0x36e   : > { %s4874_s13 = sld [smem:[#allocation43_spill]]  ;;  %s4875_s5 = sld [smem:[#allocation34_spill]] }
 0x36f   : > { %s4876_s16 = sld [smem:[#allocation45_spill]]  ;;  %s4877_s17 = sld [smem:[#allocation37_spill]] }
 0x370   : > { %s4878_s18 = sld [smem:[#allocation38_spill]]  ;;  %s4879_s19 = sld [smem:[#allocation40_spill]] }
 0x371   : > { %s4880_s20 = sld [smem:[#allocation41_spill]]  ;;  %s4883_s14 = smov %s3223_s15 }
 0x372   :  { %30 = sbr.rel (!%p4618_p9) target bundleno = 27 (0x1b), region = 173 }
 0x373   : > { %s4882_s12 = smov %s4873_s8 }
 0x374   : > { %s4884_s15 = smov %s4875_s5 }
 0x379   :  { %1886 = vsyncpa [#allocation3], 1 }
 0x37a   :  { %1888 = vsyncpa [#allocation3 + $0x1], 1 }
 0x37b   :  { %1889 = vsyncpa [#allocation6], 1 }
 0x37c   :  { %1891 = vsyncpa [#allocation6 + $0x1], 1 }
 0x37d   :  { %1892 = vsyncpa [#allocation9], 1 }
 0x37e   :  { %1894 = vsyncpa [#allocation9 + $0x1], 1 }
 0x37f   :  { %1895 = vsyncpa [#allocation12], 1 }
 0x380   :  { %1896 = vsyncpa [#allocation4], 1 }
 0x381   :  { %1898 = vsyncpa [#allocation4 + $0x1], 1 }

</bundles_post_ra>
